<compile_context>
chip_gen: v5e
topology: v5e:2x2
jax: 0.10.0
libtpu: 0.0.40
codegen_flags: <defaults>
</compile_context>

<pallas_src>
import functools

import jax
import jax.numpy as jnp
from jax.experimental import pallas as pl
from jax.experimental.pallas import tpu as pltpu

K_TEMPORAL = 3
DILATIONS = (1, 2, 3, 4)
EPS = 1e-5


# ------------------------------ fused kernel ------------------------------

def _ms_tcn_kernel(x_ref, wpw_ref, bpw_ref, wtc_ref, btc_ref, mps_ref, mpsh_ref,
                   o_ref, pw_ref, *, cfg):
    (T, V, CIN, BC, COUT, C_ALL, T_TILE, H, DILS, K) = cfg
    nd = len(DILS)
    n_relu_cols = (nd + 1) * BC           # dilated-branch pw + maxpool-branch pw get ReLU
    tt = pl.program_id(1)

    # ---- stage 1 (once per sample): fused 1x1 conv+BN for ALL branches + residual ----
    @pl.when(tt == 0)
    def _():
        x = x_ref[0].reshape(T * V, CIN)
        acc = jnp.dot(x, wpw_ref[...], preferred_element_type=jnp.float32)
        acc = acc + bpw_ref[...]
        col = jax.lax.broadcasted_iota(jnp.int32, (1, C_ALL), 1)
        acc = jnp.where(col < n_relu_cols, jnp.maximum(acc, 0.0), acc)
        if H > 0:
            halo = jnp.zeros((H * V, C_ALL), jnp.float32)
            pw_ref[0:H * V, :] = halo                       # zero halo == conv zero padding
            pw_ref[(T + H) * V:(T + 2 * H) * V, :] = halo   # (pw is ReLU'd, so also exact for maxpool)
        pw_ref[H * V:(T + H) * V, :] = acc

    # ---- stage 2: temporal branches + residual + final ReLU for this T tile ----
    rows = T_TILE * V
    base = tt * rows
    if rows % 8 == 0:
        base = pl.multiple_of(base, 8)
    window = pw_ref[pl.ds(base, (T_TILE + 2 * H) * V), :]    # (win_rows, C_ALL)

    def tap(shift, c0, c1):
        r0 = (H + shift) * V
        return window[r0:r0 + rows, c0:c1]

    branch_outs = []
    # dilated temporal-conv branches: one matmul over K concatenated taps each
    for b, d in enumerate(DILS):
        c0 = b * BC
        xt = jnp.concatenate([tap((k - 1) * d, c0, c0 + BC) for k in range(K)], axis=1)
        y = jnp.dot(xt, wtc_ref[b], preferred_element_type=jnp.float32) + btc_ref[b]
        branch_outs.append(y)

    # maxpool(3,1) + BN branch
    c0 = nd * BC
    m = jnp.maximum(jnp.maximum(tap(-1, c0, c0 + BC), tap(0, c0, c0 + BC)),
                    tap(1, c0, c0 + BC))
    branch_outs.append(m * mps_ref[...] + mpsh_ref[...])

    # plain 1x1 conv + BN branch (already computed in stage 1)
    c0 = (nd + 1) * BC
    branch_outs.append(tap(0, c0, c0 + BC))

    # residual (1x1 TemporalConv == conv + BN)
    c0 = (nd + 2) * BC
    res = tap(0, c0, c0 + COUT)

    out = jnp.maximum(jnp.concatenate(branch_outs, axis=1) + res, 0.0)
    o_ref[...] = out.reshape(1, T_TILE, V, COUT).astype(o_ref.dtype)


def _pick_t_tile(t, v):
    """Largest divisor of t giving roughly <= 2048 flattened (t*V) rows per tile."""
    target_t = max(1, 2048 // max(v, 1))
    best = 1
    for cand in range(1, t + 1):
        if t % cand == 0 and cand <= target_t:
            best = cand
    return best


def multiscale_temporal_conv(x_nchw, params):
    n, cin, t, v = x_nchw.shape
    bc, cout = params["bc"], params["cout"]
    dils, k = params["dilations"], params["k"]
    c_all = params["pw_w"].shape[1]
    h = max(d * (k - 1) // 2 for d in dils)
    t_tile = _pick_t_tile(t, v)
    n_t_tiles = t // t_tile

    x = jnp.transpose(x_nchw, (0, 2, 3, 1)).astype(jnp.float32)     # NCHW -> NTVC

    cfg = (t, v, cin, bc, cout, c_all, t_tile, h, tuple(dils), k)
    kernel = functools.partial(_ms_tcn_kernel, cfg=cfg)

    # Explicit VMEM budget (feedback: budget scratch + double-buffered blocks).
    f32 = 4
    est = ((t + 2 * h) * v * c_all            # pw scratch
           + 2 * t * v * cin                  # x block (double buffered)
           + 2 * t_tile * v * cout            # out block (double buffered)
           + 6 * (t_tile + 2 * h) * v * c_all  # in-kernel working values
           ) * f32
    vmem_limit = int(min(96 * 2**20, max(32 * 2**20, 2 * est)))

    out = pl.pallas_call(
        kernel,
        out_shape=jax.ShapeDtypeStruct((n, t, v, cout), jnp.float32),
        grid=(n, n_t_tiles),
        in_specs=[
            pl.BlockSpec((1, t, v, cin), lambda i, j: (i, 0, 0, 0)),   # full sample, reused over j
            pl.BlockSpec((cin, c_all), lambda i, j: (0, 0)),           # fused pw weight (resident)
            pl.BlockSpec((1, c_all), lambda i, j: (0, 0)),             # fused pw bias
            pl.BlockSpec((len(dils), k * bc, bc), lambda i, j: (0, 0, 0)),  # tap-concat tc weights
            pl.BlockSpec((len(dils), 1, bc), lambda i, j: (0, 0, 0)),       # tc biases
            pl.BlockSpec((1, bc), lambda i, j: (0, 0)),                # maxpool BN scale
            pl.BlockSpec((1, bc), lambda i, j: (0, 0)),                # maxpool BN shift
        ],
        out_specs=pl.BlockSpec((1, t_tile, v, cout), lambda i, j: (i, j, 0, 0)),
        scratch_shapes=[pltpu.VMEM(((t + 2 * h) * v, c_all), jnp.float32)],
        compiler_params=pltpu.CompilerParams(
            dimension_semantics=("parallel", "arbitrary"),
            vmem_limit_bytes=vmem_limit),
    )(x, params["pw_w"], params["pw_b"].reshape(1, c_all),
      params["tc_w"], params["tc_b"], params["mp_scale"], params["mp_shift"])

    return jnp.transpose(out, (0, 3, 1, 2))                           # NTVC -> NCHW


# ----------------------- parameters (deterministic) -----------------------

def _bn_params(key, c):
    k1, k2, k3, k4 = jax.random.split(key, 4)
    gamma = 1.0 + 0.1 * jax.random.normal(k1, (c,), jnp.float32)
    beta = 0.1 * jax.random.normal(k2, (c,), jnp.float32)
    mean = 0.1 * jax.random.normal(k3, (c,), jnp.float32)
    var = 0.5 + 0.3 * jnp.abs(jax.random.normal(k4, (c,), jnp.float32))
    return gamma, beta, mean, var


def _fold_bn(w, b, bn):
    gamma, beta, mean, var = bn
    scale = gamma / jnp.sqrt(var + EPS)
    w_f = w * scale.reshape((-1,) + (1,) * (w.ndim - 1))
    b_f = (b - mean) * scale + beta
    return w_f, b_f


def init_params(key, in_channels, out_channels, dilations=DILATIONS, k=K_TEMPORAL):
    nb = len(dilations) + 2
    assert out_channels % nb == 0, "# out channels should be multiples of # branches"
    bc = out_channels // nb
    keys = iter(jax.random.split(key, 64))

    def conv_w(shape):
        return 0.2 * jax.random.normal(next(keys), shape, jnp.float32)

    # fused pointwise weight column layout:
    # [dil0 pw | dil1 pw | dil2 pw | dil3 pw | maxpool pw | plain pw | residual]
    pw_w_cols, pw_b_cols, tc_ws, tc_bs = [], [], [], []
    for _d in dilations:
        w, b = conv_w((bc, in_channels)), conv_w((bc,))
        wf, bf = _fold_bn(w, b, _bn_params(next(keys), bc))
        pw_w_cols.append(wf.T)                      # (Cin, bc)
        pw_b_cols.append(bf)
        tw, tb = conv_w((bc, bc, k)), conv_w((bc,))  # (Cout, Cin, K)
        twf, tbf = _fold_bn(tw, tb, _bn_params(next(keys), bc))
        # (Cout, Cin, K) -> (K, Cin, Cout) -> (K*Cin, Cout), rows tap-major / cin-minor
        tc_ws.append(jnp.transpose(twf, (2, 1, 0)).reshape(k * bc, bc))
        tc_bs.append(tbf.reshape(1, bc))

    # maxpool branch: 1x1 conv + BN (+ReLU in kernel), then MaxPool(3,1) + affine BN
    w, b = conv_w((bc, in_channels)), conv_w((bc,))
    wf, bf = _fold_bn(w, b, _bn_params(next(keys), bc))
    pw_w_cols.append(wf.T)
    pw_b_cols.append(bf)
    gamma, beta, mean, var = _bn_params(next(keys), bc)
    s = gamma / jnp.sqrt(var + EPS)
    mp_scale = s.reshape(1, bc)
    mp_shift = (beta - mean * s).reshape(1, bc)

    # plain 1x1 branch: conv + BN (no activation)
    w, b = conv_w((bc, in_channels)), conv_w((bc,))
    wf, bf = _fold_bn(w, b, _bn_params(next(keys), bc))
    pw_w_cols.append(wf.T)
    pw_b_cols.append(bf)

    # residual: TemporalConv(in, out, kernel_size=1) == 1x1 conv + BN
    rw, rb = conv_w((out_channels, in_channels)), conv_w((out_channels,))
    rwf, rbf = _fold_bn(rw, rb, _bn_params(next(keys), out_channels))
    pw_w_cols.append(rwf.T)
    pw_b_cols.append(rbf)

    return {
        "bc": bc, "cout": out_channels, "dilations": tuple(dilations), "k": k,
        "pw_w": jnp.concatenate(pw_w_cols, axis=1),   # (Cin, 6*bc + Cout)
        "pw_b": jnp.concatenate(pw_b_cols, axis=0),   # (6*bc + Cout,)
        "tc_w": jnp.stack(tc_ws, axis=0),             # (ND, K*bc, bc)
        "tc_b": jnp.stack(tc_bs, axis=0),             # (ND, 1, bc)
        "mp_scale": mp_scale, "mp_shift": mp_shift,   # (1, bc) each
    }


# --------------------------- pure-JAX reference ---------------------------

def reference(x_nchw, params):
    n, cin, t, v = x_nchw.shape
    bc, cout = params["bc"], params["cout"]
    dils, k = params["dilations"], params["k"]
    nd = len(dils)
    x = jnp.transpose(x_nchw, (0, 2, 3, 1)).astype(jnp.float32)
    pw = jnp.einsum("ntvc,cd->ntvd", x, params["pw_w"]) + params["pw_b"]

    outs = []
    for b, d in enumerate(dils):
        y = jnp.maximum(pw[..., b * bc:(b + 1) * bc], 0.0)
        pad = d * (k - 1) // 2
        yp = jnp.pad(y, ((0, 0), (pad, pad), (0, 0), (0, 0)))
        w = params["tc_w"][b]
        o = params["tc_b"][b] + sum(
            jnp.einsum("ntvc,cd->ntvd", yp[:, kk * d:kk * d + t], w[kk * bc:(kk + 1) * bc])
            for kk in range(k))
        outs.append(o)

    y = jnp.maximum(pw[..., nd * bc:(nd + 1) * bc], 0.0)
    yp = jnp.pad(y, ((0, 0), (1, 1), (0, 0), (0, 0)), constant_values=-jnp.inf)
    m = jnp.maximum(jnp.maximum(yp[:, 0:t], yp[:, 1:t + 1]), yp[:, 2:t + 2])
    outs.append(m * params["mp_scale"] + params["mp_shift"])

    outs.append(pw[..., (nd + 1) * bc:(nd + 2) * bc])
    res = pw[..., (nd + 2) * bc:(nd + 2) * bc + cout]
    out = jnp.maximum(jnp.concatenate(outs, -1) + res, 0.0)
    return jnp.transpose(out, (0, 3, 1, 2))


if __name__ == "__main__":
    key = jax.random.PRNGKey(0)
    kx, kp = jax.random.split(key)
    N, CIN, T, V = 2, 8, 16, 16       # x in PyTorch NCHW: (N, C_in, T, V)
    COUT = 24                          # 6 branches * 4 channels each
    x = jax.random.normal(kx, (N, CIN, T, V), jnp.float32)
    params = init_params(kp, CIN, COUT)

    out = multiscale_temporal_conv(x, params)
    out = jax.block_until_ready(out)

    ref = reference(x, params)
    assert out.shape == (N, COUT, T, V), out.shape
    assert jnp.allclose(out, ref, rtol=1e-4, atol=1e-4), float(jnp.max(jnp.abs(out - ref)))
    print("KERNEL_OK")
</pallas_src>

<mosaic_0001>
module attributes {stable_mosaic.version = 11 : i64} {
  func.func @_ms_tcn_kernel(%arg0: i32, %arg1: i32, %arg2: memref<1x16x16x8xf32, #tpu.memory_space<vmem>>, %arg3: memref<8x48xf32, #tpu.memory_space<vmem>>, %arg4: memref<1x48xf32, #tpu.memory_space<vmem>>, %arg5: memref<4x12x4xf32, #tpu.memory_space<vmem>>, %arg6: memref<4x1x4xf32, #tpu.memory_space<vmem>>, %arg7: memref<1x4xf32, #tpu.memory_space<vmem>>, %arg8: memref<1x4xf32, #tpu.memory_space<vmem>>, %arg9: memref<1x16x16x24xf32, #tpu.memory_space<vmem>>, %arg10: memref<384x48xf32, #tpu.memory_space<vmem>>) attributes {dimension_semantics = [#tpu.dimension_semantics<parallel>, #tpu.dimension_semantics<arbitrary>], iteration_bounds = array<i64: 2, 1>, scalar_prefetch = 0 : i64, scratch_operands = 1 : i64, tpu.core_type = #tpu.core_type<tc>, window_params = [{transform_indices = @transform_0, window_bounds = array<i64: 1, 16, 16, 8>}, {pipeline_mode = #tpu.pipeline_mode<synchronous>, transform_indices = @transform_1, window_bounds = array<i64: 8, 48>}, {pipeline_mode = #tpu.pipeline_mode<synchronous>, transform_indices = @transform_2, window_bounds = array<i64: 1, 48>}, {pipeline_mode = #tpu.pipeline_mode<synchronous>, transform_indices = @transform_3, window_bounds = array<i64: 4, 12, 4>}, {pipeline_mode = #tpu.pipeline_mode<synchronous>, transform_indices = @transform_4, window_bounds = array<i64: 4, 1, 4>}, {pipeline_mode = #tpu.pipeline_mode<synchronous>, transform_indices = @transform_5, window_bounds = array<i64: 1, 4>}, {pipeline_mode = #tpu.pipeline_mode<synchronous>, transform_indices = @transform_6, window_bounds = array<i64: 1, 4>}, {transform_indices = @transform_7, window_bounds = array<i64: 1, 16, 16, 24>}]} {
    %c0_i32 = arith.constant 0 : i32
    %0 = arith.cmpi eq, %arg1, %c0_i32 : i32
    %1 = arith.extui %0 : i1 to i32
    %c0_i32_0 = arith.constant 0 : i32
    %2 = arith.cmpi ne, %1, %c0_i32_0 : i32
    scf.if %2 {
      %c0_34 = arith.constant 0 : index
      %c0_35 = arith.constant 0 : index
      %c0_36 = arith.constant 0 : index
      %c0_37 = arith.constant 0 : index
      %70 = vector.load %arg2[%c0_34, %c0_35, %c0_36, %c0_37] : memref<1x16x16x8xf32, #tpu.memory_space<vmem>>, vector<1x16x16x8xf32>
      %71 = vector.shape_cast %70 : vector<1x16x16x8xf32> to vector<16x16x8xf32>
      %72 = vector.shape_cast %71 : vector<16x16x8xf32> to vector<256x8xf32>
      %c0_38 = arith.constant 0 : index
      %c0_39 = arith.constant 0 : index
      %73 = vector.load %arg3[%c0_38, %c0_39] : memref<8x48xf32, #tpu.memory_space<vmem>>, vector<8x48xf32>
      %cst_40 = arith.constant dense<0.000000e+00> : vector<256x48xf32>
      %74 = tpu.matmul %72, %73, %cst_40 {dimension_numbers = #tpu.dot_dimension_numbers<[1], [0], [0], [1], [0, 0, 1, 1], [], []>} : vector<256x8xf32>, vector<8x48xf32>, vector<256x48xf32> -> vector<256x48xf32>
      %c0_41 = arith.constant 0 : index
      %c0_42 = arith.constant 0 : index
      %75 = vector.load %arg4[%c0_41, %c0_42] : memref<1x48xf32, #tpu.memory_space<vmem>>, vector<1x48xf32>
      %76 = vector.broadcast %75 : vector<1x48xf32> to vector<256x48xf32>
      %77 = arith.addf %74, %76 : vector<256x48xf32>
      %78 = tpu.iota {dimensions = array<i32: 1>} : vector<1x48xi32>
      %c20_i32 = arith.constant 20 : i32
      %79 = vector.broadcast %c20_i32 : i32 to vector<1x48xi32>
      %80 = arith.cmpi slt, %78, %79 : vector<1x48xi32>
      %cst_43 = arith.constant 0.000000e+00 : f32
      %81 = vector.broadcast %cst_43 : f32 to vector<256x48xf32>
      %82 = arith.maximumf %77, %81 : vector<256x48xf32>
      %83 = vector.shape_cast %80 : vector<1x48xi1> to vector<1x48xi1>
      %84 = vector.broadcast %83 : vector<1x48xi1> to vector<256x48xi1>
      %85 = arith.select %84, %82, %77 : vector<256x48xi1>, vector<256x48xf32>
      %cst_44 = arith.constant 0.000000e+00 : f32
      %86 = vector.broadcast %cst_44 : f32 to vector<64x48xf32>
      %c0_45 = arith.constant 0 : index
      %c0_46 = arith.constant 0 : index
      %87 = vector.load %arg10[%c0_45, %c0_46] : memref<384x48xf32, #tpu.memory_space<vmem>>, vector<64x48xf32>
      tpu.vector_store %arg10[%c0_45, %c0_46], %86 {strides = array<i32>} : memref<384x48xf32, #tpu.memory_space<vmem>>, vector<64x48xf32>,
      %c320 = arith.constant 320 : index
      %c0_47 = arith.constant 0 : index
      %88 = vector.load %arg10[%c320, %c0_47] : memref<384x48xf32, #tpu.memory_space<vmem>>, vector<64x48xf32>
      tpu.vector_store %arg10[%c320, %c0_47], %86 {strides = array<i32>} : memref<384x48xf32, #tpu.memory_space<vmem>>, vector<64x48xf32>,
      %c64 = arith.constant 64 : index
      %c0_48 = arith.constant 0 : index
      %89 = vector.load %arg10[%c64, %c0_48] : memref<384x48xf32, #tpu.memory_space<vmem>>, vector<256x48xf32>
      tpu.vector_store %arg10[%c64, %c0_48], %85 {strides = array<i32>} : memref<384x48xf32, #tpu.memory_space<vmem>>, vector<256x48xf32>,
    } else {
    }
    %c256_i32 = arith.constant 256 : i32
    %3 = arith.muli %arg1, %c256_i32 : i32
    %4 = tpu.assume_multiple %3, 8 : i32
    %5 = arith.index_cast %4 : i32 to index
    %c0 = arith.constant 0 : index
    %6 = vector.load %arg10[%5, %c0] : memref<384x48xf32, #tpu.memory_space<vmem>>, vector<384x48xf32>
    %7 = vector.extract_strided_slice %6 {offsets = [48, 0], sizes = [256, 4], strides = [1, 1]} : vector<384x48xf32> to vector<256x4xf32>
    %8 = vector.extract_strided_slice %6 {offsets = [64, 0], sizes = [256, 4], strides = [1, 1]} : vector<384x48xf32> to vector<256x4xf32>
    %9 = vector.extract_strided_slice %6 {offsets = [80, 0], sizes = [256, 4], strides = [1, 1]} : vector<384x48xf32> to vector<256x4xf32>
    %10 = tpu.concatenate %7, %8, %9 in 1 : vector<256x4xf32>, vector<256x4xf32>, vector<256x4xf32> -> vector<256x12xf32>
    %c0_1 = arith.constant 0 : index
    %c0_2 = arith.constant 0 : index
    %c0_3 = arith.constant 0 : index
    %11 = vector.load %arg5[%c0_1, %c0_2, %c0_3] : memref<4x12x4xf32, #tpu.memory_space<vmem>>, vector<1x12x4xf32>
    %12 = vector.shape_cast %11 : vector<1x12x4xf32> to vector<12x4xf32>
    %cst = arith.constant dense<0.000000e+00> : vector<256x4xf32>
    %13 = tpu.matmul %10, %12, %cst {dimension_numbers = #tpu.dot_dimension_numbers<[1], [0], [0], [1], [0, 0, 1, 1], [], []>} : vector<256x12xf32>, vector<12x4xf32>, vector<256x4xf32> -> vector<256x4xf32>
    %c0_4 = arith.constant 0 : index
    %c0_5 = arith.constant 0 : index
    %c0_6 = arith.constant 0 : index
    %14 = vector.load %arg6[%c0_4, %c0_5, %c0_6] : memref<4x1x4xf32, #tpu.memory_space<vmem>>, vector<1x1x4xf32>
    %15 = vector.shape_cast %14 : vector<1x1x4xf32> to vector<1x4xf32>
    %16 = vector.broadcast %15 : vector<1x4xf32> to vector<256x4xf32>
    %17 = arith.addf %13, %16 : vector<256x4xf32>
    %18 = vector.extract_strided_slice %6 {offsets = [32, 4], sizes = [256, 4], strides = [1, 1]} : vector<384x48xf32> to vector<256x4xf32>
    %19 = vector.extract_strided_slice %6 {offsets = [64, 4], sizes = [256, 4], strides = [1, 1]} : vector<384x48xf32> to vector<256x4xf32>
    %20 = vector.extract_strided_slice %6 {offsets = [96, 4], sizes = [256, 4], strides = [1, 1]} : vector<384x48xf32> to vector<256x4xf32>
    %21 = tpu.concatenate %18, %19, %20 in 1 : vector<256x4xf32>, vector<256x4xf32>, vector<256x4xf32> -> vector<256x12xf32>
    %c1 = arith.constant 1 : index
    %c0_7 = arith.constant 0 : index
    %c0_8 = arith.constant 0 : index
    %22 = vector.load %arg5[%c1, %c0_7, %c0_8] : memref<4x12x4xf32, #tpu.memory_space<vmem>>, vector<1x12x4xf32>
    %23 = vector.shape_cast %22 : vector<1x12x4xf32> to vector<12x4xf32>
    %cst_9 = arith.constant dense<0.000000e+00> : vector<256x4xf32>
    %24 = tpu.matmul %21, %23, %cst_9 {dimension_numbers = #tpu.dot_dimension_numbers<[1], [0], [0], [1], [0, 0, 1, 1], [], []>} : vector<256x12xf32>, vector<12x4xf32>, vector<256x4xf32> -> vector<256x4xf32>
    %c1_10 = arith.constant 1 : index
    %c0_11 = arith.constant 0 : index
    %c0_12 = arith.constant 0 : index
    %25 = vector.load %arg6[%c1_10, %c0_11, %c0_12] : memref<4x1x4xf32, #tpu.memory_space<vmem>>, vector<1x1x4xf32>
    %26 = vector.shape_cast %25 : vector<1x1x4xf32> to vector<1x4xf32>
    %27 = vector.broadcast %26 : vector<1x4xf32> to vector<256x4xf32>
    %28 = arith.addf %24, %27 : vector<256x4xf32>
    %29 = vector.extract_strided_slice %6 {offsets = [16, 8], sizes = [256, 4], strides = [1, 1]} : vector<384x48xf32> to vector<256x4xf32>
    %30 = vector.extract_strided_slice %6 {offsets = [64, 8], sizes = [256, 4], strides = [1, 1]} : vector<384x48xf32> to vector<256x4xf32>
    %31 = vector.extract_strided_slice %6 {offsets = [112, 8], sizes = [256, 4], strides = [1, 1]} : vector<384x48xf32> to vector<256x4xf32>
    %32 = tpu.concatenate %29, %30, %31 in 1 : vector<256x4xf32>, vector<256x4xf32>, vector<256x4xf32> -> vector<256x12xf32>
    %c2 = arith.constant 2 : index
    %c0_13 = arith.constant 0 : index
    %c0_14 = arith.constant 0 : index
    %33 = vector.load %arg5[%c2, %c0_13, %c0_14] : memref<4x12x4xf32, #tpu.memory_space<vmem>>, vector<1x12x4xf32>
    %34 = vector.shape_cast %33 : vector<1x12x4xf32> to vector<12x4xf32>
    %cst_15 = arith.constant dense<0.000000e+00> : vector<256x4xf32>
    %35 = tpu.matmul %32, %34, %cst_15 {dimension_numbers = #tpu.dot_dimension_numbers<[1], [0], [0], [1], [0, 0, 1, 1], [], []>} : vector<256x12xf32>, vector<12x4xf32>, vector<256x4xf32> -> vector<256x4xf32>
    %c2_16 = arith.constant 2 : index
    %c0_17 = arith.constant 0 : index
    %c0_18 = arith.constant 0 : index
    %36 = vector.load %arg6[%c2_16, %c0_17, %c0_18] : memref<4x1x4xf32, #tpu.memory_space<vmem>>, vector<1x1x4xf32>
    %37 = vector.shape_cast %36 : vector<1x1x4xf32> to vector<1x4xf32>
    %38 = vector.broadcast %37 : vector<1x4xf32> to vector<256x4xf32>
    %39 = arith.addf %35, %38 : vector<256x4xf32>
    %40 = vector.extract_strided_slice %6 {offsets = [0, 12], sizes = [256, 4], strides = [1, 1]} : vector<384x48xf32> to vector<256x4xf32>
    %41 = vector.extract_strided_slice %6 {offsets = [64, 12], sizes = [256, 4], strides = [1, 1]} : vector<384x48xf32> to vector<256x4xf32>
    %42 = vector.extract_strided_slice %6 {offsets = [128, 12], sizes = [256, 4], strides = [1, 1]} : vector<384x48xf32> to vector<256x4xf32>
    %43 = tpu.concatenate %40, %41, %42 in 1 : vector<256x4xf32>, vector<256x4xf32>, vector<256x4xf32> -> vector<256x12xf32>
    %c3 = arith.constant 3 : index
    %c0_19 = arith.constant 0 : index
    %c0_20 = arith.constant 0 : index
    %44 = vector.load %arg5[%c3, %c0_19, %c0_20] : memref<4x12x4xf32, #tpu.memory_space<vmem>>, vector<1x12x4xf32>
    %45 = vector.shape_cast %44 : vector<1x12x4xf32> to vector<12x4xf32>
    %cst_21 = arith.constant dense<0.000000e+00> : vector<256x4xf32>
    %46 = tpu.matmul %43, %45, %cst_21 {dimension_numbers = #tpu.dot_dimension_numbers<[1], [0], [0], [1], [0, 0, 1, 1], [], []>} : vector<256x12xf32>, vector<12x4xf32>, vector<256x4xf32> -> vector<256x4xf32>
    %c3_22 = arith.constant 3 : index
    %c0_23 = arith.constant 0 : index
    %c0_24 = arith.constant 0 : index
    %47 = vector.load %arg6[%c3_22, %c0_23, %c0_24] : memref<4x1x4xf32, #tpu.memory_space<vmem>>, vector<1x1x4xf32>
    %48 = vector.shape_cast %47 : vector<1x1x4xf32> to vector<1x4xf32>
    %49 = vector.broadcast %48 : vector<1x4xf32> to vector<256x4xf32>
    %50 = arith.addf %46, %49 : vector<256x4xf32>
    %51 = vector.extract_strided_slice %6 {offsets = [48, 16], sizes = [256, 4], strides = [1, 1]} : vector<384x48xf32> to vector<256x4xf32>
    %52 = vector.extract_strided_slice %6 {offsets = [64, 16], sizes = [256, 4], strides = [1, 1]} : vector<384x48xf32> to vector<256x4xf32>
    %53 = arith.maximumf %51, %52 : vector<256x4xf32>
    %54 = vector.extract_strided_slice %6 {offsets = [80, 16], sizes = [256, 4], strides = [1, 1]} : vector<384x48xf32> to vector<256x4xf32>
    %55 = arith.maximumf %53, %54 : vector<256x4xf32>
    %c0_25 = arith.constant 0 : index
    %c0_26 = arith.constant 0 : index
    %56 = vector.load %arg7[%c0_25, %c0_26] : memref<1x4xf32, #tpu.memory_space<vmem>>, vector<1x4xf32>
    %57 = vector.broadcast %56 : vector<1x4xf32> to vector<256x4xf32>
    %58 = arith.mulf %55, %57 : vector<256x4xf32>
    %c0_27 = arith.constant 0 : index
    %c0_28 = arith.constant 0 : index
    %59 = vector.load %arg8[%c0_27, %c0_28] : memref<1x4xf32, #tpu.memory_space<vmem>>, vector<1x4xf32>
    %60 = vector.broadcast %59 : vector<1x4xf32> to vector<256x4xf32>
    %61 = arith.addf %58, %60 : vector<256x4xf32>
    %62 = vector.extract_strided_slice %6 {offsets = [64, 20], sizes = [256, 4], strides = [1, 1]} : vector<384x48xf32> to vector<256x4xf32>
    %63 = vector.extract_strided_slice %6 {offsets = [64, 24], sizes = [256, 24], strides = [1, 1]} : vector<384x48xf32> to vector<256x24xf32>
    %64 = tpu.concatenate %17, %28, %39, %50, %61, %62 in 1 : vector<256x4xf32>, vector<256x4xf32>, vector<256x4xf32>, vector<256x4xf32>, vector<256x4xf32>, vector<256x4xf32> -> vector<256x24xf32>
    %65 = arith.addf %64, %63 : vector<256x24xf32>
    %cst_29 = arith.constant 0.000000e+00 : f32
    %66 = vector.broadcast %cst_29 : f32 to vector<256x24xf32>
    %67 = arith.maximumf %65, %66 : vector<256x24xf32>
    %68 = vector.shape_cast %67 : vector<256x24xf32> to vector<1x16x16x24xf32>
    %c0_30 = arith.constant 0 : index
    %c0_31 = arith.constant 0 : index
    %c0_32 = arith.constant 0 : index
    %c0_33 = arith.constant 0 : index
    %69 = vector.load %arg9[%c0_30, %c0_31, %c0_32, %c0_33] : memref<1x16x16x24xf32, #tpu.memory_space<vmem>>, vector<1x16x16x24xf32>
    tpu.vector_store %arg9[%c0_30, %c0_31, %c0_32, %c0_33], %68 {strides = array<i32>} : memref<1x16x16x24xf32, #tpu.memory_space<vmem>>, vector<1x16x16x24xf32>,
    return
  }
  func.func @transform_0(%arg0: i32, %arg1: i32) -> (i32, i32, i32, i32) {
    %c0_i32 = arith.constant 0 : i32
    %c0_i32_0 = arith.constant 0 : i32
    %c0_i32_1 = arith.constant 0 : i32
    %c0_i32_2 = arith.constant 0 : i32
    return %arg0, %c0_i32, %c0_i32_0, %c0_i32_1 : i32, i32, i32, i32
  }
  func.func @transform_1(%arg0: i32, %arg1: i32) -> (i32, i32) {
    %c0_i32 = arith.constant 0 : i32
    %c0_i32_0 = arith.constant 0 : i32
    %c0_i32_1 = arith.constant 0 : i32
    return %c0_i32, %c0_i32_0 : i32, i32
  }
  func.func @transform_2(%arg0: i32, %arg1: i32) -> (i32, i32) {
    %c0_i32 = arith.constant 0 : i32
    %c0_i32_0 = arith.constant 0 : i32
    %c0_i32_1 = arith.constant 0 : i32
    return %c0_i32, %c0_i32_0 : i32, i32
  }
  func.func @transform_3(%arg0: i32, %arg1: i32) -> (i32, i32, i32) {
    %c0_i32 = arith.constant 0 : i32
    %c0_i32_0 = arith.constant 0 : i32
    %c0_i32_1 = arith.constant 0 : i32
    %c0_i32_2 = arith.constant 0 : i32
    return %c0_i32, %c0_i32_0, %c0_i32_1 : i32, i32, i32
  }
  func.func @transform_4(%arg0: i32, %arg1: i32) -> (i32, i32, i32) {
    %c0_i32 = arith.constant 0 : i32
    %c0_i32_0 = arith.constant 0 : i32
    %c0_i32_1 = arith.constant 0 : i32
    %c0_i32_2 = arith.constant 0 : i32
    return %c0_i32, %c0_i32_0, %c0_i32_1 : i32, i32, i32
  }
  func.func @transform_5(%arg0: i32, %arg1: i32) -> (i32, i32) {
    %c0_i32 = arith.constant 0 : i32
    %c0_i32_0 = arith.constant 0 : i32
    %c0_i32_1 = arith.constant 0 : i32
    return %c0_i32, %c0_i32_0 : i32, i32
  }
  func.func @transform_6(%arg0: i32, %arg1: i32) -> (i32, i32) {
    %c0_i32 = arith.constant 0 : i32
    %c0_i32_0 = arith.constant 0 : i32
    %c0_i32_1 = arith.constant 0 : i32
    return %c0_i32, %c0_i32_0 : i32, i32
  }
  func.func @transform_7(%arg0: i32, %arg1: i32) -> (i32, i32, i32, i32) {
    %c0_i32 = arith.constant 0 : i32
    %c0_i32_0 = arith.constant 0 : i32
    %c0_i32_1 = arith.constant 0 : i32
    return %arg0, %arg1, %c0_i32, %c0_i32_0 : i32, i32, i32, i32
  }
}

</mosaic_0001>

<bundles_post_ra>
// kernel: tpu_custom_call.1
= control target key start
LH: loop header
LB: loop body
LE: loop exit
PB: predicated region body
PF: predicated region fallthrough
CT: control target
= control target key end

     0   :  { %12 = vsyncpa [#allocation4], 0  ;;  %s6858_s0 = inlined_call_operand.vmem [shape: f32[2,16,16,8], index: 0, kind: input, shape index: {}]   ;;  %s6859_s1 = inlined_call_operand.vmem [shape: f32[8,48], index: 1, kind: input, shape index: {}]   ;;  %s6860_s2 = inlined_call_operand.vmem [shape: f32[1,48], index: 2, kind: input, shape index: {}]   ;;  %s6861_s3 = inlined_call_operand.vmem [shape: f32[4,12,4], index: 3, kind: input, shape index: {}]   ;;  %s6862_s4 = inlined_call_operand.vmem [shape: f32[4,1,4], index: 4, kind: input, shape index: {}]   ;;  %s6863_s5 = inlined_call_operand.vmem [shape: f32[1,4], index: 5, kind: input, shape index: {}]   ;;  %s6864_s6 = inlined_call_operand.vmem [shape: f32[1,4], index: 6, kind: input, shape index: {}]   ;;  %s6865_s7 = inlined_call_operand.hbm [shape: f32[2,16,16,24], index: 7, kind: output, shape index: {}]  }
   0x1   :  { %14 = vsyncpa [#allocation4 + $0x1], 0  ;;  %s3872_s24 = smov 0   ;;  %s3874_s25 = smov 0  }
   0x2   :  { %s3876_s26 = smov 0   ;;  %s3878_s27 = smov 0  }
   0x3   :  { %s3880_s28 = smov 0   ;;  %s3882_s29 = smov 0  }
   0x4 LB: > { %s3416_s30 = sadd.s32 4294967295, %s3820_s29   ;;  %s3417_s8 = sadd.s32 4294967294, %s3820_s29   ;;  %s3820_s29 = sphi %s3882_s29, %s20_s29   ;;  %s3816_s28 = sphi %s3880_s28, %s7183_s28   ;;  %s3812_s27 = sphi %s3878_s27, %s7182_s27   ;;  %s3808_s26 = sphi %s3876_s26, %s7181_s26   ;;  %s3804_s25 = sphi %s3874_s25, %s7180_s25   ;;  %s3800_s24 = sphi %s3872_s24, %s7179_s24  }
   0x5   : > { %s32_s9 = sadd.s32 1, %s3816_s28  ;;  %s193_s10 = sadd.s32 1, %s3808_s26 }
   0x6   : > { %p34_p0 = scmp.ge.s32.totalorder %s32_s9, 2  ;;  %p203_p1 = scmp.ne.s32.totalorder %s3808_s26, %s3804_s25 }
   0x7   : > { %p204_p2 = scmp.eq.s32.totalorder %s3416_s30, 1  ;;  %p209_p3 = scmp.ne.s32.totalorder %s3804_s25, %s3800_s24 }
   0x8   : > { %s7185_s9 = smov (%p34_p0, %s32_s9), 0  ;;  %p210_p5 = scmp.eq.s32.totalorder %s3417_s8, 1 }
   0x9   : > { %p3912_p4 = por %p204_p2, %p203_p1  ;;  %s188_s12 = ssub.s32 %s3816_s28, %s7185_s9 }
   0xa   : > { %p3420_p6 = scmp.ge.s32.totalorder %s3820_s29, 1  ;;  %p191_p7 = scmp.eq.s32.totalorder %s188_s12, 0 }
   0xb   : > { %p3919_p8 = por %p210_p5, %p209_p3  ;;  %p254_p9 = scmp.lt.s32.totalorder %s3820_s29, 3 }
   0xc   : > { %s3925_s14 = scalar_select %p191_p7, %s3808_s26, %s193_s10  }
   0xd   : > { %p255_p10 = pnand %p3420_p6, %p254_p9 }
   0xf   : > { %258 = sbr.rel (%p255_p10) target bundleno = 1296 (0x510), region = 48 }
  0x14   : > { %v328_v0 = vld [vmem:[%s6859_s1] sm:$0xff]  ;;  %p286_p11 = scmp.lt.s32.totalorder %s3812_s27, 1  ;;  %vm612_vm0 = vcmask 392192   ;;  %v3822_v1 = vmov 0.0   ;;  %vm333_vm1 = vcmask 64512   ;;  %s3823_s22 = smov 124   ;;  %v543_v38 = vlaneseq }
  0x15   : > { %445 = vmatpush.msra.mxu0 %v328_v0  ;;  %3604 = vmatpush.msra.mxu1 %v328_v0  ;;  %617 = vst.msk [vmem:[#allocation2 + $0x20] sm:$0xff] %vm612_vm0, %v3822_v1  ;;  %s3824_s23 = smov 8   ;;  %s3825_s30 = smov 4   ;;  %v4039_v39 = vld [vmem:[%s6860_s2] ss:$0 sm:$0xff]  ;;  %vm1106_vm3 = vcmask 1043456  }
  0x16   : > { %3605 = vmatpush.msra.mxu3 %v328_v0  ;;  %s287_s17 = scalar_select %p286_p11, %s3812_s27, 1  ;;  %613 = vst.msk [vmem:[#allocation2] sm:$0xff] %vm612_vm0, %v3822_v1  ;;  %v4041_v40 = vand.u32 127, %v543_v38  ;;  %vm937_vm4 = vcmask 31744   ;;  %vm1009_vm5 = vcmask 97280   ;;  %vm3063_vm6 = vcmask 130048  }
  0x17   : > { %614 = vst.msk [vmem:[#allocation2 + $0x8] sm:$0xff] %vm612_vm0, %v3822_v1  ;;  %s3826_s8 = smov 120   ;;  %s3827_s19 = smov 116   ;;  %vm3096_vm7 = vcmask 162816   ;;  %vm3289_vm8 = vcmask 195584  }
  0x18   : > { %s3602_s18 = sshll.u32 %s287_s17, 8  ;;  %615 = vst.msk [vmem:[#allocation2 + $0x10] sm:$0xff] %vm612_vm0, %v3822_v1  ;;  %vm545_vm2 = vcmp.lt.s32.totalorder %v4041_v40, 20  ;;  %s3828_s17 = smov 16  }
  0x19   : > { %s3939_s21 = scalar_lea.vmem %s6858_s0, %s3602_s18  ;;  %616 = vst.msk [vmem:[#allocation2 + $0x18] sm:$0xff] %vm612_vm0, %v3822_v1  ;;  %s3829_s20 = smov 12  }
  0x1a   : > { %v296_v2 = vld [vmem:[%s3939_s21] sm:$0xff]  ;;  %v326_v4 = vld [vmem:[%s3939_s21 + $0xf0] sm:$0xff]  ;;  %618 = vst.msk [vmem:[#allocation2 + $0x28] sm:$0xff] %vm612_vm0, %v3822_v1  ;;  %v297_v6 = vld [vmem:[%s3939_s21 + $0x8] sm:$0xff] }
  0x1b   : > { %v304_v3 = vld [vmem:[%s3939_s21 + $0x40] sm:$0xff]  ;;  %3424 = vmatmul.msk.f32.vlgmr.msra.gmra.mxu0 %vm333_vm1, %v296_v2  ;;  %619 = vst.msk [vmem:[#allocation2 + $0x30] sm:$0xff] %vm612_vm0, %v3822_v1  ;;  %3454 = vmatmul.msk.f32.vlgmr.msra.gmra.mxu3 %vm333_vm1, %v326_v4  ;;  %v305_v7 = vld [vmem:[%s3939_s21 + $0x48] sm:$0xff]  ;;  %v327_v8 = vld [vmem:[%s3939_s21 + $0xf8] sm:$0xff] }
  0x1c   : > { %3432 = vmatmul.msk.f32.vlgmr.msra.gmra.mxu1 %vm333_vm1, %v304_v3  ;;  %620 = vst.msk [vmem:[#allocation2 + $0x38] sm:$0xff] %vm612_vm0, %v3822_v1  ;;  %v3951_v5 = vld [vmem:[#allocation2 + $0x20] sm:$0xff]  ;;  %v298_v10 = vld [vmem:[%s3939_s21 + $0x10] sm:$0xff]  ;;  %v299_v13 = vld [vmem:[%s3939_s21 + $0x18] sm:$0xff] }
  0x1d   : > { %621 = vst.msk [vmem:[#allocation2 + $0x140] sm:$0xff] %vm612_vm0, %v3822_v1  ;;  %1227 = vrot.lane.b32.xlu1 %v3951_v5, %s3823_s22  ;;  %v306_v11 = vld [vmem:[%s3939_s21 + $0x50] sm:$0xff]  ;;  %v307_v14 = vld [vmem:[%s3939_s21 + $0x58] sm:$0xff]  ;;  %v300_v16 = vld [vmem:[%s3939_s21 + $0x20] sm:$0xff] }
  0x1e   : > { %622 = vst.msk [vmem:[#allocation2 + $0x148] sm:$0xff] %vm612_vm0, %v3822_v1  ;;  %v308_v17 = vld [vmem:[%s3939_s21 + $0x60] sm:$0xff]  ;;  %v301_v19 = vld [vmem:[%s3939_s21 + $0x28] sm:$0xff]  ;;  %v302_v21 = vld [vmem:[%s3939_s21 + $0x30] sm:$0xff] }
  0x1f   : > { %623 = vst.msk [vmem:[#allocation2 + $0x150] sm:$0xff] %vm612_vm0, %v3822_v1  ;;  %v309_v20 = vld [vmem:[%s3939_s21 + $0x68] sm:$0xff]  ;;  %v310_v22 = vld [vmem:[%s3939_s21 + $0x70] sm:$0xff]  ;;  %v303_v24 = vld [vmem:[%s3939_s21 + $0x38] sm:$0xff] }
  0x20   : > { %624 = vst.msk [vmem:[#allocation2 + $0x158] sm:$0xff] %vm612_vm0, %v3822_v1  ;;  %v311_v25 = vld [vmem:[%s3939_s21 + $0x78] sm:$0xff]  ;;  %v312_v26 = vld [vmem:[%s3939_s21 + $0x80] sm:$0xff]  ;;  %v313_v27 = vld [vmem:[%s3939_s21 + $0x88] sm:$0xff] }
  0x21   : > { %625 = vst.msk [vmem:[#allocation2 + $0x160] sm:$0xff] %vm612_vm0, %v3822_v1  ;;  %v668_v18 = vld [vmem:[#allocation2 + $0x28] sm:$0xff]  ;;  %v314_v28 = vld [vmem:[%s3939_s21 + $0x90] sm:$0xff]  ;;  %v315_v31 = vld [vmem:[%s3939_s21 + $0x98] sm:$0xff] }
  0x22   : > { %626 = vst.msk [vmem:[#allocation2 + $0x168] sm:$0xff] %vm612_vm0, %v3822_v1  ;;  %v3974_v12 = vld [vmem:[#allocation2 + $0x30] sm:$0xff]  ;;  %v666_v32 = vld [vmem:[#allocation2 + $0x18] sm:$0xff]  ;;  %v316_v34 = vld [vmem:[%s3939_s21 + $0xa0] sm:$0xff] }
  0x23   : > { %3425 = vmatmul.msk.f32.gmra.mxu0 %vm333_vm1, %v297_v6  ;;  %627 = vst.msk [vmem:[#allocation2 + $0x170] sm:$0xff] %vm612_vm0, %v3822_v1  ;;  %3455 = vmatmul.msk.f32.gmra.mxu3 %vm333_vm1, %v327_v8  ;;  %v3997_v23 = vld [vmem:[#allocation2 + $0x38] sm:$0xff]  ;;  %v4016_v33 = vld [vmem:[#allocation2 + $0x10] sm:$0xff]  ;;  %v317_v35 = vld [vmem:[%s3939_s21 + $0xa8] sm:$0xff] }
  0x24   : > { %3433 = vmatmul.msk.f32.gmra.mxu1 %vm333_vm1, %v305_v7  ;;  %628 = vst.msk [vmem:[#allocation2 + $0x178] sm:$0xff] %vm612_vm0, %v3822_v1  ;;  %v703_v15 = vld [vmem:[#allocation2 + $0x140] sm:$0xff]  ;;  %v318_v36 = vld [vmem:[%s3939_s21 + $0xb0] sm:$0xff]  ;;  %v319_v37 = vld [vmem:[%s3939_s21 + $0xb8] sm:$0xff] }
  0x25   : > { %v704_v9 = vld [vmem:[#allocation2 + $0x148] sm:$0xff]  ;;  %901 = vrot.lane.b32.xlu2 %v703_v15, %s3824_s23  ;;  %1233 = vrot.lane.b32.xlu1 %v3997_v23, %s3823_s22  ;;  %v320_v43 = vld [vmem:[%s3939_s21 + $0xc0] sm:$0xff] }
  0x26   : > { %903 = vrot.lane.b32.xlu0 %v704_v9, %s3824_s23  ;;  %v705_v30 = vld [vmem:[#allocation2 + $0x150] sm:$0xff]  ;;  %v321_v54 = vld [vmem:[%s3939_s21 + $0xc8] sm:$0xff] }
  0x27   : > { %v706_v29 = vld [vmem:[#allocation2 + $0x158] sm:$0xff] }
  0x2b   : > { %3426 = vmatmul.msk.f32.gmra.mxu0 %vm333_vm1, %v298_v10 }
  0x2c   : > { %3434 = vmatmul.msk.f32.gmra.mxu1 %vm333_vm1, %v306_v11 }
  0x2d   : > { %1229 = vrot.lane.b32.xlu2 %v668_v18, %s3823_s22  ;;  %1327 = vrot.lane.b32.xlu1 %v704_v9, %s3825_s30 }
  0x2e   : > { %1231 = vrot.lane.b32.xlu0 %v3974_v12, %s3823_s22 }
  0x33   : > { %3427 = vmatmul.msk.f32.gmra.mxu0 %vm333_vm1, %v299_v13 }
  0x34   : > { %3435 = vmatmul.msk.f32.gmra.mxu1 %vm333_vm1, %v307_v14 }
  0x35   : > { %1329 = vrot.lane.b32.xlu2 %v705_v30, %s3825_s30  ;;  %1623 = vrot.lane.b32.xlu1 %v4016_v33, %s3826_s8 }
  0x36   : > { %1325 = vrot.lane.b32.xlu0 %v703_v15, %s3825_s30 }
  0x3b   : > { %3428 = vmatmul.msk.f32.gmra.mxu0 %vm333_vm1, %v300_v16 }
  0x3c   : > { %3436 = vmatmul.msk.f32.gmra.mxu1 %vm333_vm1, %v308_v17 }
  0x3d   : > { %1625 = vrot.lane.b32.xlu2 %v666_v32, %s3826_s8  ;;  %1629 = vrot.lane.b32.xlu1 %v668_v18, %s3826_s8  ;;  %v323_v18 = vld [vmem:[%s3939_s21 + $0xd8] sm:$0xff] }
  0x3e   : > { %1331 = vrot.lane.b32.xlu0 %v706_v29, %s3825_s30  ;;  %v324_v29 = vld [vmem:[%s3939_s21 + $0xe0] sm:$0xff] }
  0x43   : > { %3429 = vmatmul.msk.f32.gmra.mxu0 %vm333_vm1, %v301_v19 }
  0x44   : > { %3437 = vmatmul.msk.f32.gmra.mxu1 %vm333_vm1, %v309_v20 }
  0x45   : > { %1631 = vrot.lane.b32.xlu2 %v3974_v12, %s3826_s8 }
  0x46   : > { %1627 = vrot.lane.b32.xlu0 %v3951_v5, %s3826_s8  ;;  %v322_v5 = vld [vmem:[%s3939_s21 + $0xd0] sm:$0xff] }
  0x4b   : > { %3430 = vmatmul.msk.f32.gmra.mxu0 %vm333_vm1, %v302_v21 }
  0x4c   : > { %3438 = vmatmul.msk.f32.gmra.mxu1 %vm333_vm1, %v310_v22 }
  0x4e   : > { %1633 = vrot.lane.b32.xlu0 %v3997_v23, %s3826_s8 }
  0x53   : > { %3431 = vmatmul.msk.f32.gmra.mxu0 %vm333_vm1, %v303_v24 }
  0x54   : > { %3439 = vmatmul.msk.f32.gmra.mxu1 %vm333_vm1, %v311_v25 }
  0x5c   : > { %3440 = vmatmul.msk.f32.gmra.mxu1 %vm333_vm1, %v312_v26 }
  0x64   : > { %3441 = vmatmul.msk.f32.gmra.mxu1 %vm333_vm1, %v313_v27 }
  0x6c   : > { %3442 = vmatmul.msk.f32.gmra.mxu1 %vm333_vm1, %v314_v28 }
  0x74   : > { %3443 = vmatmul.msk.f32.gmra.mxu1 %vm333_vm1, %v315_v31 }
  0x7c   : > { %3444 = vmatmul.msk.f32.gmra.mxu1 %vm333_vm1, %v316_v34 }
  0x84   : > { %3445 = vmatmul.msk.f32.gmra.mxu1 %vm333_vm1, %v317_v35 }
  0x8c   : > { %3446 = vmatmul.msk.f32.gmra.mxu1 %vm333_vm1, %v318_v36 }
  0x94   : > { %3447 = vmatmul.msk.f32.gmra.mxu1 %vm333_vm1, %v319_v37 }
  0x98   : > { %v447_v41 = vpop.f32.mrf.mxu0 }
  0x99   : > { %v471_v42 = vpop.f32.mrf.mxu1  ;;  %v448_v44 = vadd.f32 %v4039_v39, %v447_v41 }
  0x9a   : > { %v472_v45 = vadd.f32 %v4039_v39, %v471_v42 }
  0x9b   : > { %v546_v46 = vmax.f32 %v448_v44, 0.0 }
  0x9c   : > { %v554_v47 = vmax.f32 %v472_v45, 0.0  ;;  %3448 = vmatmul.msk.f32.gmra.mxu1 %vm333_vm1, %v320_v43  ;;  %v325_v43 = vld [vmem:[%s3939_s21 + $0xe8] sm:$0xff]  ;;  %s3830_s21 = smov 104  }
  0x9d   : > { %v580_v48 = vsel %vm545_vm2, %v546_v46, %v448_v44 }
  0x9e   : > { %v588_v49 = vsel %vm545_vm2, %v554_v47, %v472_v45  ;;  %629 = vst.msk [vmem:[#allocation2 + $0x40] sm:$0xff] %vm612_vm0, %v580_v48  ;;  %v537_v50 = vpop.f32.mrf.mxu3 }
  0x9f   : > { %637 = vst.msk [vmem:[#allocation2 + $0x80] sm:$0xff] %vm612_vm0, %v588_v49  ;;  %v538_v51 = vadd.f32 %v4039_v39, %v537_v50 }
  0xa0   : > { %v450_v52 = vpop.f32.mrf.mxu0 }
  0xa1   : > { %v474_v53 = vpop.f32.mrf.mxu1  ;;  %v451_v55 = vadd.f32 %v4039_v39, %v450_v52  ;;  %v576_v57 = vmax.f32 %v538_v51, 0.0 }
  0xa2   : > { %v475_v56 = vadd.f32 %v4039_v39, %v474_v53 }
  0xa3   : > { %v547_v58 = vmax.f32 %v451_v55, 0.0  ;;  %v610_v60 = vsel %vm545_vm2, %v576_v57, %v538_v51 }
  0xa4   : > { %v555_v59 = vmax.f32 %v475_v56, 0.0  ;;  %3449 = vmatmul.msk.f32.gmra.mxu1 %vm333_vm1, %v321_v54  ;;  %659 = vst.msk [vmem:[#allocation2 + $0x130] sm:$0xff] %vm612_vm0, %v610_v60 }
  0xa5   : > { %v581_v61 = vsel %vm545_vm2, %v547_v58, %v451_v55  ;;  %v4066_v63 = vld [vmem:[#allocation2 + $0x40] sm:$0xff] }
  0xa6   : > { %v589_v62 = vsel %vm545_vm2, %v555_v59, %v475_v56  ;;  %v4068_v0 = vld [vmem:[#allocation2 + $0x80] sm:$0xff]  ;;  %630 = vst.msk [vmem:[#allocation2 + $0x48] sm:$0xff] %vm612_vm0, %v581_v61  ;;  %743 = vrot.lane.b32.xlu0 %v4066_v63, %s3825_s30  ;;  %v540_v1 = vpop.f32.mrf.mxu3 }
  0xa7   : > { %638 = vst.msk [vmem:[#allocation2 + $0x88] sm:$0xff] %vm612_vm0, %v589_v62  ;;  %1251 = vrot.lane.b32.xlu1 %v4068_v0, %s3823_s22  ;;  %759 = vrot.lane.b32.xlu2 %v4068_v0, %s3825_s30  ;;  %v541_v2 = vadd.f32 %v4039_v39, %v540_v1  ;;  %v4172_v62 = vpop.permute.xlu2 %901 }
  0xa8   : > { %v453_v3 = vpop.f32.mrf.mxu0  ;;  %6945 = vst [vmem:[#allocation6_spill] sm:$0xff] %v4172_v62 }
  0xa9   : > { %v477_v4 = vpop.f32.mrf.mxu1  ;;  %v454_v6 = vadd.f32 %v4039_v39, %v453_v3  ;;  %v577_v8 = vmax.f32 %v541_v2, 0.0 }
  0xaa   : > { %v478_v7 = vadd.f32 %v4039_v39, %v477_v4 }
  0xab   : > { %v548_v9 = vmax.f32 %v454_v6, 0.0  ;;  %v611_v11 = vsel %vm545_vm2, %v577_v8, %v541_v2  ;;  %v4090_v15 = vld [vmem:[#allocation2 + $0x130] sm:$0xff] }
  0xac   : > { %v556_v10 = vmax.f32 %v478_v7, 0.0  ;;  %3450 = vmatmul.msk.f32.gmra.mxu1 %vm333_vm1, %v322_v5  ;;  %660 = vst.msk [vmem:[#allocation2 + $0x138] sm:$0xff] %vm612_vm0, %v611_v11 }
  0xad   : > { %v582_v13 = vsel %vm545_vm2, %v548_v9, %v454_v6  ;;  %v4128_v38 = vld [vmem:[#allocation2 + $0x48] sm:$0xff] }
  0xae   : > { %v590_v14 = vsel %vm545_vm2, %v556_v10, %v478_v7  ;;  %631 = vst.msk [vmem:[#allocation2 + $0x50] sm:$0xff] %vm612_vm0, %v582_v13  ;;  %803 = vrot.lane.b32.xlu0 %v4090_v15, %s3825_s30  ;;  %v4122_v35 = vld [vmem:[#allocation2 + $0x88] sm:$0xff] }
  0xaf   : > { %639 = vst.msk [vmem:[#allocation2 + $0x90] sm:$0xff] %vm612_vm0, %v590_v14  ;;  %853 = vrot.lane.b32.xlu2 %v4068_v0, %s3824_s23  ;;  %1635 = vrot.lane.b32.xlu1 %v4066_v63, %s3826_s8  ;;  %v4191_v10 = vpop.permute.xlu2 %1229  ;;  %v4195_v14 = vpop.permute.xlu0 %903 }
  0xb0   : > { %v456_v16 = vpop.f32.mrf.mxu0  ;;  %6946 = vst [vmem:[#allocation7_spill] sm:$0xff] %v4195_v14 }
  0xb1   : > { %v480_v17 = vpop.f32.mrf.mxu1  ;;  %v457_v19 = vadd.f32 %v4039_v39, %v456_v16 }
  0xb2   : > { %v481_v20 = vadd.f32 %v4039_v39, %v480_v17 }
  0xb3   : > { %v549_v21 = vmax.f32 %v457_v19, 0.0  ;;  %v4109_v26 = vld [vmem:[#allocation2 + $0x138] sm:$0xff] }
  0xb4   : > { %v557_v22 = vmax.f32 %v481_v20, 0.0  ;;  %3451 = vmatmul.msk.f32.gmra.mxu1 %vm333_vm1, %v323_v18 }
  0xb5   : > { %v583_v24 = vsel %vm545_vm2, %v549_v21, %v457_v19  ;;  %v4147_v50 = vld [vmem:[#allocation2 + $0x50] sm:$0xff] }
  0xb6   : > { %v591_v25 = vsel %vm545_vm2, %v557_v22, %v481_v20  ;;  %632 = vst.msk [vmem:[#allocation2 + $0x58] sm:$0xff] %vm612_vm0, %v583_v24  ;;  %897 = vrot.lane.b32.xlu0 %v4090_v15, %s3824_s23  ;;  %v4162_v59 = vld [vmem:[#allocation2 + $0x90] sm:$0xff] }
  0xb7   : > { %640 = vst.msk [vmem:[#allocation2 + $0x98] sm:$0xff] %vm612_vm0, %v591_v25  ;;  %805 = vrot.lane.b32.xlu1 %v4109_v26, %s3825_s30  ;;  %1235 = vrot.lane.b32.xlu2 %v4066_v63, %s3823_s22  ;;  %v4205_v19 = vpop.permute.xlu2 %1329  ;;  %v4218_v22 = vpop.permute.xlu0 %1231 }
  0xb8   : > { %v459_v27 = vpop.f32.mrf.mxu0  ;;  %6947 = vst [vmem:[#allocation8_spill] sm:$0xff] %v4205_v19 }
  0xb9   : > { %v483_v28 = vpop.f32.mrf.mxu1  ;;  %v460_v30 = vadd.f32 %v4039_v39, %v459_v27  ;;  %v4221_v27 = vpop.permute.xlu1 %1227 }
  0xba   : > { %v484_v31 = vadd.f32 %v4039_v39, %v483_v28 }
  0xbb   : > { %v550_v32 = vmax.f32 %v460_v30, 0.0 }
  0xbc   : > { %v558_v34 = vmax.f32 %v484_v31, 0.0  ;;  %3452 = vmatmul.msk.f32.gmra.mxu1 %vm333_vm1, %v324_v29 }
  0xbd   : > { %v584_v36 = vsel %vm545_vm2, %v550_v32, %v460_v30  ;;  %v4210_v21 = vld [vmem:[#allocation2 + $0x58] sm:$0xff] }
  0xbe   : > { %v592_v37 = vsel %vm545_vm2, %v558_v34, %v484_v31  ;;  %633 = vst.msk [vmem:[#allocation2 + $0x60] sm:$0xff] %vm612_vm0, %v584_v36  ;;  %745 = vrot.lane.b32.xlu0 %v4128_v38, %s3825_s30  ;;  %v4180_v7 = vld [vmem:[#allocation2 + $0x98] sm:$0xff] }
  0xbf   : > { %641 = vst.msk [vmem:[#allocation2 + $0xa0] sm:$0xff] %vm612_vm0, %v592_v37  ;;  %899 = vrot.lane.b32.xlu1 %v4109_v26, %s3824_s23  ;;  %1253 = vrot.lane.b32.xlu2 %v4122_v35, %s3823_s22  ;;  %v4225_v30 = vpop.permute.xlu2 %1625  ;;  %v4236_v34 = vpop.permute.xlu0 %1325 }
  0xc0   : > { %v462_v41 = vpop.f32.mrf.mxu0  ;;  %6948 = vst [vmem:[#allocation9_spill] sm:$0xff] %v4225_v30 }
  0xc1   : > { %v486_v42 = vpop.f32.mrf.mxu1  ;;  %v463_v44 = vadd.f32 %v4039_v39, %v462_v41  ;;  %6949 = vst [vmem:[#allocation10_spill] sm:$0xff] %v4236_v34  ;;  %v4239_v37 = vpop.permute.xlu1 %1233 }
  0xc2   : > { %v487_v45 = vadd.f32 %v4039_v39, %v486_v42  ;;  %6950 = vst [vmem:[#allocation11_spill] sm:$0xff] %v4239_v37 }
  0xc3   : > { %v551_v46 = vmax.f32 %v463_v44, 0.0 }
  0xc4   : > { %v559_v47 = vmax.f32 %v487_v45, 0.0  ;;  %3453 = vmatmul.msk.f32.gmra.mxu1 %vm333_vm1, %v325_v43 }
  0xc5   : > { %v585_v48 = vsel %vm545_vm2, %v551_v46, %v463_v44  ;;  %v4228_v31 = vld [vmem:[#allocation2 + $0x60] sm:$0xff] }
  0xc6   : > { %v593_v49 = vsel %vm545_vm2, %v559_v47, %v487_v45  ;;  %634 = vst.msk [vmem:[#allocation2 + $0x68] sm:$0xff] %vm612_vm0, %v585_v48  ;;  %761 = vrot.lane.b32.xlu0 %v4122_v35, %s3825_s30  ;;  %v4241_v42 = vld [vmem:[#allocation2 + $0xa0] sm:$0xff] }
  0xc7   : > { %642 = vst.msk [vmem:[#allocation2 + $0xa8] sm:$0xff] %vm612_vm0, %v593_v49  ;;  %747 = vrot.lane.b32.xlu1 %v4147_v50, %s3825_s30  ;;  %1637 = vrot.lane.b32.xlu2 %v4128_v38, %s3826_s8  ;;  %v4252_v44 = vpop.permute.xlu2 %1631  ;;  %v4255_v47 = vpop.permute.xlu0 %1331 }
  0xc8   : > { %v465_v51 = vpop.f32.mrf.mxu0  ;;  %6951 = vst [vmem:[#allocation12_spill] sm:$0xff] %v4252_v44 }
  0xc9   : > { %v489_v52 = vpop.f32.mrf.mxu1  ;;  %v466_v53 = vadd.f32 %v4039_v39, %v465_v51  ;;  %6952 = vst [vmem:[#allocation13_spill] sm:$0xff] %v4255_v47  ;;  %v4257_v49 = vpop.permute.xlu1 %1327 }
  0xca   : > { %v490_v54 = vadd.f32 %v4039_v39, %v489_v52  ;;  %6953 = vst [vmem:[#allocation14_spill] sm:$0xff] %v4257_v49 }
  0xcb   : > { %v552_v55 = vmax.f32 %v466_v53, 0.0 }
  0xcc   : > { %v560_v56 = vmax.f32 %v490_v54, 0.0 }
  0xcd   : > { %v586_v57 = vsel %vm545_vm2, %v552_v55, %v466_v53 }
  0xce   : > { %v594_v58 = vsel %vm545_vm2, %v560_v56, %v490_v54  ;;  %635 = vst.msk [vmem:[#allocation2 + $0x70] sm:$0xff] %vm612_vm0, %v586_v57  ;;  %855 = vrot.lane.b32.xlu0 %v4122_v35, %s3824_s23 }
  0xcf   : > { %643 = vst.msk [vmem:[#allocation2 + $0xb0] sm:$0xff] %vm612_vm0, %v594_v58  ;;  %763 = vrot.lane.b32.xlu1 %v4162_v59, %s3825_s30  ;;  %841 = vrot.lane.b32.xlu2 %v4147_v50, %s3824_s23  ;;  %v4271_v56 = vpop.permute.xlu0 %1627 }
  0xd0   : > { %v468_v60 = vpop.f32.mrf.mxu0  ;;  %6954 = vst [vmem:[#allocation15_spill] sm:$0xff] %v4271_v56 }
  0xd1   : > { %v492_v61 = vpop.f32.mrf.mxu1  ;;  %v469_v1 = vadd.f32 %v4039_v39, %v468_v60  ;;  %v4275_v58 = vpop.permute.xlu1 %1623  ;;  %v4277_v60 = vld [vmem:[#allocation2 + $0xa8] sm:$0xff] }
  0xd2   : > { %v493_v2 = vadd.f32 %v4039_v39, %v492_v61  ;;  %6955 = vst [vmem:[#allocation16_spill] sm:$0xff] %v4275_v58  ;;  %v4280_v61 = vld [vmem:[#allocation2 + $0x68] sm:$0xff] }
  0xd3   : > { %v553_v3 = vmax.f32 %v469_v1, 0.0 }
  0xd4   : > { %v561_v4 = vmax.f32 %v493_v2, 0.0 }
  0xd5   : > { %v587_v5 = vsel %vm545_vm2, %v553_v3, %v469_v1  ;;  %v1004_v1 = vld [vmem:[%s6861_s3 + $0x8] sm:$0xf] }
  0xd6   : > { %v595_v6 = vsel %vm545_vm2, %v561_v4, %v493_v2  ;;  %636 = vst.msk [vmem:[#allocation2 + $0x78] sm:$0xff] %vm612_vm0, %v587_v5  ;;  %1237 = vrot.lane.b32.xlu0 %v4128_v38, %s3823_s22  ;;  %3456 = vmatpush.msk.msrb.mxu1 %vm1106_vm3, %v1004_v1  ;;  %v1003_v5 = vld [vmem:[%s6861_s3] sm:$0xff] }
  0xd7   : > { %644 = vst.msk [vmem:[#allocation2 + $0xb8] sm:$0xff] %vm612_vm0, %v595_v6  ;;  %857 = vrot.lane.b32.xlu1 %v4162_v59, %s3824_s23  ;;  %765 = vrot.lane.b32.xlu2 %v4180_v7, %s3825_s30 }
  0xd8   : > { %3606 = vmatpush.msk.msra.mxu2 %vm1106_vm3, %v1004_v1  ;;  %3607 = vmatpush.msk.msrb.mxu3 %vm1106_vm3, %v1004_v1 }
  0xd9   : > { %v495_v8 = vpop.f32.mrf.mxu1  ;;  %1125 = vmatpush.msrb.mxu1 %v1003_v5 }
  0xda   : > { %v496_v9 = vadd.f32 %v4039_v39, %v495_v8  ;;  %3608 = vmatpush.msra.mxu2 %v1003_v5  ;;  %3609 = vmatpush.msrb.mxu3 %v1003_v5 }
  0xdc   : > { %v562_v11 = vmax.f32 %v496_v9, 0.0 }
  0xde   : > { %v596_v13 = vsel %vm545_vm2, %v562_v11, %v496_v9  ;;  %1255 = vrot.lane.b32.xlu0 %v4162_v59, %s3823_s22  ;;  %v4305_v9 = vpop.permute.xlu0 %1633  ;;  %v4311_v11 = vpop.permute.xlu1 %1629 }
  0xdf   : > { %645 = vst.msk [vmem:[#allocation2 + $0xc0] sm:$0xff] %vm612_vm0, %v596_v13  ;;  %1239 = vrot.lane.b32.xlu1 %v4147_v50, %s3823_s22  ;;  %859 = vrot.lane.b32.xlu2 %v4180_v7, %s3824_s23 }
  0xe0   : > { %6956 = vst [vmem:[#allocation17_spill] sm:$0xff] %v4305_v9 }
  0xe1   : > { %v498_v16 = vpop.f32.mrf.mxu1  ;;  %6957 = vst [vmem:[#allocation18_spill] sm:$0xff] %v4311_v11 }
  0xe2   : > { %v499_v17 = vadd.f32 %v4039_v39, %v498_v16 }
  0xe4   : > { %v563_v18 = vmax.f32 %v499_v17, 0.0 }
  0xe6   : > { %v597_v20 = vsel %vm545_vm2, %v563_v18, %v499_v17  ;;  %1639 = vrot.lane.b32.xlu0 %v4147_v50, %s3826_s8 }
  0xe7   : > { %646 = vst.msk [vmem:[#allocation2 + $0xc8] sm:$0xff] %vm612_vm0, %v597_v20  ;;  %749 = vrot.lane.b32.xlu1 %v4210_v21, %s3825_s30  ;;  %1241 = vrot.lane.b32.xlu2 %v4210_v21, %s3823_s22 }
  0xe9   : > { %v501_v24 = vpop.f32.mrf.mxu1 }
  0xea   : > { %v502_v25 = vadd.f32 %v4039_v39, %v501_v24  ;;  %v4318_v24 = vld [vmem:[#allocation2 + $0xb0] sm:$0xff] }
  0xec   : > { %v564_v28 = vmax.f32 %v502_v25, 0.0 }
  0xee   : > { %v598_v29 = vsel %vm545_vm2, %v564_v28, %v502_v25  ;;  %843 = vrot.lane.b32.xlu0 %v4210_v21, %s3824_s23 }
  0xef   : > { %647 = vst.msk [vmem:[#allocation2 + $0xd0] sm:$0xff] %vm612_vm0, %v598_v29  ;;  %1257 = vrot.lane.b32.xlu1 %v4180_v7, %s3823_s22  ;;  %751 = vrot.lane.b32.xlu2 %v4228_v31, %s3825_s30 }
  0xf1   : > { %v504_v32 = vpop.f32.mrf.mxu1 }
  0xf2   : > { %v505_v36 = vadd.f32 %v4039_v39, %v504_v32 }
  0xf4   : > { %v565_v41 = vmax.f32 %v505_v36, 0.0 }
  0xf6   : > { %v599_v43 = vsel %vm545_vm2, %v565_v41, %v505_v36  ;;  %767 = vrot.lane.b32.xlu0 %v4241_v42, %s3825_s30  ;;  %v4435_v47 = vld [vmem:[#allocation2 + $0xd0] sm:$0xff] }
  0xf7   : > { %648 = vst.msk [vmem:[#allocation2 + $0xd8] sm:$0xff] %vm612_vm0, %v599_v43  ;;  %1641 = vrot.lane.b32.xlu1 %v4210_v21, %s3826_s8  ;;  %1259 = vrot.lane.b32.xlu2 %v4241_v42, %s3823_s22  ;;  %v4332_v43 = vld [vmem:[#allocation2 + $0x70] sm:$0xff] }
  0xf9   : > { %v507_v45 = vpop.f32.mrf.mxu1 }
  0xfa   : > { %v508_v46 = vadd.f32 %v4039_v39, %v507_v45 }
  0xfc   : > { %v566_v48 = vmax.f32 %v508_v46, 0.0 }
  0xfe   : > { %v600_v51 = vsel %vm545_vm2, %v566_v48, %v508_v46  ;;  %861 = vrot.lane.b32.xlu0 %v4241_v42, %s3824_s23 }
  0xff   : > { %649 = vst.msk [vmem:[#allocation2 + $0xe0] sm:$0xff] %vm612_vm0, %v600_v51  ;;  %845 = vrot.lane.b32.xlu1 %v4228_v31, %s3824_s23  ;;  %1643 = vrot.lane.b32.xlu2 %v4228_v31, %s3826_s8 }
 0x101   : > { %v510_v52 = vpop.f32.mrf.mxu1  ;;  %v4269_v54 = vpop.permute.xlu2 %759 }
 0x102   : > { %v511_v53 = vadd.f32 %v4039_v39, %v510_v52 }
 0x104   : > { %v567_v55 = vmax.f32 %v511_v53, 0.0 }
 0x106   : > { %v601_v57 = vsel %vm545_vm2, %v567_v55, %v511_v53  ;;  %1243 = vrot.lane.b32.xlu0 %v4228_v31, %s3823_s22  ;;  %v4451_v19 = vld [vmem:[#allocation2 + $0xe0] sm:$0xff] }
 0x107   : > { %650 = vst.msk [vmem:[#allocation2 + $0xe8] sm:$0xff] %vm612_vm0, %v601_v57  ;;  %769 = vrot.lane.b32.xlu1 %v4277_v60, %s3825_s30  ;;  %753 = vrot.lane.b32.xlu2 %v4280_v61, %s3825_s30 }
 0x109   : > { %v513_v2 = vpop.f32.mrf.mxu1  ;;  %v4294_v4 = vpop.permute.xlu2 %853 }
 0x10a   : > { %v514_v3 = vadd.f32 %v4039_v39, %v513_v2 }
 0x10c   : > { %v568_v6 = vmax.f32 %v514_v3, 0.0 }
 0x10e   : > { %v602_v8 = vsel %vm545_vm2, %v568_v6, %v514_v3  ;;  %1261 = vrot.lane.b32.xlu0 %v4277_v60, %s3823_s22 }
 0x10f   : > { %651 = vst.msk [vmem:[#allocation2 + $0xf0] sm:$0xff] %vm612_vm0, %v602_v8  ;;  %863 = vrot.lane.b32.xlu1 %v4277_v60, %s3824_s23  ;;  %847 = vrot.lane.b32.xlu2 %v4280_v61, %s3824_s23 }
 0x111   : > { %v516_v13 = vpop.f32.mrf.mxu1  ;;  %v4314_v17 = vpop.permute.xlu2 %1235 }
 0x112   : > { %v517_v16 = vadd.f32 %v4039_v39, %v516_v13  ;;  %6958 = vst [vmem:[#allocation19_spill] sm:$0xff] %v4314_v17 }
 0x114   : > { %v569_v18 = vmax.f32 %v517_v16, 0.0 }
 0x116   : > { %v603_v20 = vsel %vm545_vm2, %v569_v18, %v517_v16  ;;  %1645 = vrot.lane.b32.xlu0 %v4280_v61, %s3826_s8  ;;  %v4368_v18 = vld [vmem:[#allocation2 + $0xb8] sm:$0xff] }
 0x117   : > { %652 = vst.msk [vmem:[#allocation2 + $0xf8] sm:$0xff] %vm612_vm0, %v603_v20  ;;  %1245 = vrot.lane.b32.xlu1 %v4280_v61, %s3823_s22  ;;  %771 = vrot.lane.b32.xlu2 %v4318_v24, %s3825_s30 }
 0x118   : > { %v744_v28 = vpop.permute.xlu0 %743 }
 0x119   : > { %v519_v25 = vpop.f32.mrf.mxu1  ;;  %v4328_v32 = vpop.permute.xlu1 %1251  ;;  %v938_v3 = vsel %vm937_vm4, %v3974_v12, %v744_v28 }
 0x11a   : > { %v520_v29 = vadd.f32 %v4039_v39, %v519_v25  ;;  %6959 = vst [vmem:[#allocation20_spill] sm:$0xff] %v4328_v32  ;;  %v4330_v36 = vpop.permute.xlu2 %1253  ;;  %v4372_v25 = vld [vmem:[#allocation2 + $0x78] sm:$0xff] }
 0x11b   : > { %6960 = vst [vmem:[#allocation21_spill] sm:$0xff] %v4330_v36  ;;  %v4489_v36 = vld [vmem:[#allocation2 + $0xf0] sm:$0xff] }
 0x11c   : > { %v570_v41 = vmax.f32 %v520_v29, 0.0 }
 0x11e   : > { %v604_v45 = vsel %vm545_vm2, %v570_v41, %v520_v29  ;;  %755 = vrot.lane.b32.xlu0 %v4332_v43, %s3825_s30 }
 0x11f   : > { %653 = vst.msk [vmem:[#allocation2 + $0x100] sm:$0xff] %vm612_vm0, %v604_v45  ;;  %1263 = vrot.lane.b32.xlu1 %v4318_v24, %s3823_s22  ;;  %865 = vrot.lane.b32.xlu2 %v4318_v24, %s3824_s23 }
 0x120   : > { %v4343_v48 = vpop.permute.xlu0 %803 }
 0x121   : > { %v522_v46 = vpop.f32.mrf.mxu1  ;;  %6961 = vst [vmem:[#allocation22_spill] sm:$0xff] %v4343_v48  ;;  %v4346_v52 = vpop.permute.xlu1 %1635 }
 0x122   : > { %v523_v51 = vadd.f32 %v4039_v39, %v522_v46  ;;  %6962 = vst [vmem:[#allocation23_spill] sm:$0xff] %v4346_v52  ;;  %v4348_v53 = vpop.permute.xlu2 %1637 }
 0x123   : > { %6963 = vst [vmem:[#allocation24_spill] sm:$0xff] %v4348_v53 }
 0x124   : > { %v571_v55 = vmax.f32 %v523_v51, 0.0 }
 0x126   : > { %v605_v57 = vsel %vm545_vm2, %v571_v55, %v523_v51  ;;  %849 = vrot.lane.b32.xlu0 %v4332_v43, %s3824_s23 }
 0x127   : > { %654 = vst.msk [vmem:[#allocation2 + $0x108] sm:$0xff] %vm612_vm0, %v605_v57  ;;  %1647 = vrot.lane.b32.xlu1 %v4332_v43, %s3826_s8  ;;  %1247 = vrot.lane.b32.xlu2 %v4332_v43, %s3823_s22 }
 0x128   : > { %v4359_v2 = vpop.permute.xlu0 %897 }
 0x129   : > { %v525_v1 = vpop.f32.mrf.mxu1  ;;  %6964 = vst [vmem:[#allocation25_spill] sm:$0xff] %v4359_v2  ;;  %v4364_v6 = vpop.permute.xlu1 %805 }
 0x12a   : > { %v526_v5 = vadd.f32 %v4039_v39, %v525_v1  ;;  %6965 = vst [vmem:[#allocation26_spill] sm:$0xff] %v4364_v6  ;;  %v842_v8 = vpop.permute.xlu2 %841 }
 0x12b   : > { %v971_v13 = vsel %vm333_vm1, %v938_v3, %v842_v8 }
 0x12c   : > { %v572_v16 = vmax.f32 %v526_v5, 0.0  ;;  %3457 = vmatmul.msk.f32.vlgmr.msrb.gmra.mxu1 %vm1009_vm5, %v971_v13 }
 0x12e   : > { %v606_v20 = vsel %vm545_vm2, %v572_v16, %v526_v5  ;;  %773 = vrot.lane.b32.xlu0 %v4368_v18, %s3825_s30  ;;  %v4402_v16 = vld [vmem:[#allocation2 + $0xc0] sm:$0xff] }
 0x12f   : > { %655 = vst.msk [vmem:[#allocation2 + $0x110] sm:$0xff] %vm612_vm0, %v606_v20  ;;  %757 = vrot.lane.b32.xlu1 %v4372_v25, %s3825_s30  ;;  %1265 = vrot.lane.b32.xlu2 %v4368_v18, %s3823_s22  ;;  %v4404_v20 = vld [vmem:[#allocation2 + $0xc8] sm:$0xff] }
 0x130   : > { %v746_v28 = vpop.permute.xlu0 %745 }
 0x131   : > { %v528_v12 = vpop.f32.mrf.mxu1  ;;  %v4382_v41 = vpop.permute.xlu1 %899 }
 0x132   : > { %v529_v29 = vadd.f32 %v4039_v39, %v528_v12  ;;  %6966 = vst [vmem:[#allocation27_spill] sm:$0xff] %v4382_v41  ;;  %v4384_v45 = vpop.permute.xlu2 %765 }
 0x134   : > { %v573_v46 = vmax.f32 %v529_v29, 0.0 }
 0x136   : > { %v607_v51 = vsel %vm545_vm2, %v573_v46, %v529_v29  ;;  %867 = vrot.lane.b32.xlu0 %v4368_v18, %s3824_s23 }
 0x137   : > { %656 = vst.msk [vmem:[#allocation2 + $0x118] sm:$0xff] %vm612_vm0, %v607_v51  ;;  %851 = vrot.lane.b32.xlu1 %v4372_v25, %s3824_s23  ;;  %1649 = vrot.lane.b32.xlu2 %v4372_v25, %s3826_s8 }
 0x138   : > { %v4395_v57 = vpop.permute.xlu0 %761 }
 0x139   : > { %v531_v55 = vpop.f32.mrf.mxu1  ;;  %v748_v3 = vpop.permute.xlu1 %747 }
 0x13a   : > { %v532_v1 = vadd.f32 %v4039_v39, %v531_v55  ;;  %v4398_v5 = vpop.permute.xlu2 %859 }
 0x13c   : > { %v574_v8 = vmax.f32 %v532_v1, 0.0 }
 0x13e   : > { %v608_v13 = vsel %vm545_vm2, %v574_v8, %v532_v1  ;;  %1249 = vrot.lane.b32.xlu0 %v4372_v25, %s3823_s22 }
 0x13f   : > { %657 = vst.msk [vmem:[#allocation2 + $0x120] sm:$0xff] %vm612_vm0, %v608_v13  ;;  %775 = vrot.lane.b32.xlu1 %v4402_v16, %s3825_s30  ;;  %777 = vrot.lane.b32.xlu2 %v4404_v20, %s3825_s30 }
 0x140   : > { %v4413_v29 = vpop.permute.xlu0 %855 }
 0x141   : > { %v534_v12 = vpop.f32.mrf.mxu1  ;;  %v4416_v51 = vpop.permute.xlu1 %763 }
 0x142   : > { %v535_v46 = vadd.f32 %v4039_v39, %v534_v12  ;;  %v4418_v55 = vpop.permute.xlu2 %1241 }
 0x143   : > { %6967 = vst [vmem:[#allocation28_spill] sm:$0xff] %v4418_v55 }
 0x144   : > { %v575_v1 = vmax.f32 %v535_v46, 0.0 }
 0x146   : > { %v609_v8 = vsel %vm545_vm2, %v575_v1, %v535_v46  ;;  %1267 = vrot.lane.b32.xlu0 %v4402_v16, %s3823_s22  ;;  %v4594_v48 = vld [vmem:[#allocation2 + $0x120] sm:$0xff] }
 0x147   : > { %658 = vst.msk [vmem:[#allocation2 + $0x128] sm:$0xff] %vm612_vm0, %v609_v8  ;;  %869 = vrot.lane.b32.xlu1 %v4402_v16, %s3824_s23  ;;  %871 = vrot.lane.b32.xlu2 %v4404_v20, %s3824_s23  ;;  %v4449_v8 = vld [vmem:[#allocation2 + $0xd8] sm:$0xff] }
 0x148   : > { %v4429_v39 = vpop.permute.xlu0 %1237  ;;  %6988 = vst [vmem:[#allocation49_spill] sm:$0xff] %v4594_v48 }
 0x149   : > { %6968 = vst [vmem:[#allocation29_spill] sm:$0xff] %v4429_v39  ;;  %v4431_v13 = vpop.permute.xlu1 %857 }
 0x14a   : > { %v4433_v12 = vpop.permute.xlu2 %751 }
 0x14e   : > { %779 = vrot.lane.b32.xlu0 %v4435_v47, %s3825_s30 }
 0x14f   : > { %1269 = vrot.lane.b32.xlu1 %v4404_v20, %s3823_s22  ;;  %1271 = vrot.lane.b32.xlu2 %v4435_v47, %s3823_s22 }
 0x150   : > { %v4443_v40 = vpop.permute.xlu0 %1255 }
 0x151   : > { %6969 = vst [vmem:[#allocation30_spill] sm:$0xff] %v4443_v40  ;;  %v4445_v46 = vpop.permute.xlu1 %1239 }
 0x152   : > { %6970 = vst [vmem:[#allocation31_spill] sm:$0xff] %v4445_v46  ;;  %v4447_v1 = vpop.permute.xlu2 %1259 }
 0x153   : > { %6971 = vst [vmem:[#allocation32_spill] sm:$0xff] %v4447_v1  ;;  %v939_v1 = vsel %vm937_vm4, %v3997_v23, %v746_v28 }
 0x156   : > { %873 = vrot.lane.b32.xlu0 %v4435_v47, %s3824_s23 }
 0x157   : > { %781 = vrot.lane.b32.xlu1 %v4449_v8, %s3825_s30  ;;  %783 = vrot.lane.b32.xlu2 %v4451_v19, %s3825_s30 }
 0x158   : > { %v4459_v49 = vpop.permute.xlu0 %1639 }
 0x159   : > { %6972 = vst [vmem:[#allocation33_spill] sm:$0xff] %v4459_v49  ;;  %v750_v34 = vpop.permute.xlu1 %749 }
 0x15a   : > { %v4461_v9 = vpop.permute.xlu2 %1643 }
 0x15b   : > { %6973 = vst [vmem:[#allocation34_spill] sm:$0xff] %v4461_v9  ;;  %v4477_v9 = vld [vmem:[#allocation2 + $0xe8] sm:$0xff] }
 0x15e   : > { %1273 = vrot.lane.b32.xlu0 %v4449_v8, %s3823_s22 }
 0x15f   : > { %875 = vrot.lane.b32.xlu1 %v4449_v8, %s3824_s23  ;;  %877 = vrot.lane.b32.xlu2 %v4451_v19, %s3824_s23 }
 0x160   : > { %v844_v44 = vpop.permute.xlu0 %843 }
 0x161   : > { %v4471_v40 = vpop.permute.xlu1 %1257  ;;  %v972_v49 = vsel %vm333_vm1, %v939_v1, %v844_v44  ;;  %v4491_v44 = vld [vmem:[#allocation2 + $0xf8] sm:$0xff]  ;;  %v940_v1 = vsel %vm937_vm4, %v4066_v63, %v748_v3  ;;  %v941_v3 = vsel %vm937_vm4, %v4128_v38, %v750_v34 }
 0x162   : > { %6974 = vst [vmem:[#allocation35_spill] sm:$0xff] %v4471_v40  ;;  %v4473_v11 = vpop.permute.xlu2 %753  ;;  %3458 = vmatmul.msk.f32.gmra.mxu1 %vm1009_vm5, %v972_v49 }
 0x166   : > { %785 = vrot.lane.b32.xlu0 %v4477_v9, %s3825_s30 }
 0x167   : > { %1275 = vrot.lane.b32.xlu1 %v4451_v19, %s3823_s22  ;;  %1277 = vrot.lane.b32.xlu2 %v4477_v9, %s3823_s22 }
 0x168   : > { %v4485_v23 = vpop.permute.xlu0 %767 }
 0x169   : > { %v4487_v28 = vpop.permute.xlu1 %1641 }
 0x16a   : > { %6975 = vst [vmem:[#allocation36_spill] sm:$0xff] %v4487_v28  ;;  %v848_v40 = vpop.permute.xlu2 %847 }
 0x16e   : > { %879 = vrot.lane.b32.xlu0 %v4477_v9, %s3824_s23 }
 0x16f   : > { %787 = vrot.lane.b32.xlu1 %v4489_v36, %s3825_s30  ;;  %789 = vrot.lane.b32.xlu2 %v4491_v44, %s3825_s30 }
 0x170   : > { %v4499_v49 = vpop.permute.xlu0 %861 }
 0x171   : > { %v846_v28 = vpop.permute.xlu1 %845 }
 0x172   : > { %v4503_v53 = vpop.permute.xlu2 %771  ;;  %v973_v56 = vsel %vm333_vm1, %v940_v1, %v846_v28  ;;  %v4523_v28 = vld [vmem:[#allocation2 + $0x100] sm:$0xff] }
 0x173   : > { %3459 = vmatmul.msk.f32.gmra.mxu1 %vm1009_vm5, %v973_v56  ;;  %v974_v56 = vsel %vm333_vm1, %v941_v3, %v848_v40  ;;  %v4537_v40 = vld [vmem:[#allocation2 + $0x108] sm:$0xff]  ;;  %v4539_v3 = vld [vmem:[#allocation2 + $0x110] sm:$0xff] }
 0x174   : > { %6979 = vst [vmem:[#allocation40_spill] sm:$0xff] %v4539_v3 }
 0x176   : > { %1279 = vrot.lane.b32.xlu0 %v4489_v36, %s3823_s22 }
 0x177   : > { %881 = vrot.lane.b32.xlu1 %v4489_v36, %s3824_s23  ;;  %883 = vrot.lane.b32.xlu2 %v4491_v44, %s3824_s23 }
 0x178   : > { %v4513_v32 = vpop.permute.xlu0 %1243 }
 0x179   : > { %6976 = vst [vmem:[#allocation37_spill] sm:$0xff] %v4513_v32  ;;  %v4517_v52 = vpop.permute.xlu1 %769 }
 0x17a   : > { %v4519_v30 = vpop.permute.xlu2 %865 }
 0x17b   : > { %3460 = vmatmul.msk.f32.gmra.mxu1 %vm1009_vm5, %v974_v56 }
 0x17e   : > { %791 = vrot.lane.b32.xlu0 %v4523_v28, %s3825_s30 }
 0x17f   : > { %1281 = vrot.lane.b32.xlu1 %v4491_v44, %s3823_s22  ;;  %1283 = vrot.lane.b32.xlu2 %v4523_v28, %s3823_s22 }
 0x180   : > { %v4531_v34 = vpop.permute.xlu0 %1261 }
 0x181   : > { %6977 = vst [vmem:[#allocation38_spill] sm:$0xff] %v4531_v34  ;;  %v4533_v1 = vpop.permute.xlu1 %863 }
 0x182   : > { %v4535_v32 = vpop.permute.xlu2 %1247 }
 0x183   : > { %6978 = vst [vmem:[#allocation39_spill] sm:$0xff] %v4535_v32 }
 0x186   : > { %885 = vrot.lane.b32.xlu0 %v4523_v28, %s3824_s23 }
 0x187   : > { %793 = vrot.lane.b32.xlu1 %v4537_v40, %s3825_s30  ;;  %795 = vrot.lane.b32.xlu2 %v4539_v3, %s3825_s30 }
 0x188   : > { %v4547_v56 = vpop.permute.xlu0 %1645 }
 0x189   : > { %6980 = vst [vmem:[#allocation41_spill] sm:$0xff] %v4547_v56  ;;  %v4549_v34 = vpop.permute.xlu1 %1245  ;;  %v4565_v56 = vld [vmem:[#allocation2 + $0x118] sm:$0xff] }
 0x18a   : > { %6981 = vst [vmem:[#allocation42_spill] sm:$0xff] %v4549_v34  ;;  %v4551_v55 = vpop.permute.xlu2 %1265 }
 0x18b   : > { %6982 = vst [vmem:[#allocation43_spill] sm:$0xff] %v4551_v55  ;;  %v942_v55 = vsel %vm937_vm4, %v4147_v50, %v4433_v12 }
 0x18c   : > { %6985 = vst [vmem:[#allocation46_spill] sm:$0xff] %v4565_v56 }
 0x18e   : > { %1285 = vrot.lane.b32.xlu0 %v4537_v40, %s3823_s22 }
 0x18f   : > { %887 = vrot.lane.b32.xlu1 %v4537_v40, %s3824_s23  ;;  %889 = vrot.lane.b32.xlu2 %v4539_v3, %s3824_s23 }
 0x190   : > { %v4559_v32 = vpop.permute.xlu0 %755 }
 0x191   : > { %v4561_v58 = vpop.permute.xlu1 %1263  ;;  %v944_v17 = vsel %vm937_vm4, %v4228_v31, %v4559_v32 }
 0x192   : > { %6983 = vst [vmem:[#allocation44_spill] sm:$0xff] %v4561_v58  ;;  %v4563_v14 = vpop.permute.xlu2 %1649 }
 0x193   : > { %6984 = vst [vmem:[#allocation45_spill] sm:$0xff] %v4563_v14 }
 0x196   : > { %797 = vrot.lane.b32.xlu0 %v4565_v56, %s3825_s30 }
 0x197   : > { %1287 = vrot.lane.b32.xlu1 %v4539_v3, %s3823_s22  ;;  %1655 = vrot.lane.b32.xlu2 %v4162_v59, %s3826_s8 }
 0x198   : > { %v850_v34 = vpop.permute.xlu0 %849 }
 0x199   : > { %v4576_v6 = vpop.permute.xlu1 %1647  ;;  %v975_v14 = vsel %vm333_vm1, %v942_v55, %v850_v34  ;;  %v943_v55 = vsel %vm937_vm4, %v4210_v21, %v4473_v11 }
 0x19a   : > { %6986 = vst [vmem:[#allocation47_spill] sm:$0xff] %v4576_v6  ;;  %v4578_v58 = vpop.permute.xlu2 %777  ;;  %3461 = vmatmul.msk.f32.gmra.mxu1 %vm1009_vm5, %v975_v14 }
 0x19e   : > { %891 = vrot.lane.b32.xlu0 %v4565_v56, %s3824_s23 }
 0x19f   : > { %1653 = vrot.lane.b32.xlu1 %v4122_v35, %s3826_s8  ;;  %1289 = vrot.lane.b32.xlu2 %v4565_v56, %s3823_s22  ;;  %v4611_v56 = vld [vmem:[#allocation2 + $0x128] sm:$0xff] }
 0x1a0   : > { %v4588_v46 = vpop.permute.xlu0 %773 }
 0x1a1   : > { %v4590_v62 = vpop.permute.xlu1 %757 }
 0x1a2   : > { %6987 = vst [vmem:[#allocation48_spill] sm:$0xff] %v4590_v62  ;;  %v4592_v6 = vpop.permute.xlu2 %871  ;;  %v945_v2 = vsel %vm937_vm4, %v4280_v61, %v4590_v62 }
 0x1a6   : > { %1651 = vrot.lane.b32.xlu0 %v4068_v0, %s3826_s8 }
 0x1a7   : > { %799 = vrot.lane.b32.xlu1 %v4594_v48, %s3825_s30  ;;  %1661 = vrot.lane.b32.xlu2 %v4277_v60, %s3826_s8 }
 0x1a8   : > { %v4602_v14 = vpop.permute.xlu0 %867 }
 0x1a9   : > { %v852_v34 = vpop.permute.xlu1 %851 }
 0x1aa   : > { %v4607_v39 = vpop.permute.xlu2 %1271  ;;  %v976_v41 = vsel %vm333_vm1, %v943_v55, %v852_v34  ;;  %v977_v34 = vsel %vm333_vm1, %v944_v17, %v4294_v4  ;;  %v978_v17 = vsel %vm333_vm1, %v945_v2, %v4413_v29 }
 0x1ab   : > { %6989 = vst [vmem:[#allocation50_spill] sm:$0xff] %v4607_v39  ;;  %3462 = vmatmul.msk.f32.gmra.mxu1 %vm1009_vm5, %v976_v41 }
 0x1ae   : > { %1657 = vrot.lane.b32.xlu0 %v4180_v7, %s3826_s8 }
 0x1af   : > { %893 = vrot.lane.b32.xlu1 %v4594_v48, %s3824_s23  ;;  %801 = vrot.lane.b32.xlu2 %v4611_v56, %s3825_s30 }
 0x1b0   : > { %v4622_v39 = vpop.permute.xlu0 %1249 }
 0x1b1   : > { %6990 = vst [vmem:[#allocation51_spill] sm:$0xff] %v4622_v39  ;;  %v4624_v55 = vpop.permute.xlu1 %775 }
 0x1b2   : > { %v4626_v41 = vpop.permute.xlu2 %783 }
 0x1b3   : > { %6991 = vst [vmem:[#allocation52_spill] sm:$0xff] %v4626_v41  ;;  %3463 = vmatmul.msk.f32.gmra.mxu1 %vm1009_vm5, %v977_v34 }
 0x1b6   : > { %1663 = vrot.lane.b32.xlu0 %v4318_v24, %s3826_s8 }
 0x1b7   : > { %1659 = vrot.lane.b32.xlu1 %v4241_v42, %s3826_s8  ;;  %895 = vrot.lane.b32.xlu2 %v4611_v56, %s3824_s23 }
 0x1b8   : > { %v4640_v39 = vpop.permute.xlu0 %1267 }
 0x1b9   : > { %6992 = vst [vmem:[#allocation53_spill] sm:$0xff] %v4640_v39  ;;  %v4642_v37 = vpop.permute.xlu1 %869  ;;  %v946_v39 = vsel %vm937_vm4, %v4332_v43, %v4269_v54 }
 0x1ba   : > { %v878_v4 = vpop.permute.xlu2 %877 }
 0x1bb   : > { %3464 = vmatmul.msk.f32.gmra.mxu1 %vm1009_vm5, %v978_v17  ;;  %v979_v17 = vsel %vm333_vm1, %v946_v39, %v4431_v13 }
 0x1be   : > { %1669 = vrot.lane.b32.xlu0 %v4404_v20, %s3826_s8 }
 0x1bf   : > { %1665 = vrot.lane.b32.xlu1 %v4368_v18, %s3826_s8  ;;  %1667 = vrot.lane.b32.xlu2 %v4402_v16, %s3826_s8 }
 0x1c0   : > { %v4653_v34 = vpop.permute.xlu0 %779 }
 0x1c1   : > { %6993 = vst [vmem:[#allocation54_spill] sm:$0xff] %v4653_v34  ;;  %v4658_v62 = vpop.permute.xlu1 %1269  ;;  %v956_v29 = vsel %vm937_vm4, %v4402_v16, %v4653_v34 }
 0x1c2   : > { %6994 = vst [vmem:[#allocation55_spill] sm:$0xff] %v4658_v62  ;;  %v4660_v2 = vpop.permute.xlu2 %1277  ;;  %v989_v3 = vsel %vm333_vm1, %v956_v29, %v878_v4 }
 0x1c3   : > { %6995 = vst [vmem:[#allocation56_spill] sm:$0xff] %v4660_v2  ;;  %3465 = vmatmul.msk.f32.gmra.mxu1 %vm1009_vm5, %v979_v17  ;;  %3475 = vmatmul.msk.f32.vlgmr.msra.gmra.mxu2 %vm1009_vm5, %v989_v3  ;;  %v947_v2 = vsel %vm937_vm4, %v4372_v25, %v4395_v57  ;;  %v948_v17 = vsel %vm937_vm4, %v4068_v0, %v4416_v51 }
 0x1c4   : > { %v980_v3 = vsel %vm333_vm1, %v947_v2, %v4398_v5  ;;  %v981_v2 = vsel %vm333_vm1, %v948_v17, %v4499_v49  ;;  %v949_v0 = vsel %vm937_vm4, %v4122_v35, %v4384_v45 }
 0x1c5   : > { %v982_v49 = vsel %vm333_vm1, %v949_v0, %v4533_v1  ;;  %v950_v1 = vsel %vm937_vm4, %v4162_v59, %v4485_v23 }
 0x1c6   : > { %1675 = vrot.lane.b32.xlu0 %v4451_v19, %s3826_s8 }
 0x1c7   : > { %1671 = vrot.lane.b32.xlu1 %v4435_v47, %s3826_s8  ;;  %1673 = vrot.lane.b32.xlu2 %v4449_v8, %s3826_s8 }
 0x1c8   : > { %v4679_v39 = vpop.permute.xlu0 %873 }
 0x1c9   : > { %v4681_v13 = vpop.permute.xlu1 %781 }
 0x1ca   : > { %v4683_v4 = vpop.permute.xlu2 %789 }
 0x1cb   : > { %3466 = vmatmul.msk.f32.gmra.mxu1 %vm1009_vm5, %v980_v3 }
 0x1ce   : > { %1681 = vrot.lane.b32.xlu0 %v4491_v44, %s3826_s8 }
 0x1cf   : > { %1677 = vrot.lane.b32.xlu1 %v4477_v9, %s3826_s8  ;;  %1679 = vrot.lane.b32.xlu2 %v4489_v36, %s3826_s8 }
 0x1d0   : > { %v4694_v29 = vpop.permute.xlu0 %1273 }
 0x1d1   : > { %6996 = vst [vmem:[#allocation57_spill] sm:$0xff] %v4694_v29  ;;  %v4699_v62 = vpop.permute.xlu1 %875 }
 0x1d2   : > { %v884_v5 = vpop.permute.xlu2 %883 }
 0x1d3   : > { %3467 = vmatmul.msk.f32.gmra.mxu1 %vm1009_vm5, %v981_v2  ;;  %v957_v2 = vsel %vm937_vm4, %v4404_v20, %v4681_v13 }
 0x1d6   : > { %1719 = vrot.lane.b32.xlu0 %v4594_v48, %s3823_s22 }
 0x1d7   : > { %1683 = vrot.lane.b32.xlu1 %v4523_v28, %s3826_s8  ;;  %1685 = vrot.lane.b32.xlu2 %v4537_v40, %s3826_s8 }
 0x1d8   : > { %v4710_v3 = vpop.permute.xlu0 %785 }
 0x1d9   : > { %v4715_v29 = vpop.permute.xlu1 %1275 }
 0x1da   : > { %6997 = vst [vmem:[#allocation58_spill] sm:$0xff] %v4715_v29  ;;  %v4719_v17 = vpop.permute.xlu2 %1283 }
 0x1db   : > { %6998 = vst [vmem:[#allocation59_spill] sm:$0xff] %v4719_v17  ;;  %3468 = vmatmul.msk.f32.gmra.mxu1 %vm1009_vm5, %v982_v49  ;;  %v664_v17 = vld [vmem:[#allocation2 + $0x8] sm:$0xff] }
 0x1de   : > { %1725 = vrot.lane.b32.xlu0 %v4109_v26, %s3823_s22  ;;  %v983_v26 = vsel %vm333_vm1, %v950_v1, %v4519_v30  ;;  %v951_v30 = vsel %vm937_vm4, %v4180_v7, %v4517_v52 }
 0x1df   : > { %1721 = vrot.lane.b32.xlu1 %v4611_v56, %s3823_s22  ;;  %1723 = vrot.lane.b32.xlu2 %v4090_v15, %s3823_s22  ;;  %v663_v15 = vld [vmem:[#allocation2] sm:$0xff] }
 0x1e0   : > { %v880_v29 = vpop.permute.xlu0 %879 }
 0x1e1   : > { %v4734_v0 = vpop.permute.xlu1 %787  ;;  %v990_v49 = vsel %vm333_vm1, %v957_v2, %v880_v29  ;;  %v958_v2 = vsel %vm937_vm4, %v4435_v47, %v4626_v41  ;;  %v3684_v41 = vld [vmem:[#allocation2 + $0x20] sm:$0xff] }
 0x1e2   : > { %3476 = vmatmul.msk.f32.gmra.mxu2 %vm1009_vm5, %v990_v49  ;;  %v4741_v34 = vpop.permute.xlu2 %795  ;;  %v984_v49 = vsel %vm333_vm1, %v951_v30, %v4602_v14  ;;  %v952_v30 = vsel %vm937_vm4, %v4241_v42, %v4503_v53 }
 0x1e3   : > { %3469 = vmatmul.msk.f32.gmra.mxu1 %vm1009_vm5, %v983_v26  ;;  %v959_v26 = vsel %vm937_vm4, %v4449_v8, %v4710_v3 }
 0x1e6   : > { %2021 = vrot.lane.b32.xlu0 %v4016_v33, %s3827_s19 }
 0x1e7   : > { %2017 = vrot.lane.b32.xlu1 %v663_v15, %s3827_s19  ;;  %2019 = vrot.lane.b32.xlu2 %v664_v17, %s3827_s19  ;;  %v3682_v17 = vld [vmem:[#allocation2 + $0x28] sm:$0xff] }
 0x1e8   : > { %v4747_v29 = vpop.permute.xlu0 %1279 }
 0x1e9   : > { %6999 = vst [vmem:[#allocation60_spill] sm:$0xff] %v4747_v29  ;;  %v882_v1 = vpop.permute.xlu1 %881  ;;  %v3683_v29 = vld [vmem:[#allocation2 + $0x18] sm:$0xff] }
 0x1ea   : > { %v991_v33 = vsel %vm333_vm1, %v958_v2, %v882_v1  ;;  %v890_v15 = vpop.permute.xlu2 %889  ;;  %v985_v1 = vsel %vm333_vm1, %v952_v30, %v4642_v37  ;;  %v3490_v37 = vld [vmem:[%s6861_s3 + $0x18] sm:$0xf] }
 0x1eb   : > { %3470 = vmatmul.msk.f32.gmra.mxu1 %vm1009_vm5, %v984_v49  ;;  %3477 = vmatmul.msk.f32.gmra.mxu2 %vm1009_vm5, %v991_v33  ;;  %v992_v49 = vsel %vm333_vm1, %v959_v26, %v884_v5  ;;  %v3686_v33 = vld [vmem:[#allocation2 + $0x38] sm:$0xff]  ;;  %v960_v5 = vsel %vm937_vm4, %v4451_v19, %v4734_v0 }
 0x1ec   : > { %3492 = vmatpush.msk.msrb.mxu2 %vm1106_vm3, %v3490_v37 }
 0x1ee   : > { %2027 = vrot.lane.b32.xlu0 %v3682_v17, %s3827_s19 }
 0x1ef   : > { %2023 = vrot.lane.b32.xlu1 %v3683_v29, %s3827_s19  ;;  %2025 = vrot.lane.b32.xlu2 %v3684_v41, %s3827_s19  ;;  %v953_v41 = vsel %vm937_vm4, %v4277_v60, %v4588_v46  ;;  %v3685_v29 = vld [vmem:[#allocation2 + $0x30] sm:$0xff] }
 0x1f0   : > { %v4766_v14 = vpop.permute.xlu0 %791 }
 0x1f1   : > { %v4771_v2 = vpop.permute.xlu1 %1281 }
 0x1f3   : > { %3471 = vmatmul.msk.f32.gmra.mxu1 %vm1009_vm5, %v985_v1  ;;  %3478 = vmatmul.msk.f32.gmra.mxu2 %vm1009_vm5, %v992_v49  ;;  %v3489_v1 = vld [vmem:[%s6861_s3 + $0x10] sm:$0xff]  ;;  %v986_v49 = vsel %vm333_vm1, %v953_v41, %v4592_v6  ;;  %v954_v41 = vsel %vm937_vm4, %v4318_v24, %v4624_v55 }
 0x1f4   : > { %1523 = vmatpush.msrb.mxu2 %v3489_v1  ;;  %v962_v1 = vsel %vm937_vm4, %v4489_v36, %v4766_v14 }
 0x1f6   : > { %2033 = vrot.lane.b32.xlu0 %v4066_v63, %s3827_s19  ;;  %v4792_v63 = vpop.permute.xlu2 %1655 }
 0x1f7   : > { %2029 = vrot.lane.b32.xlu1 %v3685_v29, %s3827_s19  ;;  %2031 = vrot.lane.b32.xlu2 %v3686_v33, %s3827_s19  ;;  %v3562_v29 = vld [vmem:[%s6861_s3 + $0x38] sm:$0xf]  ;;  %v961_v33 = vsel %vm937_vm4, %v4477_v9, %v4683_v4 }
 0x1f8   : > { %v886_v17 = vpop.permute.xlu0 %885  ;;  %3564 = vmatpush.msk.msrb.mxu0 %vm1106_vm3, %v3562_v29 }
 0x1f9   : > { %v4794_v26 = vpop.permute.xlu1 %793  ;;  %v993_v30 = vsel %vm333_vm1, %v960_v5, %v886_v17  ;;  %v987_v5 = vsel %vm333_vm1, %v954_v41, %v4679_v39 }
 0x1fb   : > { %3472 = vmatmul.msk.f32.gmra.mxu1 %vm1009_vm5, %v986_v49  ;;  %3479 = vmatmul.msk.f32.gmra.mxu2 %vm1009_vm5, %v993_v30  ;;  %v955_v49 = vsel %vm937_vm4, %v4368_v18, %v4578_v58 }
 0x1fc   : > { %v988_v41 = vsel %vm333_vm1, %v955_v49, %v4699_v62  ;;  %v963_v62 = vsel %vm937_vm4, %v4491_v44, %v4794_v26 }
 0x1fe   : > { %2039 = vrot.lane.b32.xlu0 %v4210_v21, %s3827_s19  ;;  %v4825_v30 = vpop.permute.xlu2 %1289 }
 0x1ff   : > { %2035 = vrot.lane.b32.xlu1 %v4128_v38, %s3827_s19  ;;  %2037 = vrot.lane.b32.xlu2 %v4147_v50, %s3827_s19  ;;  %7000 = vst [vmem:[#allocation61_spill] sm:$0xff] %v4825_v30 }
 0x200   : > { %v4814_v6 = vpop.permute.xlu0 %1285 }
 0x201   : > { %v888_v37 = vpop.permute.xlu1 %887 }
 0x202   : > { %v994_v17 = vsel %vm333_vm1, %v961_v33, %v888_v37  ;;  %v995_v33 = vsel %vm333_vm1, %v962_v1, %v890_v15 }
 0x203   : > { %3473 = vmatmul.msk.f32.gmra.mxu1 %vm1009_vm5, %v987_v5  ;;  %3480 = vmatmul.msk.f32.gmra.mxu2 %vm1009_vm5, %v994_v17  ;;  %v4856_v5 = vld [vmem:[#allocation2 + $0x80] sm:$0xff] }
 0x206   : > { %2045 = vrot.lane.b32.xlu0 %v4332_v43, %s3827_s19  ;;  %v4850_v37 = vpop.permute.xlu2 %1661 }
 0x207   : > { %2041 = vrot.lane.b32.xlu1 %v4228_v31, %s3827_s19  ;;  %2043 = vrot.lane.b32.xlu2 %v4280_v61, %s3827_s19 }
 0x208   : > { %v4838_v39 = vpop.permute.xlu0 %797 }
 0x209   : > { %v4843_v29 = vpop.permute.xlu1 %1287 }
 0x20b   : > { %3474 = vmatmul.msk.f32.gmra.mxu1 %vm1009_vm5, %v988_v41  ;;  %3481 = vmatmul.msk.f32.gmra.mxu2 %vm1009_vm5, %v995_v33  ;;  %v4877_v41 = vld [vmem:[#allocation2 + $0x40] sm:$0xff] }
 0x20c   : > { %7001 = vst [vmem:[#allocation62_spill] sm:$0xff] %v4877_v41  ;;  %v1337_v33 = vsel %vm937_vm4, %v4221_v27, %v4877_v41  ;;  %v1338_v27 = vsel %vm937_vm4, %v4191_v10, %v4128_v38  ;;  %v1339_v38 = vsel %vm937_vm4, %v4218_v22, %v4147_v50  ;;  %v965_v10 = vsel %vm937_vm4, %v4537_v40, %v4838_v39  ;;  %v7002_v50 = vld [vmem:[#allocation40_spill] sm:$0xff] }
 0x20e   : > { %2051 = vrot.lane.b32.xlu0 %v4122_v35, %s3827_s19  ;;  %v4869_v35 = vpop.permute.xlu2 %801 }
 0x20f   : > { %2047 = vrot.lane.b32.xlu1 %v4372_v25, %s3827_s19  ;;  %2049 = vrot.lane.b32.xlu2 %v4856_v5, %s3827_s19 }
 0x210   : > { %v892_v15 = vpop.permute.xlu0 %891 }
 0x211   : > { %v4863_v17 = vpop.permute.xlu1 %1653  ;;  %v996_v1 = vsel %vm333_vm1, %v963_v62, %v892_v15 }
 0x213   : > { %3482 = vmatmul.msk.f32.gmra.mxu2 %vm1009_vm5, %v996_v1 }
 0x216   : > { %2057 = vrot.lane.b32.xlu0 %v4241_v42, %s3827_s19  ;;  %v1369_v42 = vsel %vm333_vm1, %v1337_v33, %v4433_v12  ;;  %v964_v12 = vsel %vm937_vm4, %v4523_v28, %v4741_v34  ;;  %v896_v15 = vpop.permute.xlu2 %895 }
 0x217   : > { %2053 = vrot.lane.b32.xlu1 %v4162_v59, %s3827_s19  ;;  %2055 = vrot.lane.b32.xlu2 %v4180_v7, %s3827_s19  ;;  %v3561_v59 = vld [vmem:[%s6861_s3 + $0x30] sm:$0xff] }
 0x218   : > { %v4875_v49 = vpop.permute.xlu0 %1651  ;;  %2345 = vmatpush.msrb.mxu0 %v3561_v59  ;;  %v998_v59 = vsel %vm333_vm1, %v965_v10, %v896_v15  ;;  %v7003_v15 = vld [vmem:[#allocation11_spill] sm:$0xff] }
 0x219   : > { %v4882_v62 = vpop.permute.xlu1 %799 }
 0x21a   : > { %v966_v22 = vsel %vm937_vm4, %v7002_v50, %v4882_v62 }
 0x21b   : > { %3493 = vmatmul.msk.f32.vlgmr.msrb.gmra.mxu2 %vm1009_vm5, %v1369_v42 }
 0x21e   : > { %2063 = vrot.lane.b32.xlu0 %v4368_v18, %s3827_s19 }
 0x21f   : > { %2059 = vrot.lane.b32.xlu1 %v4277_v60, %s3827_s19  ;;  %2061 = vrot.lane.b32.xlu2 %v4318_v24, %s3827_s19  ;;  %v1370_v60 = vsel %vm333_vm1, %v1338_v27, %v4473_v11  ;;  %v1371_v27 = vsel %vm333_vm1, %v1339_v38, %v4559_v32  ;;  %v3526_v32 = vld [vmem:[%s6861_s3 + $0x28] sm:$0xf]  ;;  %v7004_v38 = vld [vmem:[#allocation25_spill] sm:$0xff] }
 0x220   : > { %v4896_v7 = vpop.permute.xlu0 %1657  ;;  %3528 = vmatpush.msk.msra.mxu3 %vm1106_vm3, %v3526_v32  ;;  %v999_v10 = vsel %vm333_vm1, %v966_v22, %v7004_v38  ;;  %v7007_v32 = vld [vmem:[#allocation19_spill] sm:$0xff]  ;;  %v7008_v22 = vld [vmem:[#allocation46_spill] sm:$0xff] }
 0x221   : > { %v894_v1 = vpop.permute.xlu1 %893  ;;  %v7009_v38 = vld [vmem:[#allocation27_spill] sm:$0xff] }
 0x222   : > { %v997_v33 = vsel %vm333_vm1, %v964_v12, %v894_v1  ;;  %v4928_v12 = vpop.permute.xlu2 %1667  ;;  %v1340_v1 = vsel %vm937_vm4, %v7003_v15, %v4210_v21  ;;  %v1341_v15 = vsel %vm937_vm4, %v7007_v32, %v4228_v31 }
 0x223   : > { %3483 = vmatmul.msk.f32.vlgmr.msrb.gmra.mxu3 %vm1009_vm5, %v997_v33  ;;  %3494 = vmatmul.msk.f32.gmra.mxu2 %vm1009_vm5, %v1370_v60  ;;  %v3525_v60 = vld [vmem:[%s6861_s3 + $0x20] sm:$0xff] }
 0x224   : > { %1917 = vmatpush.msra.mxu3 %v3525_v60 }
 0x226   : > { %2069 = vrot.lane.b32.xlu0 %v4435_v47, %s3827_s19 }
 0x227   : > { %2065 = vrot.lane.b32.xlu1 %v4402_v16, %s3827_s19  ;;  %2067 = vrot.lane.b32.xlu2 %v4404_v20, %s3827_s19 }
 0x228   : > { %v4923_v42 = vpop.permute.xlu0 %1663 }
 0x229   : > { %v4921_v11 = vpop.permute.xlu1 %1659 }
 0x22a   : > { %v4961_v21 = vpop.permute.xlu2 %1673 }
 0x22b   : > { %3484 = vmatmul.msk.f32.gmra.mxu3 %vm1009_vm5, %v998_v59  ;;  %3495 = vmatmul.msk.f32.gmra.mxu2 %vm1009_vm5, %v1371_v27  ;;  %v7005_v59 = vld [vmem:[#allocation48_spill] sm:$0xff]  ;;  %7006 = vst [vmem:[#allocation40_spill] sm:$0xff] %v4961_v21 }
 0x22c   : > { %v1372_v27 = vsel %vm333_vm1, %v1340_v1, %v7005_v59  ;;  %v967_v1 = vsel %vm937_vm4, %v7008_v22, %v4869_v35  ;;  %v1373_v59 = vsel %vm333_vm1, %v1341_v15, %v4269_v54  ;;  %v7013_v54 = vld [vmem:[#allocation22_spill] sm:$0xff] }
 0x22d   : > { %v968_v15 = vsel %vm937_vm4, %v4594_v48, %v7013_v54 }
 0x22e   : > { %2075 = vrot.lane.b32.xlu0 %v4477_v9, %s3827_s19 }
 0x22f   : > { %2071 = vrot.lane.b32.xlu1 %v4449_v8, %s3827_s19  ;;  %2073 = vrot.lane.b32.xlu2 %v4451_v19, %s3827_s19 }
 0x230   : > { %v4957_v41 = vpop.permute.xlu0 %1669 }
 0x231   : > { %v4948_v33 = vpop.permute.xlu1 %1665 }
 0x232   : > { %v4990_v21 = vpop.permute.xlu2 %1679 }
 0x233   : > { %3485 = vmatmul.msk.f32.gmra.mxu3 %vm1009_vm5, %v999_v10  ;;  %3496 = vmatmul.msk.f32.gmra.mxu2 %vm1009_vm5, %v1372_v27  ;;  %v1000_v10 = vsel %vm333_vm1, %v967_v1, %v7009_v38  ;;  %v7011_v27 = vld [vmem:[#allocation29_spill] sm:$0xff]  ;;  %7012 = vst [vmem:[#allocation25_spill] sm:$0xff] %v4990_v21  ;;  %v7015_v38 = vld [vmem:[#allocation6_spill] sm:$0xff]  ;;  %v7017_v21 = vld [vmem:[#allocation31_spill] sm:$0xff] }
 0x234   : > { %v1342_v30 = vsel %vm937_vm4, %v7011_v27, %v4280_v61 }
 0x235   : > { %v1374_v61 = vsel %vm333_vm1, %v1342_v30, %v4395_v57  ;;  %v5020_v57 = vld [vmem:[#allocation2 + $0x138] sm:$0xff]  ;;  %v7021_v30 = vld [vmem:[#allocation26_spill] sm:$0xff] }
 0x236   : > { %2113 = vrot.lane.b32.xlu0 %v7002_v50, %s3826_s8  ;;  %7020 = vst [vmem:[#allocation22_spill] sm:$0xff] %v5020_v57 }
 0x237   : > { %2077 = vrot.lane.b32.xlu1 %v4489_v36, %s3827_s19  ;;  %2079 = vrot.lane.b32.xlu2 %v4491_v44, %s3827_s19 }
 0x238   : > { %v4983_v31 = vpop.permute.xlu0 %1675 }
 0x239   : > { %v4975_v60 = vpop.permute.xlu1 %1671  ;;  %7010 = vst [vmem:[#allocation11_spill] sm:$0xff] %v4983_v31  ;;  %v1343_v31 = vsel %vm937_vm4, %v7017_v21, %v4332_v43 }
 0x23b   : > { %3486 = vmatmul.msk.f32.gmra.mxu3 %vm1009_vm5, %v1000_v10  ;;  %3497 = vmatmul.msk.f32.gmra.mxu2 %vm1009_vm5, %v1373_v59  ;;  %v1001_v10 = vsel %vm333_vm1, %v968_v15, %v7015_v38  ;;  %v5007_v59 = vld [vmem:[#allocation2 + $0x140] sm:$0xff]  ;;  %v969_v15 = vsel %vm937_vm4, %v4611_v56, %v7021_v30  ;;  %v5027_v38 = vpop.permute.xlu2 %1685 }
 0x23c   : > { %7016 = vst [vmem:[#allocation19_spill] sm:$0xff] %v5007_v59 }
 0x23d   : > { %7022 = vst [vmem:[#allocation6_spill] sm:$0xff] %v5027_v38 }
 0x23e   : > { %2119 = vrot.lane.b32.xlu0 %v4611_v56, %s3826_s8  ;;  %v7026_v56 = vld [vmem:[#allocation16_spill] sm:$0xff] }
 0x23f   : > { %2115 = vrot.lane.b32.xlu1 %v7008_v22, %s3826_s8  ;;  %2117 = vrot.lane.b32.xlu2 %v4594_v48, %s3826_s8  ;;  %v5016_v48 = vld [vmem:[#allocation2 + $0x130] sm:$0xff]  ;;  %v1731_v38 = vsel %vm937_vm4, %v7026_v56, %v7007_v32  ;;  %v7050_v22 = vld [vmem:[#allocation51_spill] sm:$0xff] }
 0x240   : > { %7019 = vst [vmem:[#allocation29_spill] sm:$0xff] %v5016_v48 }
 0x241   : > { %v4999_v1 = vpop.permute.xlu1 %1677 }
 0x242   : > { %7014 = vst [vmem:[#allocation48_spill] sm:$0xff] %v4999_v1  ;;  %v5014_v1 = vpop.permute.xlu0 %1681 }
 0x243   : > { %3487 = vmatmul.msk.f32.gmra.mxu3 %vm1009_vm5, %v1001_v10  ;;  %3498 = vmatmul.msk.f32.gmra.mxu2 %vm1009_vm5, %v1374_v61  ;;  %7018 = vst [vmem:[#allocation27_spill] sm:$0xff] %v5014_v1  ;;  %v7024_v61 = vld [vmem:[#allocation7_spill] sm:$0xff]  ;;  %v1375_v1 = vsel %vm333_vm1, %v1343_v31, %v4416_v51  ;;  %v5051_v51 = vld [vmem:[#allocation2 + $0x150] sm:$0xff]  ;;  %v5063_v56 = vpop.permute.xlu2 %1723 }
 0x244   : > { %7032 = vst [vmem:[#allocation65_spill] sm:$0xff] %v5063_v56 }
 0x246   : > { %2135 = vrot.lane.b32.xlu0 %v5007_v59, %s3823_s22  ;;  %v1002_v59 = vsel %vm333_vm1, %v969_v15, %v7024_v61  ;;  %v5047_v61 = vld [vmem:[#allocation2 + $0x148] sm:$0xff] }
 0x247   : > { %2121 = vrot.lane.b32.xlu1 %v5016_v48, %s3826_s8  ;;  %2123 = vrot.lane.b32.xlu2 %v5020_v57, %s3826_s8  ;;  %v5037_v48 = vld [vmem:[#allocation2 + $0x158] sm:$0xff]  ;;  %7028 = vst [vmem:[#allocation16_spill] sm:$0xff] %v5047_v61 }
 0x248   : > { %7025 = vst [vmem:[#allocation7_spill] sm:$0xff] %v5037_v48  ;;  %v7035_v57 = vld [vmem:[#allocation9_spill] sm:$0xff] }
 0x249   : > { %v5029_v10 = vpop.permute.xlu1 %1683 }
 0x24a   : > { %7023 = vst [vmem:[#allocation31_spill] sm:$0xff] %v5029_v10  ;;  %v7027_v10 = vld [vmem:[#allocation28_spill] sm:$0xff]  ;;  %v5055_v31 = vpop.permute.xlu0 %1719 }
 0x24b   : > { %3488 = vmatmul.msk.f32.gmra.mxu3 %vm1009_vm5, %v1002_v59  ;;  %3499 = vmatmul.msk.f32.gmra.mxu2 %vm1009_vm5, %v1375_v1  ;;  %v1344_v15 = vsel %vm937_vm4, %v7027_v10, %v4372_v25  ;;  %7029 = vst [vmem:[#allocation28_spill] sm:$0xff] %v5051_v51  ;;  %v1763_v59 = vsel %vm333_vm1, %v1731_v38, %v4332_v43 }
 0x24c   : > { %7030 = vst [vmem:[#allocation63_spill] sm:$0xff] %v5055_v31  ;;  %v1376_v32 = vsel %vm333_vm1, %v1344_v15, %v4384_v45  ;;  %v1732_v45 = vsel %vm937_vm4, %v7035_v57, %v7011_v27  ;;  %v7036_v15 = vld [vmem:[#allocation37_spill] sm:$0xff]  ;;  %v3678_v57 = vld [vmem:[%s6864_s6] ss:$0 sm:$0xff]  ;;  %v5121_v31 = vld [vmem:[#allocation2 + $0x90] sm:$0xff] }
 0x24d   : > { %v1345_v43 = vsel %vm937_vm4, %v7036_v15, %v4856_v5  ;;  %v1764_v27 = vsel %vm333_vm1, %v1732_v45, %v4372_v25  ;;  %v710_v25 = vld [vmem:[#allocation2 + $0x178] sm:$0xff]  ;;  %v2020_v45 = vpop.permute.xlu2 %2019  ;;  %7045 = vst [vmem:[#allocation37_spill] sm:$0xff] %v5121_v31 }
 0x24e   : > { %2141 = vrot.lane.b32.xlu0 %v5037_v48, %s3823_s22  ;;  %v709_v48 = vld [vmem:[#allocation2 + $0x170] sm:$0xff] }
 0x24f   : > { %2137 = vrot.lane.b32.xlu1 %v5047_v61, %s3823_s22  ;;  %2139 = vrot.lane.b32.xlu2 %v5051_v51, %s3823_s22  ;;  %v5067_v61 = vld [vmem:[#allocation2 + $0x160] sm:$0xff]  ;;  %v5069_v51 = vld [vmem:[#allocation2 + $0x168] sm:$0xff] }
 0x250   : > { %7033 = vst [vmem:[#allocation66_spill] sm:$0xff] %v5067_v61 }
 0x251   : > { %v5057_v1 = vpop.permute.xlu1 %1721  ;;  %7034 = vst [vmem:[#allocation67_spill] sm:$0xff] %v5069_v51 }
 0x252   : > { %7031 = vst [vmem:[#allocation64_spill] sm:$0xff] %v5057_v1  ;;  %v5091_v56 = vpop.permute.xlu0 %1725 }
 0x253   : > { %3500 = vmatmul.msk.f32.gmra.mxu2 %vm1009_vm5, %v1376_v32  ;;  %3529 = vmatmul.msk.f32.vlgmr.msra.gmra.mxu3 %vm1009_vm5, %v1763_v59  ;;  %v7037_v32 = vld [vmem:[#allocation23_spill] sm:$0xff]  ;;  %7038 = vst [vmem:[#allocation9_spill] sm:$0xff] %v5091_v56  ;;  %v7041_v56 = vld [vmem:[#allocation42_spill] sm:$0xff] }
 0x256   : > { %2147 = vrot.lane.b32.xlu0 %v709_v48, %s3823_s22  ;;  %v1377_v48 = vsel %vm333_vm1, %v1345_v43, %v4485_v23  ;;  %v3677_v23 = vld [vmem:[%s6863_s5] ss:$0 sm:$0xff]  ;;  %v7040_v43 = vld [vmem:[#allocation15_spill] sm:$0xff] }
 0x257   : > { %2143 = vrot.lane.b32.xlu1 %v5067_v61, %s3823_s22  ;;  %2145 = vrot.lane.b32.xlu2 %v5069_v51, %s3823_s22  ;;  %v7039_v51 = vld [vmem:[#allocation20_spill] sm:$0xff] }
 0x259   : > { %v2018_v38 = vpop.permute.xlu1 %2017 }
 0x25a   : > { %v2159_v59 = vsel %vm937_vm4, %v2018_v38, %v7037_v32  ;;  %v1733_v38 = vsel %vm937_vm4, %v7040_v43, %v7017_v21  ;;  %v7043_v21 = vld [vmem:[#allocation21_spill] sm:$0xff] }
 0x25b   : > { %3501 = vmatmul.msk.f32.gmra.mxu2 %vm1009_vm5, %v1377_v48  ;;  %3530 = vmatmul.msk.f32.gmra.mxu3 %vm1009_vm5, %v1764_v27  ;;  %v2191_v61 = vsel %vm333_vm1, %v2159_v59, %v7039_v51  ;;  %v3695_v48 = vld [vmem:[#allocation2 + $0x88] sm:$0xff]  ;;  %v7042_v59 = vld [vmem:[#allocation24_spill] sm:$0xff] }
 0x25c   : > { %3565 = vmatmul.msk.f32.vlgmr.msrb.gmra.mxu0 %vm1009_vm5, %v2191_v61  ;;  %v1346_v27 = vsel %vm937_vm4, %v7041_v56, %v3695_v48  ;;  %v2160_v1 = vsel %vm937_vm4, %v2020_v45, %v7042_v59 }
 0x25d   : > { %v1378_v61 = vsel %vm333_vm1, %v1346_v27, %v4517_v52  ;;  %v2192_v43 = vsel %vm333_vm1, %v2160_v1, %v7043_v21  ;;  %v7046_v52 = vld [vmem:[#allocation39_spill] sm:$0xff] }
 0x25e   : > { %2548 = vrot.lane.b32.xlu0 %v3678_v57, %s3828_s17  ;;  %v1765_v57 = vsel %vm333_vm1, %v1733_v38, %v4856_v5  ;;  %v1347_v5 = vsel %vm937_vm4, %v7046_v52, %v5121_v31  ;;  %v7047_v38 = vld [vmem:[#allocation33_spill] sm:$0xff] }
 0x25f   : > { %2149 = vrot.lane.b32.xlu1 %v710_v25, %s3823_s22  ;;  %2510 = vrot.lane.b32.xlu2 %v3677_v23, %s3828_s17  ;;  %v2022_v25 = vpop.permute.xlu0 %2021  ;;  %v7044_v23 = vld [vmem:[#allocation18_spill] sm:$0xff]  ;;  %s283_s17 = sand.u32 1, %s3804_s25  }
 0x260   : > { %v1734_v45 = vsel %vm937_vm4, %v7044_v23, %v7027_v10  ;;  %v2161_v27 = vsel %vm937_vm4, %v2022_v25, %v7047_v38  ;;  %v7049_v23 = vld [vmem:[#allocation12_spill] sm:$0xff]  ;;  %v3697_v25 = vld [vmem:[#allocation2 + $0x98] sm:$0xff]  ;;  %s3421_s22 = sshll.u32 %s283_s17, 8  ;;  %s3323_s15 = scalar_lea.sflag [#allocation4], %s283_s17 }
 0x261   : > { %v1766_v1 = vsel %vm333_vm1, %v1734_v45, %v3695_v48  ;;  %v1735_v30 = vsel %vm937_vm4, %v7049_v23, %v7036_v15  ;;  %v7054_v23 = vld [vmem:[#allocation34_spill] sm:$0xff]  ;;  %s6064_s18 = scalar_lea.vmem [#allocation3], %s3421_s22 }
 0x263   : > { %3502 = vmatmul.msk.f32.gmra.mxu2 %vm1009_vm5, %v1378_v61  ;;  %3531 = vmatmul.msk.f32.gmra.mxu3 %vm1009_vm5, %v1765_v57  ;;  %v1379_v61 = vsel %vm333_vm1, %v1347_v5, %v4503_v53  ;;  %v7048_v57 = vld [vmem:[#allocation30_spill] sm:$0xff]  ;;  %v1348_v53 = vsel %vm937_vm4, %v7050_v22, %v3697_v25  ;;  %v7051_v5 = vld [vmem:[#allocation36_spill] sm:$0xff] }
 0x264   : > { %3566 = vmatmul.msk.f32.gmra.mxu0 %vm1009_vm5, %v2192_v43  ;;  %v2193_v10 = vsel %vm333_vm1, %v2161_v27, %v7048_v57  ;;  %v2024_v43 = vpop.permute.xlu1 %2023  ;;  %v1380_v45 = vsel %vm333_vm1, %v1348_v53, %v4588_v46  ;;  %v1767_v27 = vsel %vm333_vm1, %v1735_v30, %v5121_v31  ;;  %v3698_v53 = vld [vmem:[#allocation2 + $0xa0] sm:$0xff]  ;;  %v7057_v31 = vld [vmem:[#allocation41_spill] sm:$0xff] }
 0x265   : > { %v2162_v48 = vsel %vm937_vm4, %v2024_v43, %v7051_v5  ;;  %v1349_v30 = vsel %vm937_vm4, %v7039_v51, %v3698_v53 }
 0x26b   : > { %3503 = vmatmul.msk.f32.gmra.mxu2 %vm1009_vm5, %v1379_v61  ;;  %3532 = vmatmul.msk.f32.gmra.mxu3 %vm1009_vm5, %v1766_v1  ;;  %v7052_v61 = vld [vmem:[#allocation35_spill] sm:$0xff]  ;;  %v2026_v1 = vpop.permute.xlu2 %2025 }
 0x26c   : > { %3567 = vmatmul.msk.f32.gmra.mxu0 %vm1009_vm5, %v2193_v10  ;;  %v2194_v15 = vsel %vm333_vm1, %v2162_v48, %v7052_v61  ;;  %v7053_v10 = vld [vmem:[#allocation17_spill] sm:$0xff]  ;;  %v2163_v46 = vsel %vm937_vm4, %v2026_v1, %v7054_v23  ;;  %v7055_v48 = vld [vmem:[#allocation32_spill] sm:$0xff]  ;;  %v1737_v1 = vsel %vm937_vm4, %v7037_v32, %v7046_v52  ;;  %v7058_v32 = vld [vmem:[#allocation38_spill] sm:$0xff] }
 0x26d   : > { %v1736_v43 = vsel %vm937_vm4, %v7053_v10, %v7041_v56  ;;  %v2028_v56 = vpop.permute.xlu0 %2027  ;;  %v5170_v10 = vpop.f32.mrf.mxu2 }
 0x26e   : > { %7056 = vst [vmem:[#allocation23_spill] sm:$0xff] %v5170_v10 }
 0x273   : > { %3504 = vmatmul.msk.f32.gmra.mxu2 %vm1009_vm5, %v1380_v45  ;;  %3533 = vmatmul.msk.f32.gmra.mxu3 %vm1009_vm5, %v1767_v27  ;;  %v1381_v45 = vsel %vm333_vm1, %v1349_v30, %v4624_v55  ;;  %v1768_v27 = vsel %vm333_vm1, %v1736_v43, %v3697_v25  ;;  %v2164_v55 = vsel %vm937_vm4, %v2028_v56, %v7057_v31  ;;  %v5174_v25 = vld [vmem:[#allocation2 + $0xa8] sm:$0xff] }
 0x274   : > { %3568 = vmatmul.msk.f32.gmra.mxu0 %vm1009_vm5, %v2194_v15  ;;  %v2195_v15 = vsel %vm333_vm1, %v2163_v46, %v7055_v48  ;;  %v1350_v43 = vsel %vm937_vm4, %v7043_v21, %v5174_v25  ;;  %v1769_v30 = vsel %vm333_vm1, %v1737_v1, %v3698_v53  ;;  %v2196_v52 = vsel %vm333_vm1, %v2164_v55, %v7058_v32  ;;  %v7060_v56 = vld [vmem:[#allocation47_spill] sm:$0xff]  ;;  %v7061_v1 = vld [vmem:[#allocation54_spill] sm:$0xff] }
 0x275   : > { %v1382_v46 = vsel %vm333_vm1, %v1350_v43, %v4578_v58  ;;  %v1351_v53 = vsel %vm937_vm4, %v7048_v57, %v4318_v24  ;;  %v1739_v24 = vsel %vm937_vm4, %v7047_v38, %v7039_v51  ;;  %v7065_v51 = vld [vmem:[#allocation43_spill] sm:$0xff] }
 0x276   : > { %v1383_v43 = vsel %vm333_vm1, %v1351_v53, %v7061_v1 }
 0x27b   : > { %3505 = vmatmul.msk.f32.gmra.mxu2 %vm1009_vm5, %v1381_v45  ;;  %3534 = vmatmul.msk.f32.gmra.mxu3 %vm1009_vm5, %v1768_v27  ;;  %v2030_v45 = vpop.permute.xlu1 %2029  ;;  %v1738_v27 = vsel %vm937_vm4, %v7042_v59, %v7050_v22  ;;  %v7062_v22 = vld [vmem:[#allocation44_spill] sm:$0xff] }
 0x27c   : > { %3569 = vmatmul.msk.f32.gmra.mxu0 %vm1009_vm5, %v2195_v15  ;;  %v5190_v15 = vpop.f32.mrf.mxu2  ;;  %v2165_v58 = vsel %vm937_vm4, %v2030_v45, %v7060_v56  ;;  %v1770_v55 = vsel %vm333_vm1, %v1738_v27, %v5174_v25  ;;  %v1352_v27 = vsel %vm937_vm4, %v7052_v61, %v4368_v18 }
 0x27d   : > { %7059 = vst [vmem:[#allocation20_spill] sm:$0xff] %v5190_v15  ;;  %v2197_v59 = vsel %vm333_vm1, %v2165_v58, %v7062_v22  ;;  %v1384_v53 = vsel %vm333_vm1, %v1352_v27, %v4681_v13  ;;  %v3700_v58 = vld [vmem:[#allocation2 + $0xb0] sm:$0xff] }
 0x27e   : > { %v1771_v1 = vsel %vm333_vm1, %v1739_v24, %v3700_v58  ;;  %v1741_v58 = vsel %vm937_vm4, %v7054_v23, %v7048_v57 }
 0x283   : > { %3506 = vmatmul.msk.f32.gmra.mxu2 %vm1009_vm5, %v1382_v46  ;;  %3535 = vmatmul.msk.f32.gmra.mxu3 %vm1009_vm5, %v1769_v30  ;;  %v2032_v46 = vpop.permute.xlu2 %2031  ;;  %v7063_v30 = vld [vmem:[#allocation45_spill] sm:$0xff] }
 0x284   : > { %3570 = vmatmul.msk.f32.gmra.mxu0 %vm1009_vm5, %v2196_v52  ;;  %v2166_v52 = vsel %vm937_vm4, %v2032_v46, %v7063_v30  ;;  %v5211_v45 = vpop.f32.mrf.mxu2  ;;  %v7066_v46 = vld [vmem:[#allocation52_spill] sm:$0xff] }
 0x285   : > { %7064 = vst [vmem:[#allocation15_spill] sm:$0xff] %v5211_v45  ;;  %v2198_v38 = vsel %vm333_vm1, %v2166_v52, %v7065_v51 }
 0x28b   : > { %3507 = vmatmul.msk.f32.gmra.mxu2 %vm1009_vm5, %v1383_v43  ;;  %3536 = vmatmul.msk.f32.gmra.mxu3 %vm1009_vm5, %v1770_v55  ;;  %v2034_v43 = vpop.permute.xlu0 %2033  ;;  %v1740_v55 = vsel %vm937_vm4, %v7051_v5, %v7043_v21  ;;  %v7068_v21 = vld [vmem:[#allocation53_spill] sm:$0xff]  ;;  %v2038_v23 = vpop.permute.xlu2 %2037 }
 0x28c   : > { %3571 = vmatmul.msk.f32.gmra.mxu0 %vm1009_vm5, %v2197_v59  ;;  %v2167_v13 = vsel %vm937_vm4, %v2034_v43, %v4875_v49  ;;  %v1353_v59 = vsel %vm937_vm4, %v7055_v48, %v4402_v16  ;;  %v1772_v52 = vsel %vm333_vm1, %v1740_v55, %v4368_v18  ;;  %v5236_v27 = vpop.f32.mrf.mxu2  ;;  %v1354_v18 = vsel %vm937_vm4, %v7058_v32, %v4404_v20  ;;  %v7069_v55 = vld [vmem:[#allocation55_spill] sm:$0xff] }
 0x28d   : > { %v1385_v24 = vsel %vm333_vm1, %v1353_v59, %v7066_v46  ;;  %7067 = vst [vmem:[#allocation42_spill] sm:$0xff] %v5236_v27  ;;  %v2199_v5 = vsel %vm333_vm1, %v2167_v13, %v7068_v21  ;;  %v1773_v43 = vsel %vm333_vm1, %v1741_v58, %v4402_v16  ;;  %v1742_v59 = vsel %vm937_vm4, %v7057_v31, %v7052_v61 }
 0x28e   : > { %v1355_v16 = vsel %vm937_vm4, %v7062_v22, %v4435_v47 }
 0x28f   : > { %v1387_v46 = vsel %vm333_vm1, %v1355_v16, %v4734_v0 }
 0x293   : > { %3508 = vmatmul.msk.f32.gmra.mxu2 %vm1009_vm5, %v1384_v53  ;;  %3537 = vmatmul.msk.f32.gmra.mxu3 %vm1009_vm5, %v1771_v1  ;;  %v2036_v53 = vpop.permute.xlu1 %2035  ;;  %v2040_v61 = vpop.permute.xlu0 %2039 }
 0x294   : > { %3572 = vmatmul.msk.f32.gmra.mxu0 %vm1009_vm5, %v2198_v38  ;;  %v2168_v1 = vsel %vm937_vm4, %v2036_v53, %v4863_v17  ;;  %v1386_v38 = vsel %vm333_vm1, %v1354_v18, %v4710_v3  ;;  %v5260_v13 = vpop.f32.mrf.mxu2  ;;  %v2169_v3 = vsel %vm937_vm4, %v2038_v23, %v4792_v63  ;;  %v2170_v0 = vsel %vm937_vm4, %v2040_v61, %v4896_v7 }
 0x295   : > { %v2200_v57 = vsel %vm333_vm1, %v2168_v1, %v7069_v55  ;;  %7070 = vst [vmem:[#allocation24_spill] sm:$0xff] %v5260_v13  ;;  %v1746_v61 = vsel %vm937_vm4, %v4863_v17, %v7065_v51  ;;  %v7079_v17 = vld [vmem:[#allocation60_spill] sm:$0xff]  ;;  %v5917_v13 = vpop.f32.mrf.mxu1 }
 0x29b   : > { %3509 = vmatmul.msk.f32.gmra.mxu2 %vm1009_vm5, %v1385_v24  ;;  %3538 = vmatmul.msk.f32.gmra.mxu3 %vm1009_vm5, %v1772_v52  ;;  %v1774_v24 = vsel %vm333_vm1, %v1742_v59, %v4404_v20  ;;  %v7071_v52 = vld [vmem:[#allocation50_spill] sm:$0xff]  ;;  %v1356_v20 = vsel %vm937_vm4, %v7065_v51, %v4449_v8  ;;  %v2042_v18 = vpop.permute.xlu1 %2041  ;;  %v2044_v59 = vpop.permute.xlu2 %2043 }
 0x29c   : > { %3573 = vmatmul.msk.f32.gmra.mxu0 %vm1009_vm5, %v2199_v5  ;;  %v2201_v31 = vsel %vm333_vm1, %v2169_v3, %v7071_v52  ;;  %v1743_v5 = vsel %vm937_vm4, %v7060_v56, %v7055_v48  ;;  %v5282_v53 = vpop.f32.mrf.mxu2  ;;  %v1388_v58 = vsel %vm333_vm1, %v1356_v20, %v4683_v4  ;;  %v7073_v48 = vld [vmem:[#allocation57_spill] sm:$0xff]  ;;  %v2171_v4 = vsel %vm937_vm4, %v2042_v18, %v4921_v11 }
 0x29d   : > { %7072 = vst [vmem:[#allocation21_spill] sm:$0xff] %v5282_v53  ;;  %v1775_v1 = vsel %vm333_vm1, %v1743_v5, %v4435_v47  ;;  %v2202_v56 = vsel %vm333_vm1, %v2170_v0, %v7073_v48  ;;  %v1357_v47 = vsel %vm937_vm4, %v7068_v21, %v4451_v19  ;;  %v1745_v3 = vsel %vm937_vm4, %v4875_v49, %v7062_v22  ;;  %v7077_v49 = vld [vmem:[#allocation56_spill] sm:$0xff]  ;;  %v5931_v53 = vpop.f32.mrf.mxu1 }
 0x29e   : > { %v1359_v5 = vsel %vm937_vm4, %v7071_v52, %v4489_v36  ;;  %v1778_v20 = vsel %vm333_vm1, %v1746_v61, %v4477_v9 }
 0x29f   : > { %v1391_v0 = vsel %vm333_vm1, %v1359_v5, %v4741_v34 }
 0x2a3   : > { %3510 = vmatmul.msk.f32.gmra.mxu2 %vm1009_vm5, %v1386_v38  ;;  %3539 = vmatmul.msk.f32.gmra.mxu3 %vm1009_vm5, %v1773_v43  ;;  %v1744_v38 = vsel %vm937_vm4, %v7063_v30, %v7058_v32  ;;  %v7075_v32 = vld [vmem:[#allocation58_spill] sm:$0xff] }
 0x2a4   : > { %3574 = vmatmul.msk.f32.gmra.mxu0 %vm1009_vm5, %v2200_v57  ;;  %v5303_v43 = vpop.f32.mrf.mxu2  ;;  %v1389_v57 = vsel %vm333_vm1, %v1357_v47, %v4766_v14  ;;  %v1776_v23 = vsel %vm333_vm1, %v1744_v38, %v4449_v8  ;;  %v2203_v30 = vsel %vm333_vm1, %v2171_v4, %v7075_v32  ;;  %v2172_v14 = vsel %vm937_vm4, %v2044_v59, %v4850_v37 }
 0x2a5   : > { %7074 = vst [vmem:[#allocation18_spill] sm:$0xff] %v5303_v43  ;;  %v1358_v8 = vsel %vm937_vm4, %v7069_v55, %v4477_v9  ;;  %v2204_v22 = vsel %vm333_vm1, %v2172_v14, %v7077_v49  ;;  %v1360_v9 = vsel %vm937_vm4, %v7073_v48, %v4491_v44  ;;  %v1361_v59 = vsel %vm937_vm4, %v7075_v32, %v4523_v28 }
 0x2a6   : > { %v1390_v16 = vsel %vm333_vm1, %v1358_v8, %v4794_v26  ;;  %v1392_v38 = vsel %vm333_vm1, %v1360_v9, %v4838_v39  ;;  %v1393_v8 = vsel %vm333_vm1, %v1361_v59, %v4882_v62  ;;  %v1749_v62 = vsel %vm937_vm4, %v4921_v11, %v7071_v52 }
 0x2ab   : > { %3511 = vmatmul.msk.f32.gmra.mxu2 %vm1009_vm5, %v1387_v46  ;;  %3540 = vmatmul.msk.f32.gmra.mxu3 %vm1009_vm5, %v1774_v24  ;;  %v1777_v46 = vsel %vm333_vm1, %v1745_v3, %v4451_v19  ;;  %v5341_v19 = vpop.f32.mrf.mxu3 }
 0x2ac   : > { %3575 = vmatmul.msk.f32.gmra.mxu0 %vm1009_vm5, %v2201_v31  ;;  %v5329_v24 = vpop.f32.mrf.mxu2  ;;  %v2046_v31 = vpop.permute.xlu0 %2045  ;;  %7078 = vst [vmem:[#allocation33_spill] sm:$0xff] %v5341_v19 }
 0x2ad   : > { %7076 = vst [vmem:[#allocation39_spill] sm:$0xff] %v5329_v24  ;;  %v2173_v26 = vsel %vm937_vm4, %v2046_v31, %v4923_v42 }
 0x2ae   : > { %v2205_v51 = vsel %vm333_vm1, %v2173_v26, %v7079_v17  ;;  %v1362_v26 = vsel %vm937_vm4, %v7077_v49, %v4537_v40 }
 0x2b3   : > { %3512 = vmatmul.msk.f32.gmra.mxu2 %vm1009_vm5, %v1388_v58  ;;  %3541 = vmatmul.msk.f32.gmra.mxu3 %vm1009_vm5, %v1775_v1  ;;  %v2048_v58 = vpop.permute.xlu1 %2047  ;;  %v5369_v47 = vpop.f32.mrf.mxu3 }
 0x2b4   : > { %3576 = vmatmul.msk.f32.gmra.mxu0 %vm1009_vm5, %v2202_v56  ;;  %v5355_v1 = vpop.f32.mrf.mxu2  ;;  %v1747_v56 = vsel %vm937_vm4, %v4792_v63, %v7068_v21  ;;  %v2174_v34 = vsel %vm937_vm4, %v2048_v58, %v4948_v33  ;;  %v2052_v18 = vpop.permute.xlu0 %2051  ;;  %7080 = vst [vmem:[#allocation30_spill] sm:$0xff] %v5369_v47 }
 0x2b5   : > { %v1779_v4 = vsel %vm333_vm1, %v1747_v56, %v4489_v36  ;;  %v2206_v63 = vsel %vm333_vm1, %v2174_v34, %v4771_v2  ;;  %v2050_v21 = vpop.permute.xlu2 %2049  ;;  %v1748_v36 = vsel %vm937_vm4, %v4896_v7, %v7069_v55  ;;  %v7081_v7 = vld [vmem:[#allocation59_spill] sm:$0xff] }
 0x2bb   : > { %3513 = vmatmul.msk.f32.gmra.mxu2 %vm1009_vm5, %v1389_v57  ;;  %3542 = vmatmul.msk.f32.gmra.mxu3 %vm1009_vm5, %v1776_v23  ;;  %v5379_v57 = vld [vmem:[%s6862_s4 + $0x3] ss:$0 sm:$0xff]  ;;  %v2175_v23 = vsel %vm937_vm4, %v2050_v21, %v4928_v12  ;;  %v2054_v3 = vpop.permute.xlu1 %2053 }
 0x2bc   : > { %3577 = vmatmul.msk.f32.gmra.mxu0 %vm1009_vm5, %v2203_v30  ;;  %v5384_v39 = vpop.f32.mrf.mxu2  ;;  %v2207_v55 = vsel %vm333_vm1, %v2175_v23, %v7081_v7  ;;  %v2177_v34 = vsel %vm937_vm4, %v2054_v3, %v4975_v60 }
 0x2bd   : > { %v2056_v5 = vpop.permute.xlu2 %2055 }
 0x2c3   : > { %3514 = vmatmul.msk.f32.gmra.mxu2 %vm1009_vm5, %v1390_v16  ;;  %3543 = vmatmul.msk.f32.gmra.mxu3 %vm1009_vm5, %v1777_v46  ;;  %v1780_v16 = vsel %vm333_vm1, %v1748_v36, %v4491_v44  ;;  %v2058_v46 = vpop.permute.xlu0 %2057  ;;  %v2176_v44 = vsel %vm937_vm4, %v2052_v18, %v4957_v41  ;;  %v2060_v52 = vpop.permute.xlu1 %2059  ;;  %v7085_v36 = vld [vmem:[#allocation40_spill] sm:$0xff] }
 0x2c4   : > { %3578 = vmatmul.msk.f32.gmra.mxu0 %vm1009_vm5, %v2204_v22  ;;  %v5402_v22 = vpop.f32.mrf.mxu3  ;;  %v5409_v31 = vpop.f32.mrf.mxu2  ;;  %v2208_v11 = vsel %vm333_vm1, %v2176_v44, %v4814_v6  ;;  %v2178_v23 = vsel %vm937_vm4, %v2056_v5, %v7085_v36  ;;  %v7089_v5 = vld [vmem:[#allocation49_spill] sm:$0xff] }
 0x2c5   : > { %7082 = vst [vmem:[#allocation12_spill] sm:$0xff] %v5402_v22 }
 0x2cb   : > { %3515 = vmatmul.msk.f32.gmra.mxu2 %vm1009_vm5, %v1391_v0  ;;  %3544 = vmatmul.msk.f32.gmra.mxu3 %vm1009_vm5, %v1778_v20  ;;  %v1394_v20 = vsel %vm333_vm1, %v1362_v26, %v4869_v35  ;;  %v5425_v58 = vpop.permute.xlu0 %2063  ;;  %v1750_v35 = vsel %vm937_vm4, %v4850_v37, %v7073_v48  ;;  %v2209_v37 = vsel %vm333_vm1, %v2177_v34, %v4843_v29  ;;  %v5450_v48 = vpop.permute.xlu1 %2065 }
 0x2cc   : > { %3579 = vmatmul.msk.f32.gmra.mxu0 %vm1009_vm5, %v2205_v51  ;;  %v1781_v51 = vsel %vm333_vm1, %v1749_v62, %v4523_v28  ;;  %v5430_v56 = vpop.f32.mrf.mxu3  ;;  %v1363_v28 = vsel %vm937_vm4, %v7079_v17, %v7002_v50  ;;  %v2062_v50 = vpop.permute.xlu2 %2061  ;;  %v1752_v26 = vsel %vm937_vm4, %v4948_v33, %v7077_v49 }
 0x2cd   : > { %7083 = vst [vmem:[#allocation51_spill] sm:$0xff] %v5430_v56 }
 0x2d3   : > { %3516 = vmatmul.msk.f32.gmra.mxu2 %vm1009_vm5, %v1392_v38  ;;  %3545 = vmatmul.msk.f32.gmra.mxu3 %vm1009_vm5, %v1779_v4  ;;  %v1395_v38 = vsel %vm333_vm1, %v1363_v28, %v7013_v54  ;;  %v1782_v4 = vsel %vm333_vm1, %v1750_v35, %v4537_v40  ;;  %v1751_v40 = vsel %vm937_vm4, %v4923_v42, %v7075_v32  ;;  %v7084_v54 = vld [vmem:[#allocation46_spill] sm:$0xff]  ;;  %v7088_v32 = vld [vmem:[#allocation61_spill] sm:$0xff] }
 0x2d4   : > { %3580 = vmatmul.msk.f32.gmra.mxu0 %vm1009_vm5, %v2206_v63  ;;  %v5442_v63 = vpop.f32.mrf.mxu2  ;;  %v1364_v21 = vsel %vm937_vm4, %v4771_v2, %v7084_v54  ;;  %v5462_v59 = vpop.f32.mrf.mxu3  ;;  %v2210_v62 = vsel %vm333_vm1, %v2178_v23, %v7088_v32  ;;  %v3703_v54 = vld [vmem:[#allocation2 + $0x128] sm:$0xff] }
 0x2d5   : > { %7086 = vst [vmem:[#allocation36_spill] sm:$0xff] %v5462_v59 }
 0x2d9   : > { %v2347_v30 = vpop.f32.mrf.mxu0 }
 0x2da   : > { %v2348_v14 = vadd.f32 %v5379_v57, %v2347_v30  ;;  %v5460_v30 = vpop.permute.xlu0 %2069 }
 0x2db   : > { %3517 = vmatmul.msk.f32.gmra.mxu2 %vm1009_vm5, %v1393_v8  ;;  %3546 = vmatmul.msk.f32.gmra.mxu3 %vm1009_vm5, %v1780_v16  ;;  %v7087_v8 = vld [vmem:[#allocation26_spill] sm:$0xff] }
 0x2dc   : > { %2871 = vrot.lane.b32.xlu2 %v2348_v14, %s3829_s20  ;;  %3581 = vmatmul.msk.f32.gmra.mxu0 %vm1009_vm5, %v2207_v55  ;;  %v1396_v16 = vsel %vm333_vm1, %v1364_v21, %v7087_v8  ;;  %v3701_v55 = vld [vmem:[#allocation2 + $0x110] sm:$0xff]  ;;  %v5474_v44 = vpop.f32.mrf.mxu2  ;;  %v5494_v49 = vpop.f32.mrf.mxu3  ;;  %v1366_v21 = vsel %vm937_vm4, %v4814_v6, %v3703_v54 }
 0x2dd   : > { %v1783_v42 = vsel %vm333_vm1, %v1751_v40, %v3701_v55  ;;  %7092 = vst [vmem:[#allocation35_spill] sm:$0xff] %v5494_v49 }
 0x2e1   : > { %v2350_v61 = vpop.f32.mrf.mxu0 }
 0x2e2   : > { %v2351_v0 = vadd.f32 %v5379_v57, %v2350_v61  ;;  %v5476_v61 = vpop.permute.xlu2 %2067  ;;  %v5488_v28 = vpop.permute.xlu0 %2075 }
 0x2e3   : > { %3518 = vmatmul.msk.f32.gmra.mxu2 %vm1009_vm5, %v1394_v20  ;;  %3547 = vmatmul.msk.f32.gmra.mxu3 %vm1009_vm5, %v1781_v51  ;;  %v7090_v20 = vld [vmem:[#allocation11_spill] sm:$0xff] }
 0x2e4   : > { %2873 = vrot.lane.b32.xlu0 %v2351_v0, %s3829_s20  ;;  %3582 = vmatmul.msk.f32.gmra.mxu0 %vm1009_vm5, %v2208_v11  ;;  %v1365_v0 = vsel %vm937_vm4, %v7081_v7, %v7089_v5  ;;  %v2179_v51 = vsel %vm937_vm4, %v2058_v46, %v7090_v20  ;;  %v5486_v11 = vpop.permute.xlu1 %2071  ;;  %v7093_v46 = vld [vmem:[#allocation63_spill] sm:$0xff]  ;;  %v5505_v40 = vpop.f32.mrf.mxu2 }
 0x2e9   : > { %v2353_v9 = vpop.f32.mrf.mxu0 }
 0x2ea   : > { %v2354_v18 = vadd.f32 %v5379_v57, %v2353_v9  ;;  %v7091_v9 = vld [vmem:[#allocation10_spill] sm:$0xff]  ;;  %v5509_v23 = vpop.permute.xlu2 %2073 }
 0x2eb   : > { %3519 = vmatmul.msk.f32.gmra.mxu2 %vm1009_vm5, %v1395_v38  ;;  %3548 = vmatmul.msk.f32.gmra.mxu3 %vm1009_vm5, %v1782_v4  ;;  %v3702_v38 = vld [vmem:[#allocation2 + $0x118] sm:$0xff]  ;;  %v2211_v4 = vsel %vm333_vm1, %v2179_v51, %v7093_v46  ;;  %v1754_v51 = vsel %vm937_vm4, %v4957_v41, %v4771_v2 }
 0x2ec   : > { %2875 = vrot.lane.b32.xlu1 %v2354_v18, %s3829_s20  ;;  %3583 = vmatmul.msk.f32.gmra.mxu0 %vm1009_vm5, %v2209_v37  ;;  %v1397_v18 = vsel %vm333_vm1, %v1365_v0, %v7091_v9  ;;  %v1784_v33 = vsel %vm333_vm1, %v1752_v26, %v3702_v38  ;;  %v1753_v37 = vsel %vm937_vm4, %v4928_v12, %v7079_v17  ;;  %v3704_v12 = vld [vmem:[#allocation2 + $0x120] sm:$0xff]  ;;  %v7096_v26 = vld [vmem:[#allocation64_spill] sm:$0xff]  ;;  %v2114_v0 = vpop.permute.xlu0 %2113  ;;  %v7098_v9 = vld [vmem:[#allocation25_spill] sm:$0xff]  ;;  %v5535_v38 = vpop.f32.mrf.mxu2 }
 0x2ed   : > { %v1785_v17 = vsel %vm333_vm1, %v1753_v37, %v3704_v12  ;;  %v7100_v2 = vld [vmem:[#allocation65_spill] sm:$0xff] }
 0x2f1   : > { %v2356_v3 = vpop.f32.mrf.mxu0 }
 0x2f2   : > { %v2357_v14 = vadd.f32 %v5379_v57, %v2356_v3  ;;  %v7094_v3 = vld [vmem:[#allocation48_spill] sm:$0xff] }
 0x2f3   : > { %3520 = vmatmul.msk.f32.gmra.mxu2 %vm1009_vm5, %v1396_v16  ;;  %3549 = vmatmul.msk.f32.gmra.mxu3 %vm1009_vm5, %v1783_v42  ;;  %v5513_v16 = vpop.permute.xlu1 %2077  ;;  %v7095_v42 = vld [vmem:[#allocation14_spill] sm:$0xff] }
 0x2f4   : > { %2877 = vrot.lane.b32.xlu2 %v2357_v14, %s3829_s20  ;;  %3584 = vmatmul.msk.f32.gmra.mxu0 %vm1009_vm5, %v2210_v62  ;;  %v2180_v14 = vsel %vm937_vm4, %v2060_v52, %v7094_v3  ;;  %v1398_v62 = vsel %vm333_vm1, %v1366_v21, %v7095_v42  ;;  %v5525_v52 = vpop.f32.mrf.mxu3  ;;  %v7099_v21 = vld [vmem:[#allocation8_spill] sm:$0xff]  ;;  %v1755_v42 = vsel %vm937_vm4, %v4975_v60, %v7081_v7  ;;  %v5567_v60 = vpop.f32.mrf.mxu2  ;;  %v7104_v7 = vld [vmem:[#allocation9_spill] sm:$0xff] }
 0x2f5   : > { %v2212_v5 = vsel %vm333_vm1, %v2180_v14, %v7096_v26 }
 0x2f9   : > { %v2359_v35 = vpop.f32.mrf.mxu0 }
 0x2fa   : > { %v2360_v34 = vadd.f32 %v5379_v57, %v2359_v35  ;;  %v7097_v35 = vld [vmem:[#allocation29_spill] sm:$0xff] }
 0x2fb   : > { %3521 = vmatmul.msk.f32.gmra.mxu2 %vm1009_vm5, %v1397_v18  ;;  %3550 = vmatmul.msk.f32.gmra.mxu3 %vm1009_vm5, %v1784_v33  ;;  %v2181_v18 = vsel %vm937_vm4, %v2062_v50, %v7098_v9  ;;  %v2116_v50 = vpop.permute.xlu1 %2115 }
 0x2fc   : > { %2879 = vrot.lane.b32.xlu0 %v2360_v34, %s3829_s20  ;;  %3585 = vmatmul.msk.f32.gmra.mxu0 %vm1009_vm5, %v2211_v4  ;;  %v1367_v34 = vsel %vm937_vm4, %v4843_v29, %v7097_v35  ;;  %v5537_v4 = vpop.permute.xlu2 %2079  ;;  %v2213_v41 = vsel %vm333_vm1, %v2181_v18, %v7100_v2  ;;  %v7103_v18 = vld [vmem:[#allocation13_spill] sm:$0xff] }
 0x2fd   : > { %v1399_v14 = vsel %vm333_vm1, %v1367_v34, %v7099_v21 }
 0x301   : > { %v2362_v8 = vpop.f32.mrf.mxu0 }
 0x302   : > { %v2363_v55 = vadd.f32 %v5379_v57, %v2362_v8  ;;  %v1786_v8 = vsel %vm333_vm1, %v1754_v51, %v3703_v54  ;;  %v7101_v54 = vld [vmem:[#allocation22_spill] sm:$0xff] }
 0x303   : > { %3522 = vmatmul.msk.f32.gmra.mxu2 %vm1009_vm5, %v1398_v62  ;;  %3551 = vmatmul.msk.f32.gmra.mxu3 %vm1009_vm5, %v1785_v17  ;;  %v5554_v62 = vpop.f32.mrf.mxu3  ;;  %v1368_v12 = vsel %vm937_vm4, %v7088_v32, %v7101_v54  ;;  %v7102_v17 = vld [vmem:[#allocation27_spill] sm:$0xff] }
 0x304   : > { %2881 = vrot.lane.b32.xlu1 %v2363_v55, %s3829_s20  ;;  %3586 = vmatmul.msk.f32.gmra.mxu0 %vm1009_vm5, %v2212_v5  ;;  %v5549_v55 = vpop.permute.xlu0 %2119  ;;  %v2182_v5 = vsel %vm937_vm4, %v5425_v58, %v7102_v17  ;;  %v5575_v58 = vpop.permute.xlu1 %2121 }
 0x305   : > { %v2214_v21 = vsel %vm333_vm1, %v2182_v5, %v7104_v7 }
 0x309   : > { %v2365_v33 = vpop.f32.mrf.mxu0 }
 0x30a   : > { %v2366_v37 = vadd.f32 %v5379_v57, %v2365_v33  ;;  %v1400_v33 = vsel %vm333_vm1, %v1368_v12, %v7103_v18  ;;  %v7105_v12 = vld [vmem:[#allocation31_spill] sm:$0xff] }
 0x30b   : > { %3523 = vmatmul.msk.f32.gmra.mxu2 %vm1009_vm5, %v1399_v14  ;;  %3552 = vmatmul.msk.f32.gmra.mxu3 %vm1009_vm5, %v1786_v8  ;;  %v2118_v14 = vpop.permute.xlu2 %2117 }
 0x30c   : > { %2883 = vrot.lane.b32.xlu2 %v2366_v37, %s3829_s20  ;;  %3587 = vmatmul.msk.f32.gmra.mxu0 %vm1009_vm5, %v2213_v41  ;;  %v1787_v37 = vsel %vm333_vm1, %v1755_v42, %v7097_v35  ;;  %v1756_v35 = vsel %vm937_vm4, %v7085_v36, %v4814_v6  ;;  %v2136_v8 = vpop.permute.xlu0 %2135  ;;  %v5580_v41 = vpop.f32.mrf.mxu3  ;;  %v1757_v36 = vsel %vm937_vm4, %v7090_v20, %v4843_v29 }
 0x30d   : > { %v1758_v29 = vsel %vm937_vm4, %v7094_v3, %v7088_v32  ;;  %v2185_v20 = vsel %vm937_vm4, %v5460_v30, %v2114_v0  ;;  %v1759_v30 = vsel %vm937_vm4, %v7098_v9, %v7093_v46  ;;  %v2186_v0 = vsel %vm937_vm4, %v5486_v11, %v2116_v50 }
 0x30e   : > { %v1760_v46 = vsel %vm937_vm4, %v7102_v17, %v7096_v26  ;;  %v1761_v26 = vsel %vm937_vm4, %v7105_v12, %v7100_v2 }
 0x311   : > { %v2368_v51 = vpop.f32.mrf.mxu0 }
 0x312   : > { %v2369_v34 = vadd.f32 %v5379_v57, %v2368_v51  ;;  %v2183_v51 = vsel %vm937_vm4, %v5450_v48, %v7105_v12  ;;  %v2138_v48 = vpop.permute.xlu1 %2137  ;;  %v2189_v12 = vsel %vm937_vm4, %v5513_v16, %v5575_v58 }
 0x313   : > { %3524 = vmatmul.msk.f32.gmra.mxu2 %vm1009_vm5, %v1400_v33  ;;  %3553 = vmatmul.msk.f32.gmra.mxu3 %vm1009_vm5, %v1787_v37  ;;  %v2215_v18 = vsel %vm333_vm1, %v2183_v51, %v2136_v8  ;;  %v5592_v6 = vpop.permute.xlu2 %2123  ;;  %v7106_v37 = vld [vmem:[#allocation6_spill] sm:$0xff] }
 0x314   : > { %2885 = vrot.lane.b32.xlu0 %v2369_v34, %s3829_s20  ;;  %3588 = vmatmul.msk.f32.gmra.mxu0 %vm1009_vm5, %v2214_v21  ;;  %v1788_v34 = vsel %vm333_vm1, %v1756_v35, %v7101_v54  ;;  %v2184_v54 = vsel %vm937_vm4, %v5476_v61, %v7106_v37  ;;  %v7107_v35 = vld [vmem:[#allocation19_spill] sm:$0xff]  ;;  %v5604_v51 = vpop.f32.mrf.mxu3  ;;  %v2142_v32 = vpop.permute.xlu0 %2141  ;;  %v2190_v16 = vsel %vm937_vm4, %v5537_v4, %v5592_v6  ;;  %v7113_v6 = vld [vmem:[#allocation62_spill] sm:$0xff] }
 0x315   : > { %v1789_v8 = vsel %vm333_vm1, %v1757_v36, %v7107_v35 }
 0x319   : > { %v2371_v42 = vpop.f32.mrf.mxu0 }
 0x31a   : > { %v2372_v5 = vadd.f32 %v5379_v57, %v2371_v42  ;;  %v2216_v42 = vsel %vm333_vm1, %v2184_v54, %v2138_v48  ;;  %v2144_v11 = vpop.permute.xlu1 %2143 }
 0x31b   : > { %3554 = vmatmul.msk.f32.gmra.mxu3 %vm1009_vm5, %v1788_v34  ;;  %v2140_v61 = vpop.permute.xlu2 %2139 }
 0x31c   : > { %2887 = vrot.lane.b32.xlu1 %v2372_v5, %s3829_s20  ;;  %3589 = vmatmul.msk.f32.gmra.mxu0 %vm1009_vm5, %v2215_v18  ;;  %v7108_v18 = vld [vmem:[#allocation16_spill] sm:$0xff]  ;;  %v2217_v48 = vsel %vm333_vm1, %v2185_v20, %v2140_v61  ;;  %v7110_v61 = vld [vmem:[#allocation7_spill] sm:$0xff]  ;;  %v2148_v2 = vpop.permute.xlu0 %2147 }
 0x31d   : > { %v1790_v36 = vsel %vm333_vm1, %v1758_v29, %v7108_v18  ;;  %v1792_v20 = vsel %vm333_vm1, %v1760_v46, %v7110_v61 }
 0x321   : > { %v2374_v33 = vpop.f32.mrf.mxu0 }
 0x322   : > { %v2375_v21 = vadd.f32 %v5379_v57, %v2374_v33  ;;  %v5621_v33 = vpop.f32.mrf.mxu3 }
 0x323   : > { %3555 = vmatmul.msk.f32.gmra.mxu3 %vm1009_vm5, %v1789_v8  ;;  %v2218_v8 = vsel %vm333_vm1, %v2186_v0, %v2142_v32  ;;  %v2146_v17 = vpop.permute.xlu2 %2145 }
 0x324   : > { %2889 = vrot.lane.b32.xlu2 %v2375_v21, %s3829_s20  ;;  %3590 = vmatmul.msk.f32.gmra.mxu0 %vm1009_vm5, %v2216_v42  ;;  %v7109_v21 = vld [vmem:[#allocation28_spill] sm:$0xff]  ;;  %v2187_v42 = vsel %vm937_vm4, %v5509_v23, %v2118_v14  ;;  %v2188_v23 = vsel %vm937_vm4, %v5488_v28, %v5549_v55  ;;  %v1762_v28 = vsel %vm937_vm4, %v7106_v37, %v7104_v7  ;;  %v2150_v7 = vpop.permute.xlu1 %2149 }
 0x325   : > { %v1791_v35 = vsel %vm333_vm1, %v1759_v30, %v7109_v21  ;;  %v2220_v30 = vsel %vm333_vm1, %v2188_v23, %v2146_v17  ;;  %v5701_v17 = vld [vmem:[#allocation2 + $0x50] sm:$0xff]  ;;  %v5709_v23 = vld [vmem:[%s6862_s4 + $0x1] ss:$0 sm:$0xff] }
 0x329   : > { %v2377_v5 = vpop.f32.mrf.mxu0 }
 0x32a   : > { %v2378_v34 = vadd.f32 %v5379_v57, %v2377_v5  ;;  %v5638_v9 = vpop.f32.mrf.mxu3  ;;  %v2219_v5 = vsel %vm333_vm1, %v2187_v42, %v2144_v11 }
 0x32b   : > { %3556 = vmatmul.msk.f32.gmra.mxu3 %vm1009_vm5, %v1790_v36  ;;  %v7111_v36 = vld [vmem:[#allocation66_spill] sm:$0xff] }
 0x32c   : > { %2891 = vrot.lane.b32.xlu0 %v2378_v34, %s3829_s20  ;;  %3591 = vmatmul.msk.f32.gmra.mxu0 %vm1009_vm5, %v2217_v48  ;;  %v1793_v48 = vsel %vm333_vm1, %v1761_v26, %v7111_v36 }
 0x331   : > { %v2380_v3 = vpop.f32.mrf.mxu0 }
 0x332   : > { %v2381_v54 = vadd.f32 %v5379_v57, %v2380_v3  ;;  %v5655_v14 = vpop.f32.mrf.mxu3  ;;  %v7112_v3 = vld [vmem:[#allocation67_spill] sm:$0xff] }
 0x333   : > { %3557 = vmatmul.msk.f32.gmra.mxu3 %vm1009_vm5, %v1791_v35  ;;  %v1794_v0 = vsel %vm333_vm1, %v1762_v28, %v7112_v3  ;;  %v2222_v35 = vsel %vm333_vm1, %v2190_v16, %v2150_v7  ;;  %v5733_v3 = vld [vmem:[#allocation2 + $0x60] sm:$0xff]  ;;  %v5745_v16 = vld [vmem:[#allocation2 + $0x68] sm:$0xff] }
 0x334   : > { %2893 = vrot.lane.b32.xlu1 %v2381_v54, %s3829_s20  ;;  %3592 = vmatmul.msk.f32.gmra.mxu0 %vm1009_vm5, %v2218_v8  ;;  %v2221_v54 = vsel %vm333_vm1, %v2189_v12, %v2148_v2  ;;  %v5719_v2 = vpop.f32.mrf.mxu2  ;;  %v1532_v12 = vadd.f32 %v5709_v23, %v5409_v31  ;;  %v1535_v31 = vadd.f32 %v5709_v23, %v5442_v63 }
 0x339   : > { %v2383_v50 = vpop.f32.mrf.mxu0 }
 0x33a   : > { %v2384_v29 = vadd.f32 %v5379_v57, %v2383_v50  ;;  %v5674_v21 = vpop.f32.mrf.mxu3 }
 0x33b   : > { %3558 = vmatmul.msk.f32.gmra.mxu3 %vm1009_vm5, %v1792_v20  ;;  %v5696_v20 = vld [vmem:[#allocation2 + $0x48] sm:$0xff] }
 0x33c   : > { %2895 = vrot.lane.b32.xlu2 %v2384_v29, %s3829_s20  ;;  %3593 = vmatmul.msk.f32.gmra.mxu0 %vm1009_vm5, %v2219_v5 }
 0x341   : > { %v2386_v34 = vpop.f32.mrf.mxu0 }
 0x342   : > { %v2387_v18 = vadd.f32 %v5379_v57, %v2386_v34 }
 0x343   : > { %3559 = vmatmul.msk.f32.gmra.mxu3 %vm1009_vm5, %v1793_v48 }
 0x344   : > { %2897 = vrot.lane.b32.xlu0 %v2387_v18, %s3829_s20  ;;  %3594 = vmatmul.msk.f32.gmra.mxu0 %vm1009_vm5, %v2220_v30  ;;  %v1526_v18 = vadd.f32 %v5709_v23, %v5355_v1  ;;  %v1529_v30 = vadd.f32 %v5709_v23, %v5384_v39  ;;  %v5730_v39 = vpop.permute.xlu2 %2510 }
 0x349   : > { %v2389_v55 = vpop.f32.mrf.mxu0 }
 0x34a   : > { %v2390_v32 = vadd.f32 %v5379_v57, %v2389_v55  ;;  %v5723_v55 = vld [vmem:[#allocation2 + $0x58] sm:$0xff] }
 0x34b   : > { %3560 = vmatmul.msk.f32.gmra.mxu3 %vm1009_vm5, %v1794_v0  ;;  %v5737_v0 = vpop.f32.mrf.mxu2 }
 0x34c   : > { %2899 = vrot.lane.b32.xlu1 %v2390_v32, %s3829_s20  ;;  %3595 = vmatmul.msk.f32.gmra.mxu0 %vm1009_vm5, %v2221_v54 }
 0x351   : > { %v2392_v37 = vpop.f32.mrf.mxu0 }
 0x352   : > { %v2393_v58 = vadd.f32 %v5379_v57, %v2392_v37  ;;  %v5743_v37 = vpop.permute.xlu2 %2871 }
 0x354   : > { %2901 = vrot.lane.b32.xlu2 %v2393_v58, %s3829_s20  ;;  %3596 = vmatmul.msk.f32.gmra.mxu0 %vm1009_vm5, %v2222_v35  ;;  %v5751_v58 = vpop.f32.mrf.mxu2  ;;  %v5753_v35 = vpop.f32.mrf.mxu3 }
 0x359   : > { %v2395_v8 = vpop.f32.mrf.mxu0 }
 0x35a   : > { %v2396_v46 = vadd.f32 %v5379_v57, %v2395_v8 }
 0x35c   : > { %2903 = vrot.lane.b32.xlu0 %v2396_v46, %s3829_s20  ;;  %v1538_v46 = vadd.f32 %v5709_v23, %v5474_v44 }
 0x361   : > { %v2398_v11 = vpop.f32.mrf.mxu0 }
 0x362   : > { %v2399_v50 = vadd.f32 %v5379_v57, %v2398_v11  ;;  %v5758_v11 = vpop.permute.xlu2 %2877 }
 0x364   : > { %2905 = vrot.lane.b32.xlu1 %v2399_v50, %s3829_s20  ;;  %v5762_v50 = vld [vmem:[#allocation2 + $0x70] sm:$0xff] }
 0x369   : > { %v2401_v42 = vpop.f32.mrf.mxu0 }
 0x36a   : > { %v2402_v4 = vadd.f32 %v5379_v57, %v2401_v42  ;;  %v5766_v42 = vpop.f32.mrf.mxu2 }
 0x36c   : > { %2907 = vrot.lane.b32.xlu2 %v2402_v4, %s3829_s20  ;;  %3129 = vrot.lane.b32.xlu1 %v7113_v6, %s3830_s21  ;;  %v1541_v6 = vadd.f32 %v5709_v23, %v5505_v40 }
 0x371   : > { %v2404_v29 = vpop.f32.mrf.mxu0 }
 0x372   : > { %v2405_v61 = vadd.f32 %v5379_v57, %v2404_v29  ;;  %v5771_v29 = vpop.f32.mrf.mxu3 }
 0x374   : > { %2909 = vrot.lane.b32.xlu0 %v2405_v61, %s3829_s20  ;;  %3131 = vrot.lane.b32.xlu2 %v5696_v20, %s3830_s21  ;;  %v5773_v61 = vpop.permute.xlu2 %2883 }
 0x379   : > { %v2407_v5 = vpop.f32.mrf.mxu0 }
 0x37a   : > { %v2408_v26 = vadd.f32 %v5379_v57, %v2407_v5  ;;  %v5776_v5 = vld [vmem:[#allocation2 + $0x78] sm:$0xff] }
 0x37c   : > { %3133 = vrot.lane.b32.xlu0 %v5701_v17, %s3830_s21  ;;  %2911 = vrot.lane.b32.xlu1 %v2408_v26, %s3829_s20  ;;  %v5784_v26 = vld [vmem:[%s6862_s4 + $0x2] ss:$0 sm:$0xff] }
 0x381   : > { %v2410_v34 = vpop.f32.mrf.mxu0 }
 0x382   : > { %v2411_v36 = vadd.f32 %v5379_v57, %v2410_v34  ;;  %v1920_v34 = vadd.f32 %v5784_v26, %v5525_v52 }
 0x384   : > { %2913 = vrot.lane.b32.xlu2 %v2411_v36, %s3829_s20  ;;  %2615 = vrot.lane.b32.xlu1 %v1526_v18, %s3825_s30  ;;  %v1544_v36 = vadd.f32 %v5709_v23, %v5535_v38 }
 0x389   : > { %v2413_v48 = vpop.f32.mrf.mxu0 }
 0x38a   : > { %v2414_v28 = vadd.f32 %v5379_v57, %v2413_v48  ;;  %v5791_v48 = vpop.permute.xlu0 %2548 }
 0x38c   : > { %2915 = vrot.lane.b32.xlu0 %v2414_v28, %s3829_s20  ;;  %2617 = vrot.lane.b32.xlu2 %v1529_v30, %s3825_s30  ;;  %v1561_v30 = vpop.f32.mrf.mxu2  ;;  %v5793_v28 = vpop.permute.xlu1 %2875 }
 0x38d   : > { %3135 = vrot.lane.b32.xlu1 %v5723_v55, %s3830_s21 }
 0x391   : > { %v2416_v1 = vpop.f32.mrf.mxu0 }
 0x392   : > { %v2417_v32 = vadd.f32 %v5379_v57, %v2416_v1  ;;  %v5795_v1 = vpop.permute.xlu2 %2889 }
 0x393   : > { %7114 = vst [vmem:[#allocation17_spill] sm:$0xff] %v5795_v1 }
 0x394   : > { %2619 = vrot.lane.b32.xlu0 %v1532_v12, %s3825_s30  ;;  %3137 = vrot.lane.b32.xlu2 %v5733_v3, %s3830_s21  ;;  %v5799_v12 = vpop.f32.mrf.mxu3 }
 0x395   : > { %2917 = vrot.lane.b32.xlu1 %v2417_v32, %s3829_s20  ;;  %v1547_v32 = vadd.f32 %v5709_v23, %v5567_v60 }
 0x399   : > { %v2419_v54 = vpop.f32.mrf.mxu0 }
 0x39a   : > { %v2420_v7 = vadd.f32 %v5379_v57, %v2419_v54  ;;  %v1923_v54 = vadd.f32 %v5784_v26, %v5554_v62  ;;  %v1926_v62 = vadd.f32 %v5784_v26, %v5580_v41  ;;  %v1929_v41 = vadd.f32 %v5784_v26, %v5604_v51 }
 0x39b   : > { %v1556_v51 = vadd.f32 %v5709_v23, %v5751_v58  ;;  %v1562_v58 = vadd.f32 %v5709_v23, %v1561_v30  ;;  %v7126_v30 = vld [vmem:[#allocation37_spill] sm:$0xff] }
 0x39c   : > { %3139 = vrot.lane.b32.xlu0 %v5745_v16, %s3830_s21  ;;  %2919 = vrot.lane.b32.xlu2 %v2420_v7, %s3829_s20  ;;  %v5807_v7 = vpop.permute.xlu0 %2873 }
 0x39d   : > { %2621 = vrot.lane.b32.xlu1 %v1535_v31, %s3825_s30  ;;  %v5809_v31 = vpop.permute.xlu1 %2881 }
 0x3a1   : > { %v2422_v8 = vpop.f32.mrf.mxu0 }
 0x3a2   : > { %v2423_v63 = vadd.f32 %v5379_v57, %v2422_v8  ;;  %v5811_v8 = vpop.permute.xlu2 %2895 }
 0x3a3   : > { %7115 = vst [vmem:[#allocation34_spill] sm:$0xff] %v5811_v8  ;;  %v3718_v8 = vld [vmem:[#allocation2 + $0x40] sm:$0xff] }
 0x3a4   : > { %2921 = vrot.lane.b32.xlu0 %v2423_v63, %s3829_s20  ;;  %2623 = vrot.lane.b32.xlu2 %v1538_v46, %s3825_s30  ;;  %v1564_v46 = vpop.f32.mrf.mxu2  ;;  %v5816_v63 = vpop.f32.mrf.mxu3 }
 0x3a5   : > { %3141 = vrot.lane.b32.xlu1 %v5762_v50, %s3830_s21 }
 0x3a9   : > { %v2425_v4 = vpop.f32.mrf.mxu0 }
 0x3aa   : > { %v2426_v44 = vadd.f32 %v5379_v57, %v2425_v4  ;;  %v1550_v4 = vadd.f32 %v5709_v23, %v5719_v2 }
 0x3ac   : > { %2625 = vrot.lane.b32.xlu0 %v1541_v6, %s3825_s30  ;;  %3143 = vrot.lane.b32.xlu2 %v5776_v5, %s3830_s21 }
 0x3ad   : > { %2923 = vrot.lane.b32.xlu1 %v2426_v44, %s3829_s20  ;;  %v5823_v44 = vpop.permute.xlu0 %2879 }
 0x3b1   : > { %v2428_v40 = vpop.f32.mrf.mxu0 }
 0x3b2   : > { %v2429_v18 = vadd.f32 %v5379_v57, %v2428_v40  ;;  %v5825_v40 = vpop.permute.xlu1 %2887 }
 0x3b4   : > { %2743 = vrot.lane.b32.xlu0 %v1920_v34, %s3824_s23  ;;  %2925 = vrot.lane.b32.xlu2 %v2429_v18, %s3829_s20  ;;  %v5827_v34 = vpop.permute.xlu2 %2901  ;;  %v1567_v18 = vpop.f32.mrf.mxu2 }
 0x3b5   : > { %2627 = vrot.lane.b32.xlu1 %v1544_v36, %s3825_s30  ;;  %7116 = vst [vmem:[#allocation32_spill] sm:$0xff] %v5827_v34  ;;  %v5832_v36 = vpop.f32.mrf.mxu3 }
 0x3b9   : > { %v2431_v52 = vpop.f32.mrf.mxu0 }
 0x3ba   : > { %v2432_v38 = vadd.f32 %v5379_v57, %v2431_v52 }
 0x3bc   : > { %2927 = vrot.lane.b32.xlu0 %v2432_v38, %s3829_s20  ;;  %2629 = vrot.lane.b32.xlu2 %v1547_v32, %s3825_s30  ;;  %v1553_v32 = vadd.f32 %v5709_v23, %v5737_v0  ;;  %v5839_v38 = vpop.permute.xlu0 %2885  ;;  %v1932_v0 = vadd.f32 %v5784_v26, %v5621_v33  ;;  %v1935_v33 = vadd.f32 %v5784_v26, %v5638_v9 }
 0x3bd   : > { %2745 = vrot.lane.b32.xlu1 %v1923_v54, %s3824_s23  ;;  %7117 = vst [vmem:[#allocation41_spill] sm:$0xff] %v5839_v38  ;;  %v5841_v54 = vpop.permute.xlu1 %2893  ;;  %v1938_v9 = vadd.f32 %v5784_v26, %v5655_v14  ;;  %v1565_v14 = vadd.f32 %v5709_v23, %v1564_v46  ;;  %v1568_v46 = vadd.f32 %v5709_v23, %v1567_v18 }
 0x3be   : > { %7118 = vst [vmem:[#allocation38_spill] sm:$0xff] %v5841_v54 }
 0x3c1   : > { %v2434_v60 = vpop.f32.mrf.mxu0 }
 0x3c2   : > { %v2435_v6 = vadd.f32 %v5379_v57, %v2434_v60 }
 0x3c4   : > { %2631 = vrot.lane.b32.xlu0 %v1550_v4, %s3825_s30  ;;  %2747 = vrot.lane.b32.xlu2 %v1926_v62, %s3824_s23  ;;  %v1570_v4 = vpop.f32.mrf.mxu2  ;;  %v5855_v49 = vpop.permute.xlu0 %2891 }
 0x3c5   : > { %2929 = vrot.lane.b32.xlu1 %v2435_v6, %s3829_s20  ;;  %7120 = vst [vmem:[#allocation54_spill] sm:$0xff] %v5855_v49  ;;  %v5857_v59 = vpop.permute.xlu1 %2899 }
 0x3c6   : > { %v5843_v60 = vpop.permute.xlu2 %2907  ;;  %7121 = vst [vmem:[#allocation44_spill] sm:$0xff] %v5857_v59  ;;  %v2445_v59 = vmax.f32 %v3718_v8, %v5701_v17 }
 0x3c7   : > { %7119 = vst [vmem:[#allocation47_spill] sm:$0xff] %v5843_v60  ;;  %v5951_v60 = vld [vmem:[#allocation2 + $0x98] sm:$0xff] }
 0x3c8   : > { %7132 = vst [vmem:[#allocation60_spill] sm:$0xff] %v5951_v60 }
 0x3c9   : > { %v2437_v2 = vpop.f32.mrf.mxu0 }
 0x3ca   : > { %v2438_v52 = vadd.f32 %v5379_v57, %v2437_v2  ;;  %v5853_v2 = vpop.f32.mrf.mxu3 }
 0x3cc   : > { %2749 = vrot.lane.b32.xlu0 %v1929_v41, %s3824_s23  ;;  %2931 = vrot.lane.b32.xlu2 %v2438_v52, %s3829_s20  ;;  %v1573_v52 = vpop.f32.mrf.mxu2 }
 0x3cd   : > { %2633 = vrot.lane.b32.xlu1 %v1553_v32, %s3825_s30  ;;  %v5869_v32 = vpop.permute.xlu0 %2897 }
 0x3ce   : > { %v5862_v41 = vpop.permute.xlu2 %3131  ;;  %7122 = vst [vmem:[#allocation45_spill] sm:$0xff] %v5869_v32 }
 0x3d1   : > { %v2440_v62 = vpop.f32.mrf.mxu0 }
 0x3d2   : > { %v2441_v6 = vadd.f32 %v5379_v57, %v2440_v62  ;;  %v1559_v57 = vadd.f32 %v5709_v23, %v5766_v42 }
 0x3d4   : > { %2933 = vrot.lane.b32.xlu0 %v2441_v6, %s3829_s20  ;;  %2635 = vrot.lane.b32.xlu2 %v1556_v51, %s3825_s30  ;;  %v5876_v51 = vpop.f32.mrf.mxu3 }
 0x3d5   : > { %2751 = vrot.lane.b32.xlu1 %v1932_v0, %s3824_s23  ;;  %v5882_v42 = vpop.permute.xlu0 %2903  ;;  %v1576_v0 = vpop.f32.mrf.mxu2 }
 0x3d6   : > { %v5871_v62 = vpop.permute.xlu1 %2905  ;;  %7125 = vst [vmem:[#allocation53_spill] sm:$0xff] %v5882_v42  ;;  %v1577_v10 = vadd.f32 %v5709_v23, %v1576_v0 }
 0x3d7   : > { %7123 = vst [vmem:[#allocation43_spill] sm:$0xff] %v5871_v62 }
 0x3dc   : > { %2637 = vrot.lane.b32.xlu0 %v1559_v57, %s3825_s30  ;;  %2753 = vrot.lane.b32.xlu2 %v1935_v33, %s3824_s23  ;;  %v5887_v57 = vld [vmem:[#allocation2 + $0x88] sm:$0xff]  ;;  %v5895_v56 = vpop.f32.mrf.mxu3 }
 0x3dd   : > { %2639 = vrot.lane.b32.xlu1 %v1562_v58, %s3825_s30  ;;  %v1579_v43 = vpop.f32.mrf.mxu2 }
 0x3de   : > { %v5878_v6 = vpop.permute.xlu2 %2913  ;;  %v5891_v33 = vpop.permute.xlu1 %3129  ;;  %v1580_v45 = vadd.f32 %v5709_v23, %v1579_v43  ;;  %v1956_v43 = vadd.f32 %v5784_v26, %v5832_v36 }
 0x3df   : > { %7124 = vst [vmem:[#allocation52_spill] sm:$0xff] %v5878_v6  ;;  %v1571_v6 = vadd.f32 %v5709_v23, %v1570_v4  ;;  %v5938_v4 = vld [vmem:[#allocation2 + $0xa0] sm:$0xff] }
 0x3e0   : > { %7130 = vst [vmem:[#allocation58_spill] sm:$0xff] %v5938_v4 }
 0x3e4   : > { %2755 = vrot.lane.b32.xlu0 %v1938_v9, %s3824_s23  ;;  %3149 = vrot.lane.b32.xlu2 %v7126_v30, %s3830_s21  ;;  %v1941_v9 = vadd.f32 %v5784_v26, %v5674_v21  ;;  %v5902_v30 = vld [vmem:[#allocation2 + $0x80] sm:$0xff]  ;;  %v1944_v21 = vadd.f32 %v5784_v26, %v5753_v35  ;;  %v5915_v19 = vpop.f32.mrf.mxu3  ;;  %v1947_v35 = vadd.f32 %v5784_v26, %v5771_v29 }
 0x3e5   : > { %3147 = vrot.lane.b32.xlu1 %v5887_v57, %s3830_s21  ;;  %v1582_v27 = vpop.f32.mrf.mxu2 }
 0x3e6   : > { %v5893_v58 = vpop.permute.xlu2 %2617  ;;  %v5900_v22 = vpop.permute.xlu0 %2909 }
 0x3e7   : > { %7127 = vst [vmem:[#allocation55_spill] sm:$0xff] %v5900_v22 }
 0x3ec   : > { %3145 = vrot.lane.b32.xlu0 %v5902_v30, %s3830_s21  ;;  %2641 = vrot.lane.b32.xlu2 %v1565_v14, %s3825_s30  ;;  %v5933_v22 = vpop.f32.mrf.mxu3 }
 0x3ed   : > { %2757 = vrot.lane.b32.xlu1 %v1941_v9, %s3824_s23  ;;  %v1585_v15 = vpop.f32.mrf.mxu2 }
 0x3ee   : > { %v5908_v47 = vpop.permute.xlu1 %2911  ;;  %v5910_v24 = vpop.permute.xlu2 %3137  ;;  %v1586_v38 = vadd.f32 %v5709_v23, %v1585_v15 }
 0x3ef   : > { %7128 = vst [vmem:[#allocation50_spill] sm:$0xff] %v5908_v47  ;;  %v5923_v14 = vpop.permute.xlu0 %3133 }
 0x3f4   : > { %2643 = vrot.lane.b32.xlu0 %v1568_v46, %s3825_s30  ;;  %2759 = vrot.lane.b32.xlu2 %v1944_v21, %s3824_s23  ;;  %v1574_v21 = vadd.f32 %v5709_v23, %v1573_v52 }
 0x3f5   : > { %2645 = vrot.lane.b32.xlu1 %v1571_v6, %s3825_s30 }
 0x3f6   : > { %v5925_v9 = vpop.permute.xlu1 %2615  ;;  %v5927_v18 = vpop.permute.xlu2 %2919 }
 0x3f7   : > { %7129 = vst [vmem:[#allocation57_spill] sm:$0xff] %v5927_v18  ;;  %v1133_v18 = vpop.f32.mrf.mxu1 }
 0x3fc   : > { %2761 = vrot.lane.b32.xlu0 %v1947_v35, %s3824_s23  ;;  %3155 = vrot.lane.b32.xlu2 %v5174_v25, %s3830_s21  ;;  %v1950_v35 = vadd.f32 %v5784_v26, %v5799_v12  ;;  %v5957_v25 = vpop.f32.mrf.mxu3  ;;  %v1953_v12 = vadd.f32 %v5784_v26, %v5816_v63 }
 0x3fd   : > { %3153 = vrot.lane.b32.xlu1 %v5938_v4, %s3830_s21 }
 0x3fe   : > { %v5942_v6 = vpop.permute.xlu0 %2915  ;;  %v5944_v46 = vpop.permute.xlu2 %2623 }
 0x3ff   : > { %7131 = vst [vmem:[#allocation56_spill] sm:$0xff] %v5942_v6  ;;  %v5946_v29 = vpop.permute.xlu1 %3135 }
 0x404   : > { %3151 = vrot.lane.b32.xlu0 %v5951_v60, %s3830_s21  ;;  %2647 = vrot.lane.b32.xlu2 %v1574_v21, %s3825_s30  ;;  %v5969_v21 = vpop.f32.mrf.mxu1  ;;  %v5978_v0 = vpop.f32.mrf.mxu3 }
 0x405   : > { %2763 = vrot.lane.b32.xlu1 %v1950_v35, %s3824_s23  ;;  %v1588_v35 = vpop.f32.mrf.mxu2 }
 0x406   : > { %v2620_v6 = vpop.permute.xlu0 %2619  ;;  %v5959_v47 = vpop.permute.xlu2 %3143 }
 0x407   : > { %7133 = vst [vmem:[#allocation59_spill] sm:$0xff] %v5959_v47  ;;  %v5961_v52 = vpop.permute.xlu1 %2917 }
 0x408   : > { %7134 = vst [vmem:[#allocation46_spill] sm:$0xff] %v5961_v52 }
 0x40c   : > { %2649 = vrot.lane.b32.xlu0 %v1577_v10, %s3825_s30  ;;  %2765 = vrot.lane.b32.xlu2 %v1953_v12, %s3824_s23  ;;  %v5983_v10 = vld [vmem:[#allocation2 + $0xc0] sm:$0xff]  ;;  %v5991_v63 = vpop.f32.mrf.mxu1  ;;  %v6002_v32 = vpop.f32.mrf.mxu3 }
 0x40d   : > { %2651 = vrot.lane.b32.xlu1 %v1580_v45, %s3825_s30  ;;  %7136 = vst [vmem:[#allocation26_spill] sm:$0xff] %v5983_v10  ;;  %v5987_v45 = vld [vmem:[#allocation2 + $0xb8] sm:$0xff]  ;;  %v5999_v36 = vpop.f32.mrf.mxu2 }
 0x40e   : > { %v5972_v42 = vpop.permute.xlu0 %3139  ;;  %v5974_v34 = vpop.permute.xlu2 %2925  ;;  %7137 = vst [vmem:[#allocation61_spill] sm:$0xff] %v5987_v45 }
 0x40f   : > { %7135 = vst [vmem:[#allocation40_spill] sm:$0xff] %v5974_v34  ;;  %v5976_v52 = vpop.permute.xlu1 %2621 }
 0x414   : > { %2767 = vrot.lane.b32.xlu0 %v1956_v43, %s3824_s23  ;;  %3161 = vrot.lane.b32.xlu2 %v5983_v10, %s3830_s21  ;;  %v1583_v43 = vadd.f32 %v5709_v23, %v1582_v27  ;;  %v6012_v10 = vld [vmem:[#allocation2 + $0xb0] sm:$0xff]  ;;  %v2477_v27 = vmax.f32 %v2445_v59, %v5733_v3  ;;  %v6020_v4 = vpop.f32.mrf.mxu1  ;;  %v6047_v15 = vpop.f32.mrf.mxu3 }
 0x415   : > { %3159 = vrot.lane.b32.xlu1 %v5987_v45, %s3830_s21  ;;  %v6008_v45 = vld [vmem:[%s6862_s4] ss:$0 sm:$0xff]  ;;  %7139 = vst [vmem:[#allocation11_spill] sm:$0xff] %v6012_v10 }
 0x416   : > { %v5993_v12 = vpop.permute.xlu0 %2921  ;;  %v5995_v34 = vpop.permute.xlu2 %2629  ;;  %v1134_v49 = vadd.f32 %v6008_v45, %v1133_v18 }
 0x417   : > { %7138 = vst [vmem:[#allocation49_spill] sm:$0xff] %v5993_v12  ;;  %v5997_v62 = vpop.permute.xlu1 %3141  ;;  %v1959_v12 = vadd.f32 %v5784_v26, %v5853_v2  ;;  %v2515_v2 = vmul.f32 %v5730_v39, %v2477_v27 }
 0x418   : > { %v2969_v54 = vsel %vm937_vm4, %v1134_v49, %v2620_v6  ;;  %v1962_v49 = vadd.f32 %v5784_v26, %v5876_v51  ;;  %v6036_v6 = vpop.f32.mrf.mxu2 }
 0x419   : > { %v2553_v59 = vadd.f32 %v5791_v48, %v2515_v2  ;;  %v1589_v2 = vadd.f32 %v5709_v23, %v1588_v35 }
 0x41c   : > { %3157 = vrot.lane.b32.xlu0 %v6012_v10, %s3830_s21  ;;  %2653 = vrot.lane.b32.xlu2 %v1583_v43, %s3825_s30  ;;  %v3720_v43 = vld [vmem:[#allocation2 + $0x30] sm:$0xff] }
 0x41d   : > { %2769 = vrot.lane.b32.xlu1 %v1959_v12, %s3824_s23  ;;  %v2443_v47 = vmax.f32 %v3720_v43, %v3718_v8 }
 0x41e   : > { %v6022_v1 = vpop.permute.xlu0 %2625  ;;  %v2748_v60 = vpop.permute.xlu2 %2747 }
 0x41f   : > { %v6027_v10 = vpop.permute.xlu1 %2923  ;;  %v3001_v18 = vsel %vm333_vm1, %v2969_v54, %v2748_v60  ;;  %v1128_v60 = vadd.f32 %v6008_v45, %v5917_v13 }
 0x420   : > { %v3033_v12 = vsel %vm1009_vm5, %v3001_v18, %v5793_v28  ;;  %v2475_v28 = vmax.f32 %v2443_v47, %v5701_v17 }
 0x421   : > { %v3066_v27 = vsel %vm3063_vm6, %v3033_v12, %v2553_v59  ;;  %v2967_v59 = vsel %vm937_vm4, %v1128_v60, %v5925_v9 }
 0x422   : > { %v3099_v54 = vsel %vm3096_vm7, %v3066_v27, %v5701_v17  ;;  %v2513_v35 = vmul.f32 %v5730_v39, %v2475_v28 }
 0x423   : > { %v3227_v51 = vadd.f32 %v5923_v14, %v3099_v54  ;;  %v1965_v54 = vadd.f32 %v5784_v26, %v5895_v56  ;;  %v6084_v56 = vld [vmem:[#allocation2 + $0xd0] sm:$0xff] }
 0x424   : > { %2655 = vrot.lane.b32.xlu0 %v1586_v38, %s3825_s30  ;;  %2771 = vrot.lane.b32.xlu2 %v1962_v49, %s3824_s23  ;;  %v2551_v13 = vadd.f32 %v5791_v48, %v2513_v35  ;;  %v6062_v38 = vpop.f32.mrf.mxu1  ;;  %v3721_v49 = vld [vmem:[#allocation2 + $0x38] sm:$0xff] }
 0x425   : > { %2657 = vrot.lane.b32.xlu1 %v1589_v2, %s3825_s30  ;;  %v3259_v47 = vmax.f32 %v3227_v51, 0.0  ;;  %v2444_v27 = vmax.f32 %v3721_v49, %v5696_v20  ;;  %v1597_v51 = vpop.f32.mrf.mxu2  ;;  %v6077_v35 = vld [vmem:[#allocation2 + $0xd8] sm:$0xff] }
 0x426   : > { %v2744_v18 = vpop.permute.xlu0 %2743  ;;  %v6058_v43 = vpop.permute.xlu2 %2931 }
 0x427   : > { %v2999_v12 = vsel %vm333_vm1, %v2967_v59, %v2744_v18  ;;  %v6060_v14 = vpop.permute.xlu1 %2627  ;;  %3292 = vst.msk [vmem:[%s6064_s18 + $0x10] sm:$0xff] %vm3289_vm8, %v3259_v47  ;;  %v1131_v59 = vadd.f32 %v6008_v45, %v5931_v53 }
 0x428   : > { %v3031_v9 = vsel %vm1009_vm5, %v2999_v12, %v5743_v37  ;;  %v2476_v37 = vmax.f32 %v2444_v27, %v5723_v55  ;;  %v2448_v27 = vmax.f32 %v5723_v55, %v5745_v16 }
 0x429   : > { %v3064_v2 = vsel %vm3063_vm6, %v3031_v9, %v2551_v13  ;;  %v2968_v13 = vsel %vm937_vm4, %v1131_v59, %v5893_v58  ;;  %v1592_v58 = vadd.f32 %v5709_v23, %v5999_v36  ;;  %v1143_v36 = vadd.f32 %v6008_v45, %v6020_v4 }
 0x42a   : > { %v3097_v28 = vsel %vm3096_vm7, %v3064_v2, %v3718_v8  ;;  %v6088_v8 = vpop.f32.mrf.mxu3  ;;  %v2514_v18 = vmul.f32 %v5730_v39, %v2476_v37 }
 0x42b   : > { %v3225_v60 = vadd.f32 %v5891_v33, %v3097_v28 }
 0x42c   : > { %2773 = vrot.lane.b32.xlu0 %v1965_v54, %s3824_s23  ;;  %3167 = vrot.lane.b32.xlu2 %v6077_v35, %s3830_s21  ;;  %v2552_v9 = vadd.f32 %v5791_v48, %v2514_v18  ;;  %v6105_v54 = vpop.f32.mrf.mxu1 }
 0x42d   : > { %v3257_v47 = vmax.f32 %v3225_v60, 0.0  ;;  %3165 = vrot.lane.b32.xlu1 %v6084_v56, %s3830_s21  ;;  %v1968_v60 = vadd.f32 %v5784_v26, %v5915_v19  ;;  %v1600_v19 = vpop.f32.mrf.mxu2 }
 0x42e   : > { %v6090_v33 = vpop.permute.xlu0 %2927  ;;  %v6097_v12 = vpop.permute.xlu2 %2635 }
 0x42f   : > { %3290 = vst.msk [vmem:[%s6064_s18] sm:$0xff] %vm3289_vm8, %v3257_v47  ;;  %v2746_v53 = vpop.permute.xlu1 %2745  ;;  %v6115_v47 = vld [vmem:[#allocation2 + $0xc8] sm:$0xff] }
 0x430   : > { %v3000_v49 = vsel %vm333_vm1, %v2968_v13, %v2746_v53  ;;  %v2972_v53 = vsel %vm937_vm4, %v1143_v36, %v6022_v1  ;;  %v1595_v1 = vadd.f32 %v5709_v23, %v6036_v6 }
 0x431   : > { %v3032_v2 = vsel %vm1009_vm5, %v3000_v49, %v5807_v7  ;;  %v2480_v7 = vmax.f32 %v2448_v27, %v5776_v5 }
 0x432   : > { %v3065_v28 = vsel %vm3063_vm6, %v3032_v2, %v2552_v9  ;;  %v6131_v2 = vpop.f32.mrf.mxu3 }
 0x433   : > { %v3098_v37 = vsel %vm3096_vm7, %v3065_v28, %v5696_v20  ;;  %v2446_v28 = vmax.f32 %v5696_v20, %v5723_v55 }
 0x434   : > { %v3226_v59 = vadd.f32 %v5862_v41, %v3098_v37  ;;  %3163 = vrot.lane.b32.xlu0 %v6115_v47, %s3830_s21  ;;  %2659 = vrot.lane.b32.xlu2 %v1592_v58, %s3825_s30  ;;  %v2518_v41 = vmul.f32 %v5730_v39, %v2480_v7  ;;  %v1151_v20 = vpop.f32.mrf.mxu1 }
 0x435   : > { %2775 = vrot.lane.b32.xlu1 %v1968_v60, %s3824_s23  ;;  %v1971_v60 = vadd.f32 %v5784_v26, %v5933_v22  ;;  %v2478_v36 = vmax.f32 %v2446_v28, %v5745_v16 }
 0x436   : > { %v3258_v18 = vmax.f32 %v3226_v59, 0.0  ;;  %v6124_v13 = vpop.permute.xlu0 %2631  ;;  %v2754_v9 = vpop.permute.xlu2 %2753  ;;  %v2556_v4 = vadd.f32 %v5791_v48, %v2518_v41  ;;  %v1598_v59 = vadd.f32 %v5709_v23, %v1597_v51 }
 0x437   : > { %v6129_v49 = vpop.permute.xlu1 %2929  ;;  %v3004_v27 = vsel %vm333_vm1, %v2972_v53, %v2754_v9  ;;  %v2516_v22 = vmul.f32 %v5730_v39, %v2478_v36  ;;  %v6187_v36 = vld [vmem:[#allocation2 + $0xe8] sm:$0xff] }
 0x438   : > { %3291 = vst.msk [vmem:[%s6064_s18 + $0x8] sm:$0xff] %vm3289_vm8, %v3258_v18  ;;  %v3036_v58 = vsel %vm1009_vm5, %v3004_v27, %v5809_v31  ;;  %v1137_v31 = vadd.f32 %v6008_v45, %v5969_v21 }
 0x439   : > { %v3069_v37 = vsel %vm3063_vm6, %v3036_v58, %v2556_v4  ;;  %v2554_v53 = vadd.f32 %v5791_v48, %v2516_v22  ;;  %v1603_v4 = vpop.f32.mrf.mxu2 }
 0x43a   : > { %v3102_v7 = vsel %vm3096_vm7, %v3069_v37, %v5745_v16  ;;  %v2970_v6 = vsel %vm937_vm4, %v1137_v31, %v5976_v52  ;;  %v1974_v52 = vadd.f32 %v5784_v26, %v5957_v25  ;;  %v6172_v28 = vpop.f32.mrf.mxu3  ;;  %v1140_v25 = vadd.f32 %v6008_v45, %v5991_v63 }
 0x43b   : > { %v3230_v18 = vadd.f32 %v5972_v42, %v3102_v7 }
 0x43c   : > { %2661 = vrot.lane.b32.xlu0 %v1595_v1, %s3825_s30  ;;  %2777 = vrot.lane.b32.xlu2 %v1971_v60, %s3824_s23  ;;  %v2447_v60 = vmax.f32 %v5701_v17, %v5733_v3  ;;  %v6191_v17 = vpop.f32.mrf.mxu1  ;;  %v2971_v31 = vsel %vm937_vm4, %v1140_v25, %v5944_v46  ;;  %v1977_v46 = vadd.f32 %v5784_v26, %v5978_v0 }
 0x43d   : > { %2663 = vrot.lane.b32.xlu1 %v1598_v59, %s3825_s30  ;;  %v3262_v51 = vmax.f32 %v3230_v18, 0.0  ;;  %v6180_v59 = vld [vmem:[#allocation2 + $0xf0] sm:$0xff]  ;;  %v1152_v25 = vadd.f32 %v6008_v45, %v1151_v20 }
 0x43e   : > { %v2750_v41 = vpop.permute.xlu0 %2749  ;;  %v6161_v9 = vpop.permute.xlu2 %3149 }
 0x43f   : > { %v3002_v21 = vsel %vm333_vm1, %v2970_v6, %v2750_v41  ;;  %v6163_v42 = vpop.permute.xlu1 %2633  ;;  %3295 = vst.msk [vmem:[%s6064_s18 + $0x28] sm:$0xff] %vm3289_vm8, %v3262_v51  ;;  %v1601_v41 = vadd.f32 %v5709_v23, %v1600_v19 }
 0x440   : > { %v3034_v27 = vsel %vm1009_vm5, %v3002_v21, %v5758_v11  ;;  %v2479_v11 = vmax.f32 %v2447_v60, %v5762_v50 }
 0x441   : > { %v3067_v58 = vsel %vm3063_vm6, %v3034_v27, %v2554_v53  ;;  %v1606_v53 = vpop.f32.mrf.mxu2 }
 0x442   : > { %v3100_v1 = vsel %vm3096_vm7, %v3067_v58, %v5723_v55  ;;  %v6212_v58 = vpop.f32.mrf.mxu3 }
 0x443   : > { %v3228_v37 = vadd.f32 %v5946_v29, %v3100_v1  ;;  %v2517_v29 = vmul.f32 %v5730_v39, %v2479_v11  ;;  %v6215_v1 = vld [vmem:[#allocation2 + $0xe0] sm:$0xff] }
 0x444   : > { %2779 = vrot.lane.b32.xlu0 %v1974_v52, %s3824_s23  ;;  %3173 = vrot.lane.b32.xlu2 %v6180_v59, %s3830_s21  ;;  %v6227_v11 = vpop.f32.mrf.mxu1 }
 0x445   : > { %v3260_v7 = vmax.f32 %v3228_v37, 0.0  ;;  %3171 = vrot.lane.b32.xlu1 %v6187_v36, %s3830_s21  ;;  %v2555_v22 = vadd.f32 %v5791_v48, %v2517_v29  ;;  %v2449_v37 = vmax.f32 %v5733_v3, %v5762_v50  ;;  %v1980_v29 = vadd.f32 %v5784_v26, %v6002_v32 }
 0x446   : > { %v6193_v55 = vpop.permute.xlu0 %2933  ;;  %v6200_v18 = vpop.permute.xlu2 %2641 }
 0x447   : > { %3293 = vst.msk [vmem:[%s6064_s18 + $0x18] sm:$0xff] %vm3289_vm8, %v3260_v7  ;;  %v2752_v63 = vpop.permute.xlu1 %2751  ;;  %v1604_v7 = vadd.f32 %v5709_v23, %v1603_v4  ;;  %v6248_v4 = vld [vmem:[#allocation2 + $0x90] sm:$0xff] }
 0x448   : > { %v3003_v6 = vsel %vm333_vm1, %v2971_v31, %v2752_v63  ;;  %v1607_v31 = vadd.f32 %v5709_v23, %v1606_v53  ;;  %v2481_v63 = vmax.f32 %v2449_v37, %v5902_v30 }
 0x449   : > { %v3035_v51 = vsel %vm1009_vm5, %v3003_v6, %v5823_v44  ;;  %v2975_v6 = vsel %vm937_vm4, %v1152_v25, %v6124_v13 }
 0x44a   : > { %v3068_v21 = vsel %vm3063_vm6, %v3035_v51, %v2555_v22  ;;  %v1609_v22 = vpop.f32.mrf.mxu2  ;;  %v2519_v32 = vmul.f32 %v5730_v39, %v2481_v63 }
 0x44b   : > { %v3101_v27 = vsel %vm3096_vm7, %v3068_v21, %v5733_v3  ;;  %v1146_v3 = vadd.f32 %v6008_v45, %v6062_v38 }
 0x44c   : > { %v3229_v52 = vadd.f32 %v5910_v24, %v3101_v27  ;;  %3169 = vrot.lane.b32.xlu0 %v6215_v1, %s3830_s21  ;;  %2665 = vrot.lane.b32.xlu2 %v1601_v41, %s3825_s30  ;;  %v2451_v24 = vmax.f32 %v5762_v50, %v5902_v30  ;;  %v6251_v41 = vpop.f32.mrf.mxu3  ;;  %v2557_v53 = vadd.f32 %v5791_v48, %v2519_v32  ;;  %v1160_v25 = vpop.f32.mrf.mxu1 }
 0x44d   : > { %2781 = vrot.lane.b32.xlu1 %v1977_v46, %s3824_s23  ;;  %v2973_v38 = vsel %vm937_vm4, %v1146_v3, %v6060_v14  ;;  %v2450_v14 = vmax.f32 %v5745_v16, %v5776_v5  ;;  %v6284_v3 = vld [vmem:[#allocation2 + $0x100] sm:$0xff] }
 0x44e   : > { %v3261_v44 = vmax.f32 %v3229_v52, 0.0  ;;  %v6221_v19 = vpop.permute.xlu0 %2637  ;;  %v2760_v0 = vpop.permute.xlu2 %2759  ;;  %v2483_v51 = vmax.f32 %v2451_v24, %v6248_v4 }
 0x44f   : > { %v6223_v60 = vpop.permute.xlu1 %2639  ;;  %v3007_v20 = vsel %vm333_vm1, %v2975_v6, %v2760_v0  ;;  %v2482_v16 = vmax.f32 %v2450_v14, %v5887_v57  ;;  %v1610_v14 = vadd.f32 %v5709_v23, %v1609_v22 }
 0x450   : > { %3294 = vst.msk [vmem:[%s6064_s18 + $0x20] sm:$0xff] %vm3289_vm8, %v3261_v44  ;;  %v2521_v52 = vmul.f32 %v5730_v39, %v2483_v51  ;;  %v3039_v44 = vsel %vm1009_vm5, %v3007_v20, %v5825_v40 }
 0x451   : > { %v2520_v20 = vmul.f32 %v5730_v39, %v2482_v16 }
 0x452   : > { %v2559_v24 = vadd.f32 %v5791_v48, %v2521_v52 }
 0x454   : > { %2667 = vrot.lane.b32.xlu0 %v1604_v7, %s3825_s30  ;;  %2783 = vrot.lane.b32.xlu2 %v1980_v29, %s3824_s23  ;;  %v1983_v7 = vadd.f32 %v5784_v26, %v6047_v15  ;;  %v1149_v15 = vadd.f32 %v6008_v45, %v6105_v54 }
 0x455   : > { %2669 = vrot.lane.b32.xlu1 %v1607_v31, %s3825_s30  ;;  %v3072_v31 = vsel %vm3063_vm6, %v3039_v44, %v2559_v24  ;;  %v7140_v44 = vld [vmem:[#allocation41_spill] sm:$0xff] }
 0x456   : > { %v2756_v13 = vpop.permute.xlu0 %2755  ;;  %v6257_v46 = vpop.permute.xlu2 %3155  ;;  %v3105_v6 = vsel %vm3096_vm7, %v3072_v31, %v5902_v30  ;;  %v2974_v32 = vsel %vm937_vm4, %v1149_v15, %v5995_v34  ;;  %v6314_v31 = vld [vmem:[#allocation2 + $0xf8] sm:$0xff] }
 0x457   : > { %v3005_v21 = vsel %vm333_vm1, %v2973_v38, %v2756_v13  ;;  %v6259_v27 = vpop.permute.xlu1 %3147  ;;  %v6297_v13 = vpop.f32.mrf.mxu3 }
 0x458   : > { %v3037_v0 = vsel %vm1009_vm5, %v3005_v21, %v5773_v61  ;;  %v6277_v61 = vld [vmem:[#allocation2 + $0x108] sm:$0xff] }
 0x459   : > { %v3070_v37 = vsel %vm3063_vm6, %v3037_v0, %v2557_v53  ;;  %v2558_v53 = vadd.f32 %v5791_v48, %v2520_v20 }
 0x45a   : > { %v3103_v29 = vsel %vm3096_vm7, %v3070_v37, %v5762_v50  ;;  %v1612_v50 = vpop.f32.mrf.mxu2  ;;  %v1986_v37 = vadd.f32 %v5784_v26, %v6088_v8 }
 0x45b   : > { %v3231_v40 = vadd.f32 %v5997_v62, %v3103_v29  ;;  %v7141_v29 = vld [vmem:[#allocation59_spill] sm:$0xff]  ;;  %v1613_v20 = vadd.f32 %v5709_v23, %v1612_v50 }
 0x45c   : > { %2785 = vrot.lane.b32.xlu0 %v1983_v7, %s3824_s23  ;;  %3179 = vrot.lane.b32.xlu2 %v6277_v61, %s3830_s21  ;;  %v6311_v7 = vpop.f32.mrf.mxu1 }
 0x45d   : > { %v3263_v63 = vmax.f32 %v3231_v40, 0.0  ;;  %3177 = vrot.lane.b32.xlu1 %v6284_v3, %s3830_s21 }
 0x45e   : > { %v3146_v62 = vpop.permute.xlu0 %3145  ;;  %v6295_v51 = vpop.permute.xlu2 %2647 }
 0x45f   : > { %3296 = vst.msk [vmem:[%s6064_s18 + $0x30] sm:$0xff] %vm3289_vm8, %v3263_v63  ;;  %v3233_v54 = vadd.f32 %v3146_v62, %v3105_v6  ;;  %v2758_v38 = vpop.permute.xlu1 %2757  ;;  %v2452_v63 = vmax.f32 %v5776_v5, %v5887_v57  ;;  %v1161_v6 = vadd.f32 %v6008_v45, %v1160_v25 }
 0x460   : > { %v3006_v21 = vsel %vm333_vm1, %v2974_v32, %v2758_v38  ;;  %v1989_v32 = vadd.f32 %v5784_v26, %v6131_v2 }
 0x461   : > { %v3265_v52 = vmax.f32 %v3233_v54, 0.0  ;;  %v3038_v0 = vsel %vm1009_vm5, %v3006_v21, %v7140_v44  ;;  %v6332_v54 = vpop.f32.mrf.mxu3  ;;  %v2978_v25 = vsel %vm937_vm4, %v1161_v6, %v6221_v19  ;;  %v6347_v44 = vld [vmem:[#allocation2 + $0xa8] sm:$0xff] }
 0x462   : > { %v3071_v34 = vsel %vm3063_vm6, %v3038_v0, %v2558_v53  ;;  %v1615_v62 = vpop.f32.mrf.mxu2  ;;  %v7142_v53 = vld [vmem:[#allocation60_spill] sm:$0xff] }
 0x463   : > { %3298 = vst.msk [vmem:[%s6064_s18 + $0x40] sm:$0xff] %vm3289_vm8, %v3265_v52  ;;  %v3104_v24 = vsel %vm3096_vm7, %v3071_v34, %v5776_v5  ;;  %v1616_v38 = vadd.f32 %v5709_v23, %v1615_v62  ;;  %v2484_v21 = vmax.f32 %v2452_v63, %v7142_v53  ;;  %v2454_v52 = vmax.f32 %v5887_v57, %v7142_v53  ;;  %v7144_v63 = vld [vmem:[#allocation17_spill] sm:$0xff] }
 0x464   : > { %v3232_v40 = vadd.f32 %v7141_v29, %v3104_v24  ;;  %3175 = vrot.lane.b32.xlu0 %v6314_v31, %s3830_s21  ;;  %2671 = vrot.lane.b32.xlu2 %v1610_v14, %s3825_s30  ;;  %v1155_v5 = vadd.f32 %v6008_v45, %v6191_v17  ;;  %v6350_v14 = vpop.f32.mrf.mxu1 }
 0x465   : > { %2787 = vrot.lane.b32.xlu1 %v1986_v37, %s3824_s23  ;;  %v2522_v50 = vmul.f32 %v5730_v39, %v2484_v21  ;;  %v2486_v0 = vmax.f32 %v2454_v52, %v6347_v44 }
 0x466   : > { %v3264_v22 = vmax.f32 %v3232_v40, 0.0  ;;  %v6320_v8 = vpop.permute.xlu0 %2643  ;;  %v2766_v16 = vpop.permute.xlu2 %2765  ;;  %v2976_v17 = vsel %vm937_vm4, %v1155_v5, %v6163_v42 }
 0x467   : > { %v6322_v15 = vpop.permute.xlu1 %2645  ;;  %v3010_v2 = vsel %vm333_vm1, %v2978_v25, %v2766_v16  ;;  %v2560_v34 = vadd.f32 %v5791_v48, %v2522_v50  ;;  %v2524_v40 = vmul.f32 %v5730_v39, %v2486_v0  ;;  %v6378_v25 = vld [vmem:[#allocation2 + $0x120] sm:$0xff]  ;;  %v6385_v50 = vld [vmem:[#allocation2 + $0x118] sm:$0xff] }
 0x468   : > { %3297 = vst.msk [vmem:[%s6064_s18 + $0x38] sm:$0xff] %vm3289_vm8, %v3264_v22  ;;  %v7143_v22 = vld [vmem:[#allocation38_spill] sm:$0xff] }
 0x469   : > { %v3042_v16 = vsel %vm1009_vm5, %v3010_v2, %v7143_v22  ;;  %v2562_v42 = vadd.f32 %v5791_v48, %v2524_v40  ;;  %v6375_v5 = vpop.f32.mrf.mxu3 }
 0x46b   : > { %v3075_v52 = vsel %vm3063_vm6, %v3042_v16, %v2562_v42 }
 0x46c   : > { %2673 = vrot.lane.b32.xlu0 %v1613_v20, %s3825_s30  ;;  %2789 = vrot.lane.b32.xlu2 %v1989_v32, %s3824_s23  ;;  %v1992_v20 = vadd.f32 %v5784_v26, %v6172_v28  ;;  %v7145_v28 = vld [vmem:[#allocation58_spill] sm:$0xff]  ;;  %v1169_v22 = vpop.f32.mrf.mxu1 }
 0x46d   : > { %2675 = vrot.lane.b32.xlu1 %v1616_v38, %s3825_s30  ;;  %v2453_v38 = vmax.f32 %v5902_v30, %v6248_v4 }
 0x46e   : > { %v2762_v19 = vpop.permute.xlu0 %2761  ;;  %v6356_v24 = vpop.permute.xlu2 %3161 }
 0x46f   : > { %v3008_v37 = vsel %vm333_vm1, %v2976_v17, %v2762_v19  ;;  %v6358_v29 = vpop.permute.xlu1 %3153  ;;  %v2485_v2 = vmax.f32 %v2453_v38, %v7145_v28  ;;  %v3108_v17 = vsel %vm3096_vm7, %v3075_v52, %v7142_v53  ;;  %v6411_v52 = vld [vmem:[#allocation2 + $0x110] sm:$0xff] }
 0x470   : > { %v3040_v62 = vsel %vm1009_vm5, %v3008_v37, %v7144_v63 }
 0x471   : > { %v3073_v6 = vsel %vm3063_vm6, %v3040_v62, %v2560_v34  ;;  %v2523_v19 = vmul.f32 %v5730_v39, %v2485_v2 }
 0x472   : > { %v3106_v32 = vsel %vm3096_vm7, %v3073_v6, %v5887_v57  ;;  %v1158_v57 = vadd.f32 %v6008_v45, %v6227_v11  ;;  %v7146_v6 = vld [vmem:[#allocation54_spill] sm:$0xff] }
 0x473   : > { %v3234_v21 = vadd.f32 %v6259_v27, %v3106_v32  ;;  %v1618_v27 = vpop.f32.mrf.mxu2  ;;  %v2561_v16 = vadd.f32 %v5791_v48, %v2523_v19  ;;  %v1995_v32 = vadd.f32 %v5784_v26, %v6212_v58 }
 0x474   : > { %2791 = vrot.lane.b32.xlu0 %v1992_v20, %s3824_s23  ;;  %3185 = vrot.lane.b32.xlu2 %v6378_v25, %s3830_s21  ;;  %v2977_v34 = vsel %vm937_vm4, %v1158_v57, %v6097_v12  ;;  %v1619_v20 = vadd.f32 %v5709_v23, %v1618_v27  ;;  %v2009_v23 = vpop.f32.mrf.mxu3  ;;  %v7147_v27 = vld [vmem:[#allocation11_spill] sm:$0xff]  ;;  %v6428_v19 = vpop.f32.mrf.mxu1 }
 0x475   : > { %v3266_v30 = vmax.f32 %v3234_v21, 0.0  ;;  %3183 = vrot.lane.b32.xlu1 %v6385_v50, %s3830_s21 }
 0x476   : > { %v3152_v0 = vpop.permute.xlu0 %3151  ;;  %v6396_v37 = vpop.permute.xlu2 %2653 }
 0x477   : > { %3299 = vst.msk [vmem:[%s6064_s18 + $0x48] sm:$0xff] %vm3289_vm8, %v3266_v30  ;;  %v3236_v11 = vadd.f32 %v3152_v0, %v3108_v17  ;;  %v2764_v40 = vpop.permute.xlu1 %2763  ;;  %v2457_v0 = vmax.f32 %v7145_v28, %v7147_v27  ;;  %v1170_v17 = vadd.f32 %v6008_v45, %v1169_v22  ;;  %v7148_v22 = vld [vmem:[#allocation26_spill] sm:$0xff] }
 0x478   : > { %v3009_v63 = vsel %vm333_vm1, %v2977_v34, %v2764_v40  ;;  %v1998_v34 = vadd.f32 %v5784_v26, %v6251_v41  ;;  %v2004_v40 = vadd.f32 %v5784_v26, %v6332_v54 }
 0x479   : > { %v3268_v62 = vmax.f32 %v3236_v11, 0.0  ;;  %v3041_v42 = vsel %vm1009_vm5, %v3009_v63, %v7146_v6  ;;  %v2001_v11 = vadd.f32 %v5784_v26, %v6297_v13  ;;  %v2981_v63 = vsel %vm937_vm4, %v1170_v17, %v6320_v8 }
 0x47a   : > { %v3074_v12 = vsel %vm3063_vm6, %v3041_v42, %v2561_v16  ;;  %v2489_v54 = vmax.f32 %v2457_v0, %v7148_v22  ;;  %v2007_v17 = vadd.f32 %v5784_v26, %v6375_v5  ;;  %v1167_v5 = vadd.f32 %v6008_v45, %v6350_v14 }
 0x47b   : > { %3301 = vst.msk [vmem:[%s6064_s18 + $0x58] sm:$0xff] %vm3289_vm8, %v3268_v62  ;;  %v3107_v38 = vsel %vm3096_vm7, %v3074_v12, %v6248_v4 }
 0x47c   : > { %v3235_v21 = vadd.f32 %v6161_v9, %v3107_v38  ;;  %3181 = vrot.lane.b32.xlu0 %v6411_v52, %s3830_s21  ;;  %2677 = vrot.lane.b32.xlu2 %v1619_v20, %s3825_s30  ;;  %v2455_v9 = vmax.f32 %v6248_v4, %v7145_v28  ;;  %v1164_v4 = vadd.f32 %v6008_v45, %v6311_v7  ;;  %v7149_v38 = vld [vmem:[#allocation44_spill] sm:$0xff] }
 0x47d   : > { %2793 = vrot.lane.b32.xlu1 %v1995_v32, %s3824_s23  ;;  %v2527_v12 = vmul.f32 %v5730_v39, %v2489_v54  ;;  %v2012_v32 = vpop.f32.mrf.mxu3 }
 0x47e   : > { %v3267_v2 = vmax.f32 %v3235_v21, 0.0  ;;  %v6417_v57 = vpop.permute.xlu0 %2649  ;;  %v2772_v58 = vpop.permute.xlu2 %2771  ;;  %v2487_v16 = vmax.f32 %v2455_v9, %v7147_v27  ;;  %v2979_v62 = vsel %vm937_vm4, %v1164_v4, %v6223_v60  ;;  %v2456_v60 = vmax.f32 %v7142_v53, %v6347_v44 }
 0x47f   : > { %v6419_v30 = vpop.permute.xlu1 %2651  ;;  %v3013_v41 = vsel %vm333_vm1, %v2981_v63, %v2772_v58  ;;  %v2565_v0 = vadd.f32 %v5791_v48, %v2527_v12  ;;  %v1175_v53 = vpop.f32.mrf.mxu1  ;;  %v7151_v63 = vld [vmem:[#allocation61_spill] sm:$0xff] }
 0x480   : > { %3300 = vst.msk [vmem:[%s6064_s18 + $0x50] sm:$0xff] %vm3289_vm8, %v3267_v2  ;;  %v2525_v13 = vmul.f32 %v5730_v39, %v2487_v16  ;;  %v3045_v21 = vsel %vm1009_vm5, %v3013_v41, %v7149_v38  ;;  %v7150_v2 = vld [vmem:[#allocation34_spill] sm:$0xff]  ;;  %v2488_v41 = vmax.f32 %v2456_v60, %v7151_v63  ;;  %v7152_v12 = vld [vmem:[#allocation45_spill] sm:$0xff]  ;;  %v6505_v60 = vld [vmem:[#allocation2 + $0x130] sm:$0xff] }
 0x481   : > { %v3078_v4 = vsel %vm3063_vm6, %v3045_v21, %v2565_v0 }
 0x482   : > { %v2563_v7 = vadd.f32 %v5791_v48, %v2525_v13  ;;  %v2980_v13 = vsel %vm937_vm4, %v1167_v5, %v6200_v18 }
 0x484   : > { %2797 = vrot.lane.b32.xlu0 %v2001_v11, %s3824_s23  ;;  %2795 = vrot.lane.b32.xlu2 %v1998_v34, %s3824_s23  ;;  %v2010_v34 = vadd.f32 %v5784_v26, %v2009_v23 }
 0x485   : > { %2799 = vrot.lane.b32.xlu1 %v2004_v40, %s3824_s23  ;;  %v2013_v40 = vadd.f32 %v5784_v26, %v2012_v32  ;;  %v3111_v26 = vsel %vm3096_vm7, %v3078_v4, %v7147_v27 }
 0x486   : > { %v2768_v6 = vpop.permute.xlu0 %2767  ;;  %v6451_v42 = vpop.permute.xlu2 %3167 }
 0x487   : > { %v3011_v8 = vsel %vm333_vm1, %v2979_v62, %v2768_v6  ;;  %v6453_v20 = vpop.permute.xlu1 %3159 }
 0x488   : > { %v3043_v58 = vsel %vm1009_vm5, %v3011_v8, %v7150_v2  ;;  %v6497_v2 = vld [vmem:[#allocation2 + $0x128] sm:$0xff] }
 0x489   : > { %v3076_v9 = vsel %vm3063_vm6, %v3043_v58, %v2563_v7  ;;  %v6501_v58 = vld [vmem:[#allocation2 + $0x138] sm:$0xff] }
 0x48a   : > { %v3109_v11 = vsel %vm3096_vm7, %v3076_v9, %v7145_v28  ;;  %v1178_v9 = vpop.f32.mrf.mxu1 }
 0x48b   : > { %v3237_v16 = vadd.f32 %v6358_v29, %v3109_v11  ;;  %v2526_v29 = vmul.f32 %v5730_v39, %v2488_v41  ;;  %v2458_v11 = vmax.f32 %v6347_v44, %v7151_v63  ;;  %v1173_v41 = vadd.f32 %v6008_v45, %v6428_v19 }
 0x48c   : > { %2803 = vrot.lane.b32.xlu0 %v2010_v34, %s3824_s23  ;;  %2801 = vrot.lane.b32.xlu2 %v2007_v17, %s3824_s23 }
 0x48d   : > { %v3269_v23 = vmax.f32 %v3237_v16, 0.0  ;;  %2805 = vrot.lane.b32.xlu1 %v2013_v40, %s3824_s23  ;;  %v2564_v14 = vadd.f32 %v5791_v48, %v2526_v29  ;;  %v2460_v40 = vmax.f32 %v7151_v63, %v6115_v47  ;;  %v1179_v16 = vadd.f32 %v6008_v45, %v1178_v9 }
 0x48e   : > { %v3158_v28 = vpop.permute.xlu0 %3157  ;;  %v6485_v62 = vpop.permute.xlu2 %2659  ;;  %v2490_v4 = vmax.f32 %v2458_v11, %v6115_v47 }
 0x48f   : > { %3302 = vst.msk [vmem:[%s6064_s18 + $0x60] sm:$0xff] %vm3289_vm8, %v3269_v23  ;;  %v3239_v54 = vadd.f32 %v3158_v28, %v3111_v26  ;;  %v2770_v6 = vpop.permute.xlu1 %2769  ;;  %v2984_v5 = vsel %vm937_vm4, %v1179_v16, %v6417_v57  ;;  %v2982_v26 = vsel %vm937_vm4, %v1173_v41, %v6322_v15  ;;  %v7153_v57 = vld [vmem:[#allocation43_spill] sm:$0xff]  ;;  %v2459_v15 = vmax.f32 %v7147_v27, %v7148_v22 }
 0x490   : > { %v3012_v7 = vsel %vm333_vm1, %v2980_v13, %v2770_v6  ;;  %v2528_v28 = vmul.f32 %v5730_v39, %v2490_v4 }
 0x491   : > { %v3271_v8 = vmax.f32 %v3239_v54, 0.0  ;;  %v3044_v32 = vsel %vm1009_vm5, %v3012_v7, %v7152_v12 }
 0x492   : > { %v3077_v38 = vsel %vm3063_vm6, %v3044_v32, %v2564_v14  ;;  %v2566_v13 = vadd.f32 %v5791_v48, %v2528_v28  ;;  %v7155_v28 = vld [vmem:[#allocation53_spill] sm:$0xff] }
 0x493   : > { %3304 = vst.msk [vmem:[%s6064_s18 + $0x70] sm:$0xff] %vm3289_vm8, %v3271_v8  ;;  %v3110_v18 = vsel %vm3096_vm7, %v3077_v38, %v6347_v44  ;;  %v2492_v44 = vmax.f32 %v2460_v40, %v6077_v35  ;;  %v7154_v8 = vld [vmem:[#allocation32_spill] sm:$0xff] }
 0x494   : > { %v3238_v21 = vadd.f32 %v6257_v46, %v3110_v18  ;;  %3187 = vrot.lane.b32.xlu0 %v6497_v2, %s3830_s21  ;;  %3191 = vrot.lane.b32.xlu2 %v6501_v58, %s3830_s21 }
 0x495   : > { %3189 = vrot.lane.b32.xlu1 %v6505_v60, %s3830_s21  ;;  %v2530_v14 = vmul.f32 %v5730_v39, %v2492_v44  ;;  %s3603_s21 = sshll.u32 %s3812_s27, 8  ;;  %s3338_s27 = sshll.u32 %s6064_s18, 4  ;;  %s3339_s27 = int_to_ptr.vmem [resolvable:$true] %s3338_s27 }
 0x496   : > { %v3270_v0 = vmax.f32 %v3238_v21, 0.0  ;;  %v2656_v17 = vpop.permute.xlu0 %2655  ;;  %v2778_v34 = vpop.permute.xlu2 %2777  ;;  %s3337_s8 = scalar_lea.hbm %s6865_s7, %s3603_s21  ;;  %s3762_s21 = scalar_lea.hbm %s6865_s7, 512 }
 0x497   : > { %v6509_v46 = vpop.permute.xlu1 %2657  ;;  %v3016_v23 = vsel %vm333_vm1, %v2984_v5, %v2778_v34  ;;  %v2568_v38 = vadd.f32 %v5791_v48, %v2530_v14  ;;  %v1176_v34 = vadd.f32 %v6008_v45, %v1175_v53  ;;  %s3340_s19 = sshll.u32 %s3337_s8, 4  ;;  %s3341_s19 = int_to_ptr.hbm [resolvable:$true] %s3340_s19 }
 0x498   : > { %3303 = vst.msk [vmem:[%s6064_s18 + $0x68] sm:$0xff] %vm3289_vm8, %v3270_v0  ;;  %v3048_v7 = vsel %vm1009_vm5, %v3016_v23, %v7153_v57  ;;  %v2491_v0 = vmax.f32 %v2459_v15, %v6084_v56  ;;  %s3756_s16 = sshra.s32 %s3341_s19, 4  ;;  %s3757_s16 = int_to_ptr.hbm [resolvable:$true] %s3756_s16 }
 0x499   : > { %v3081_v9 = vsel %vm3063_vm6, %v3048_v7, %v2568_v38  ;;  %v2983_v4 = vsel %vm937_vm4, %v1176_v34, %v6295_v51  ;;  %v2461_v7 = vmax.f32 %v7148_v22, %v6084_v56  ;;  %v7157_v38 = vld [vmem:[#allocation23_spill] sm:$0xff]  ;;  %s3758_s22 = scalar_lea.hbm %s3757_s16, 256  ;;  %p3763_p1 = scmp.lt.s32.totalorder %s3757_s16, %s6865_s7 }
 0x49a   : > { %v3114_v27 = vsel %vm3096_vm7, %v3081_v9, %v6115_v47  ;;  %v2529_v16 = vmul.f32 %v5730_v39, %v2491_v0  ;;  %p3759_p12 = scmp.ne.s32.totalorder %s3757_s16, %s3758_s22  ;;  %p3764_p2 = scmp.lt.s32.totalorder %s3762_s21, %s3758_s22 }
 0x49c   : > { %v2567_v5 = vadd.f32 %v5791_v48, %v2529_v16  ;;  %p3760_p13 = pnand %p3759_p12, %p3912_p4  ;;  %p3765_p3 = por %p3764_p2, %p3763_p1 }
 0x49e   : > { %v2774_v29 = vpop.permute.xlu0 %2773  ;;  %v6530_v6 = vpop.permute.xlu2 %3173  ;;  %p3761_p0 = pneg %p3760_p13 }
 0x49f   : > { %v3014_v54 = vsel %vm333_vm1, %v2982_v26, %v2774_v29  ;;  %v3166_v19 = vpop.permute.xlu1 %3165 }
 0x4a0   : > { %v3046_v12 = vsel %vm1009_vm5, %v3014_v54, %v7154_v8  ;;  %v2463_v8 = vmax.f32 %v6084_v56, %v6215_v1  ;;  %p3766_p5 = pnand %p3765_p3, %p3761_p0 }
 0x4a1   : > { %v3079_v32 = vsel %vm3063_vm6, %v3046_v12, %v2566_v13  ;;  %v7156_v12 = vld [vmem:[#allocation15_spill] sm:$0xff] }
 0x4a2   : > { %v3112_v18 = vsel %vm3096_vm7, %v3079_v32, %v7151_v63  ;;  %v1188_v15 = vadd.f32 %v6008_v45, %v7156_v12  ;;  %v2493_v32 = vmax.f32 %v2461_v7, %v6215_v1 }
 0x4a3   : > { %v3240_v21 = vadd.f32 %v6453_v20, %v3112_v18 }
 0x4a4   : > { %v2987_v18 = vsel %vm937_vm4, %v1188_v15, %v2656_v17  ;;  %v2531_v9 = vmul.f32 %v5730_v39, %v2493_v32  ;;  %v7158_v17 = vld [vmem:[#allocation50_spill] sm:$0xff] }
 0x4a5   : > { %v3272_v11 = vmax.f32 %v3240_v21, 0.0 }
 0x4a6   : > { %v3164_v40 = vpop.permute.xlu0 %3163  ;;  %v6554_v63 = vpop.permute.xlu2 %2665 }
 0x4a7   : > { %3305 = vst.msk [vmem:[%s6064_s18 + $0x78] sm:$0xff] %vm3289_vm8, %v3272_v11  ;;  %v3242_v20 = vadd.f32 %v3164_v40, %v3114_v27  ;;  %v2776_v41 = vpop.permute.xlu1 %2775  ;;  %v2569_v11 = vadd.f32 %v5791_v48, %v2531_v9 }
 0x4a8   : > { %v3015_v53 = vsel %vm333_vm1, %v2983_v4, %v2776_v41  ;;  %v7159_v41 = vld [vmem:[#allocation47_spill] sm:$0xff] }
 0x4a9   : > { %v3274_v23 = vmax.f32 %v3242_v20, 0.0  ;;  %v3047_v44 = vsel %vm1009_vm5, %v3015_v53, %v7155_v28 }
 0x4aa   : > { %v3080_v26 = vsel %vm3063_vm6, %v3047_v44, %v2567_v5 }
 0x4ab   : > { %3307 = vst.msk [vmem:[%s6064_s18 + $0x88] sm:$0xff] %vm3289_vm8, %v3274_v23  ;;  %v3113_v51 = vsel %vm3096_vm7, %v3080_v26, %v7148_v22  ;;  %v2495_v22 = vmax.f32 %v2463_v8, %v6180_v59 }
 0x4ac   : > { %v3241_v29 = vadd.f32 %v6356_v24, %v3113_v51  ;;  %v1182_v24 = vadd.f32 %v6008_v45, %v7157_v38 }
 0x4ad   : > { %v2533_v4 = vmul.f32 %v5730_v39, %v2495_v22 }
 0x4ae   : > { %v3273_v13 = vmax.f32 %v3241_v29, 0.0  ;;  %v2662_v54 = vpop.permute.xlu0 %2661  ;;  %v2784_v14 = vpop.permute.xlu2 %2783  ;;  %v2985_v0 = vsel %vm937_vm4, %v1182_v24, %v6419_v30  ;;  %v2462_v30 = vmax.f32 %v6115_v47, %v6077_v35  ;;  %v7160_v29 = vld [vmem:[#allocation20_spill] sm:$0xff] }
 0x4af   : > { %v6566_v57 = vpop.permute.xlu1 %2663  ;;  %v3019_v21 = vsel %vm333_vm1, %v2987_v18, %v2784_v14  ;;  %v2571_v23 = vadd.f32 %v5791_v48, %v2533_v4  ;;  %v7161_v18 = vld [vmem:[#allocation55_spill] sm:$0xff]  ;;  %v2464_v4 = vmax.f32 %v6077_v35, %v6187_v36 }
 0x4b0   : > { %3306 = vst.msk [vmem:[%s6064_s18 + $0x80] sm:$0xff] %vm3289_vm8, %v3273_v13  ;;  %v3051_v20 = vsel %vm1009_vm5, %v3019_v21, %v7158_v17  ;;  %v2494_v51 = vmax.f32 %v2462_v30, %v6187_v36  ;;  %v1185_v13 = vadd.f32 %v6008_v45, %v7160_v29  ;;  %v2466_v17 = vmax.f32 %v6187_v36, %v6314_v31  ;;  %v7163_v30 = vld [vmem:[#allocation42_spill] sm:$0xff] }
 0x4b1   : > { %v3084_v26 = vsel %vm3063_vm6, %v3051_v20, %v2571_v23  ;;  %v7162_v20 = vld [vmem:[#allocation21_spill] sm:$0xff] }
 0x4b2   : > { %v3117_v47 = vsel %vm3096_vm7, %v3084_v26, %v6215_v1  ;;  %v2532_v8 = vmul.f32 %v5730_v39, %v2494_v51  ;;  %v2986_v12 = vsel %vm937_vm4, %v1185_v13, %v6396_v37 }
 0x4b4   : > { %v2570_v32 = vadd.f32 %v5791_v48, %v2532_v8  ;;  %v7165_v8 = vld [vmem:[#allocation52_spill] sm:$0xff] }
 0x4b6   : > { %v2780_v34 = vpop.permute.xlu0 %2779  ;;  %v6587_v27 = vpop.permute.xlu2 %3179 }
 0x4b7   : > { %v3017_v40 = vsel %vm333_vm1, %v2985_v0, %v2780_v34  ;;  %v3172_v16 = vpop.permute.xlu1 %3171 }
 0x4b8   : > { %v3049_v5 = vsel %vm1009_vm5, %v3017_v40, %v7159_v41  ;;  %v1197_v41 = vadd.f32 %v6008_v45, %v7162_v20 }
 0x4b9   : > { %v3082_v53 = vsel %vm3063_vm6, %v3049_v5, %v2569_v11  ;;  %v2496_v5 = vmax.f32 %v2464_v4, %v6314_v31 }
 0x4ba   : > { %v3115_v28 = vsel %vm3096_vm7, %v3082_v53, %v6084_v56  ;;  %v2990_v53 = vsel %vm937_vm4, %v1197_v41, %v2662_v54  ;;  %v7164_v54 = vld [vmem:[#allocation46_spill] sm:$0xff] }
 0x4bb   : > { %v3243_v44 = vadd.f32 %v3166_v19, %v3115_v28  ;;  %v2534_v28 = vmul.f32 %v5730_v39, %v2496_v5  ;;  %v7167_v5 = vld [vmem:[#allocation56_spill] sm:$0xff] }
 0x4bd   : > { %v3275_v14 = vmax.f32 %v3243_v44, 0.0  ;;  %v2572_v51 = vadd.f32 %v5791_v48, %v2534_v28 }
 0x4be   : > { %v3170_v7 = vpop.permute.xlu0 %3169  ;;  %v6611_v19 = vpop.permute.xlu2 %2671 }
 0x4bf   : > { %3308 = vst.msk [vmem:[%s6064_s18 + $0x90] sm:$0xff] %vm3289_vm8, %v3275_v14  ;;  %v3245_v56 = vadd.f32 %v3170_v7, %v3117_v47  ;;  %v2782_v15 = vpop.permute.xlu1 %2781 }
 0x4c0   : > { %v3018_v38 = vsel %vm333_vm1, %v2986_v12, %v2782_v15 }
 0x4c1   : > { %v3277_v24 = vmax.f32 %v3245_v56, 0.0  ;;  %v3050_v21 = vsel %vm1009_vm5, %v3018_v38, %v7161_v18 }
 0x4c2   : > { %v3083_v9 = vsel %vm3063_vm6, %v3050_v21, %v2570_v32  ;;  %v7166_v21 = vld [vmem:[#allocation24_spill] sm:$0xff] }
 0x4c3   : > { %3310 = vst.msk [vmem:[%s6064_s18 + $0xa0] sm:$0xff] %vm3289_vm8, %v3277_v24  ;;  %v3116_v37 = vsel %vm3096_vm7, %v3083_v9, %v6077_v35  ;;  %v2498_v35 = vmax.f32 %v2466_v17, %v6277_v61  ;;  %v1194_v9 = vadd.f32 %v6008_v45, %v7166_v21 }
 0x4c4   : > { %v3244_v22 = vadd.f32 %v6451_v42, %v3116_v37  ;;  %v1191_v42 = vadd.f32 %v6008_v45, %v7163_v30 }
 0x4c5   : > { %v2536_v7 = vmul.f32 %v5730_v39, %v2498_v35 }
 0x4c6   : > { %v3276_v0 = vmax.f32 %v3244_v22, 0.0  ;;  %v2668_v34 = vpop.permute.xlu0 %2667  ;;  %v2790_v11 = vpop.permute.xlu2 %2789  ;;  %v2988_v44 = vsel %vm937_vm4, %v1191_v42, %v6509_v46  ;;  %v2465_v46 = vmax.f32 %v6215_v1, %v6180_v59 }
 0x4c7   : > { %v6623_v40 = vpop.permute.xlu1 %2669  ;;  %v3022_v23 = vsel %vm333_vm1, %v2990_v53, %v2790_v11  ;;  %v2574_v15 = vadd.f32 %v5791_v48, %v2536_v7  ;;  %v2989_v11 = vsel %vm937_vm4, %v1194_v9, %v6485_v62  ;;  %v2468_v9 = vmax.f32 %v6314_v31, %v6277_v61 }
 0x4c8   : > { %3309 = vst.msk [vmem:[%s6064_s18 + $0x98] sm:$0xff] %vm3289_vm8, %v3276_v0  ;;  %v3054_v47 = vsel %vm1009_vm5, %v3022_v23, %v7164_v54  ;;  %v2497_v18 = vmax.f32 %v2465_v46, %v6284_v3 }
 0x4c9   : > { %v3087_v24 = vsel %vm3063_vm6, %v3054_v47, %v2574_v15 }
 0x4ca   : > { %v3120_v1 = vsel %vm3096_vm7, %v3087_v24, %v6314_v31  ;;  %v2535_v0 = vmul.f32 %v5730_v39, %v2497_v18 }
 0x4cc   : > { %v2573_v17 = vadd.f32 %v5791_v48, %v2535_v0 }
 0x4ce   : > { %v2786_v26 = vpop.permute.xlu0 %2785  ;;  %v6644_v13 = vpop.permute.xlu2 %3185 }
 0x4cf   : > { %v3020_v29 = vsel %vm333_vm1, %v2988_v44, %v2786_v26  ;;  %v3178_v14 = vpop.permute.xlu1 %3177  ;;  %v2467_v44 = vmax.f32 %v6180_v59, %v6284_v3  ;;  %v2469_v26 = vmax.f32 %v6284_v3, %v6411_v52 }
 0x4d0   : > { %v3052_v12 = vsel %vm1009_vm5, %v3020_v29, %v7165_v8 }
 0x4d1   : > { %v3085_v56 = vsel %vm3063_vm6, %v3052_v12, %v2572_v51  ;;  %v7168_v51 = vld [vmem:[#allocation33_spill] sm:$0xff]  ;;  %v2499_v54 = vmax.f32 %v2467_v44, %v6411_v52  ;;  %v2501_v46 = vmax.f32 %v2469_v26, %v6378_v25 }
 0x4d2   : > { %v3118_v32 = vsel %vm3096_vm7, %v3085_v56, %v6187_v36  ;;  %v1206_v29 = vadd.f32 %v6008_v45, %v7168_v51  ;;  %v7172_v44 = vld [vmem:[#allocation49_spill] sm:$0xff] }
 0x4d3   : > { %v3246_v38 = vadd.f32 %v3172_v16, %v3118_v32  ;;  %v2539_v18 = vmul.f32 %v5730_v39, %v2501_v46 }
 0x4d4   : > { %v2993_v8 = vsel %vm937_vm4, %v1206_v29, %v2668_v34  ;;  %v7170_v34 = vld [vmem:[#allocation57_spill] sm:$0xff] }
 0x4d5   : > { %v3278_v37 = vmax.f32 %v3246_v38, 0.0 }
 0x4d6   : > { %v3176_v22 = vpop.permute.xlu0 %3175  ;;  %v6668_v4 = vpop.permute.xlu2 %2677 }
 0x4d7   : > { %3311 = vst.msk [vmem:[%s6064_s18 + $0xa8] sm:$0xff] %vm3289_vm8, %v3278_v37  ;;  %v3248_v36 = vadd.f32 %v3176_v22, %v3120_v1  ;;  %v2788_v16 = vpop.permute.xlu1 %2787  ;;  %v2577_v37 = vadd.f32 %v5791_v48, %v2539_v18  ;;  %v7175_v18 = vld [vmem:[#allocation40_spill] sm:$0xff] }
 0x4d8   : > { %v3021_v20 = vsel %vm333_vm1, %v2989_v11, %v2788_v16  ;;  %v2500_v11 = vmax.f32 %v2468_v9, %v6385_v50 }
 0x4d9   : > { %v3280_v41 = vmax.f32 %v3248_v36, 0.0  ;;  %v3053_v30 = vsel %vm1009_vm5, %v3021_v20, %v7167_v5  ;;  %v7171_v36 = vld [vmem:[#allocation39_spill] sm:$0xff] }
 0x4da   : > { %v3086_v42 = vsel %vm3063_vm6, %v3053_v30, %v2573_v17  ;;  %v2470_v30 = vmax.f32 %v6277_v61, %v6385_v50 }
 0x4db   : > { %3313 = vst.msk [vmem:[%s6064_s18 + $0xb8] sm:$0xff] %vm3289_vm8, %v3280_v41  ;;  %v3119_v62 = vsel %vm3096_vm7, %v3086_v42, %v6180_v59  ;;  %v2537_v59 = vmul.f32 %v5730_v39, %v2499_v54  ;;  %v2538_v41 = vmul.f32 %v5730_v39, %v2500_v11 }
 0x4dc   : > { %v3247_v53 = vadd.f32 %v6530_v6, %v3119_v62  ;;  %v7169_v6 = vld [vmem:[#allocation18_spill] sm:$0xff]  ;;  %v2502_v29 = vmax.f32 %v2470_v30, %v6497_v2 }
 0x4dd   : > { %v1200_v47 = vadd.f32 %v6008_v45, %v7169_v6  ;;  %v2575_v32 = vadd.f32 %v5791_v48, %v2537_v59  ;;  %v2576_v42 = vadd.f32 %v5791_v48, %v2538_v41 }
 0x4de   : > { %v3279_v23 = vmax.f32 %v3247_v53, 0.0  ;;  %v6680_v28 = vpop.permute.xlu0 %2673  ;;  %v2796_v7 = vpop.permute.xlu2 %2795  ;;  %v2471_v53 = vmax.f32 %v6411_v52, %v6378_v25 }
 0x4df   : > { %v6682_v35 = vpop.permute.xlu1 %2675  ;;  %v3025_v12 = vsel %vm333_vm1, %v2993_v8, %v2796_v7  ;;  %v2991_v56 = vsel %vm937_vm4, %v1200_v47, %v6566_v57  ;;  %v7173_v7 = vld [vmem:[#allocation30_spill] sm:$0xff]  ;;  %v7174_v47 = vld [vmem:[#allocation12_spill] sm:$0xff] }
 0x4e0   : > { %3312 = vst.msk [vmem:[%s6064_s18 + $0xb0] sm:$0xff] %vm3289_vm8, %v3279_v23  ;;  %v3057_v45 = vsel %vm1009_vm5, %v3025_v12, %v6027_v10  ;;  %v3739_v10 = vld [vmem:[%s6862_s4] ss:$0 sm:$0xff]  ;;  %v2540_v12 = vmul.f32 %v5730_v39, %v2502_v29 }
 0x4e1   : > { %v3090_v0 = vsel %vm3063_vm6, %v3057_v45, %v2577_v37  ;;  %v1203_v16 = vadd.f32 %v3739_v10, %v7171_v36  ;;  %v1209_v54 = vadd.f32 %v3739_v10, %v7173_v7  ;;  %v1212_v8 = vadd.f32 %v3739_v10, %v7174_v47 }
 0x4e2   : > { %v3123_v20 = vsel %vm3096_vm7, %v3090_v0, %v6411_v52  ;;  %v2503_v52 = vmax.f32 %v2471_v53, %v6505_v60  ;;  %v2472_v37 = vmax.f32 %v6385_v50, %v6497_v2  ;;  %v2473_v36 = vmax.f32 %v6378_v25, %v6505_v60 }
 0x4e3   : > { %v2994_v59 = vsel %vm937_vm4, %v1209_v54, %v6623_v40 }
 0x4e6   : > { %v2792_v15 = vpop.permute.xlu0 %2791  ;;  %v2802_v9 = vpop.permute.xlu2 %2801 }
 0x4e7   : > { %v3023_v38 = vsel %vm333_vm1, %v2991_v56, %v2792_v15  ;;  %v3184_v24 = vpop.permute.xlu1 %3183  ;;  %v2541_v15 = vmul.f32 %v5730_v39, %v2503_v52 }
 0x4e8   : > { %v3055_v21 = vsel %vm1009_vm5, %v3023_v38, %v7170_v34 }
 0x4e9   : > { %v3088_v57 = vsel %vm3063_vm6, %v3055_v21, %v2575_v32  ;;  %v2578_v32 = vadd.f32 %v5791_v48, %v2540_v12  ;;  %v2579_v34 = vadd.f32 %v5791_v48, %v2541_v15  ;;  %v2474_v21 = vmax.f32 %v6497_v2, %v6501_v58 }
 0x4ea   : > { %v3121_v22 = vsel %vm3096_vm7, %v3088_v57, %v6284_v3  ;;  %v2992_v3 = vsel %vm937_vm4, %v1203_v16, %v6554_v63 }
 0x4eb   : > { %v3249_v1 = vadd.f32 %v3178_v14, %v3121_v22  ;;  %v7176_v22 = vld [vmem:[#allocation51_spill] sm:$0xff] }
 0x4ed   : > { %v3281_v31 = vmax.f32 %v3249_v1, 0.0  ;;  %v1215_v1 = vadd.f32 %v3739_v10, %v7176_v22 }
 0x4ee   : > { %v3182_v17 = vpop.permute.xlu0 %3181  ;;  %v3192_v47 = vpop.permute.xlu2 %3191 }
 0x4ef   : > { %3314 = vst.msk [vmem:[%s6064_s18 + $0xc0] sm:$0xff] %vm3289_vm8, %v3281_v31  ;;  %v3251_v14 = vadd.f32 %v3182_v17, %v3123_v20  ;;  %v2794_v5 = vpop.permute.xlu1 %2793  ;;  %v7177_v17 = vld [vmem:[#allocation36_spill] sm:$0xff] }
 0x4f0   : > { %v3024_v62 = vsel %vm333_vm1, %v2992_v3, %v2794_v5  ;;  %v1218_v20 = vadd.f32 %v3739_v10, %v7177_v17  ;;  %v3740_v3 = vld [vmem:[#allocation2 + $0x148] sm:$0xff] }
 0x4f1   : > { %v3283_v23 = vmax.f32 %v3251_v14, 0.0  ;;  %v3056_v26 = vsel %vm1009_vm5, %v3024_v62, %v7172_v44  ;;  %v2506_v14 = vmax.f32 %v2474_v21, %v3740_v3 }
 0x4f2   : > { %v3089_v63 = vsel %vm3063_vm6, %v3056_v26, %v2576_v42 }
 0x4f3   : > { %3316 = vst.msk [vmem:[%s6064_s18 + $0xd0] sm:$0xff] %vm3289_vm8, %v3283_v23  ;;  %v3122_v51 = vsel %vm3096_vm7, %v3089_v63, %v6277_v61  ;;  %v2995_v61 = vsel %vm937_vm4, %v1212_v8, %v6611_v19  ;;  %v2544_v23 = vmul.f32 %v5730_v39, %v2506_v14 }
 0x4f4   : > { %v3250_v6 = vadd.f32 %v6587_v27, %v3122_v51 }
 0x4f5   : > { %v2582_v51 = vadd.f32 %v5791_v48, %v2544_v23 }
 0x4f6   : > { %v3282_v46 = vmax.f32 %v3250_v6, 0.0  ;;  %v2798_v56 = vpop.permute.xlu0 %2797 }
 0x4f7   : > { %v3026_v27 = vsel %vm333_vm1, %v2994_v59, %v2798_v56  ;;  %v2800_v38 = vpop.permute.xlu1 %2799 }
 0x4f8   : > { %3315 = vst.msk [vmem:[%s6064_s18 + $0xc8] sm:$0xff] %vm3289_vm8, %v3282_v46  ;;  %v3058_v45 = vsel %vm1009_vm5, %v3026_v27, %v7175_v18  ;;  %v3027_v40 = vsel %vm333_vm1, %v2995_v61, %v2800_v38 }
 0x4f9   : > { %v3091_v19 = vsel %vm3063_vm6, %v3058_v45, %v2578_v32  ;;  %v3059_v57 = vsel %vm1009_vm5, %v3027_v40, %v6090_v33  ;;  %v2996_v33 = vsel %vm937_vm4, %v1215_v1, %v6680_v28  ;;  %v3741_v28 = vld [vmem:[#allocation2 + $0x140] sm:$0xff] }
 0x4fa   : > { %v3124_v0 = vsel %vm3096_vm7, %v3091_v19, %v6385_v50  ;;  %v3092_v11 = vsel %vm3063_vm6, %v3059_v57, %v2579_v34  ;;  %v7178_v50 = vld [vmem:[#allocation35_spill] sm:$0xff]  ;;  %v3028_v30 = vsel %vm333_vm1, %v2996_v33, %v2802_v9 }
 0x4fb   : > { %v3252_v16 = vadd.f32 %v3184_v24, %v3124_v0  ;;  %v3125_v31 = vsel %vm3096_vm7, %v3092_v11, %v6378_v25  ;;  %v1221_v5 = vadd.f32 %v3739_v10, %v7178_v50  ;;  %v2504_v24 = vmax.f32 %v2472_v37, %v6501_v58 }
 0x4fc   : > { %v3253_v41 = vadd.f32 %v6644_v13, %v3125_v31  ;;  %v2997_v25 = vsel %vm937_vm4, %v1218_v20, %v6682_v35  ;;  %v2505_v13 = vmax.f32 %v2473_v36, %v3741_v28  ;;  %v3060_v35 = vsel %vm1009_vm5, %v3028_v30, %v6129_v49 }
 0x4fd   : > { %v3284_v42 = vmax.f32 %v3252_v16, 0.0  ;;  %v2998_v44 = vsel %vm937_vm4, %v1221_v5, %v6668_v4  ;;  %v2542_v63 = vmul.f32 %v5730_v39, %v2504_v24 }
 0x4fe   : > { %v3285_v62 = vmax.f32 %v3253_v41, 0.0  ;;  %v2804_v53 = vpop.permute.xlu0 %2803  ;;  %v2543_v7 = vmul.f32 %v5730_v39, %v2505_v13 }
 0x4ff   : > { %3317 = vst.msk [vmem:[%s6064_s18 + $0xd8] sm:$0xff] %vm3289_vm8, %v3284_v42  ;;  %v3029_v10 = vsel %vm333_vm1, %v2997_v25, %v2804_v53  ;;  %v2806_v26 = vpop.permute.xlu1 %2805  ;;  %v2580_v6 = vadd.f32 %v5791_v48, %v2542_v63 }
 0x500   : > { %3318 = vst.msk [vmem:[%s6064_s18 + $0xe0] sm:$0xff] %vm3289_vm8, %v3285_v62  ;;  %v3030_v29 = vsel %vm333_vm1, %v2998_v44, %v2806_v26  ;;  %v3061_v4 = vsel %vm1009_vm5, %v3029_v10, %v6058_v43  ;;  %v2581_v52 = vadd.f32 %v5791_v48, %v2543_v7 }
 0x501   : > { %v3062_v54 = vsel %vm1009_vm5, %v3030_v29, %v6193_v55  ;;  %v3093_v39 = vsel %vm3063_vm6, %v3060_v35, %v2580_v6 }
 0x502   : > { %v3095_v49 = vsel %vm3063_vm6, %v3062_v54, %v2582_v51  ;;  %v3094_v43 = vsel %vm3063_vm6, %v3061_v4, %v2581_v52  ;;  %v3126_v48 = vsel %vm3096_vm7, %v3093_v39, %v6497_v2 }
 0x503   : > { %v3128_v8 = vsel %vm3096_vm7, %v3095_v49, %v6501_v58  ;;  %v3127_v58 = vsel %vm3096_vm7, %v3094_v43, %v6505_v60 }
 0x504   : > { %v3256_v12 = vadd.f32 %v3192_v47, %v3128_v8 }
 0x506   : > { %v3288_v55 = vmax.f32 %v3256_v12, 0.0  ;;  %v3188_v59 = vpop.permute.xlu0 %3187 }
 0x507   : > { %v3254_v46 = vadd.f32 %v3188_v59, %v3126_v48  ;;  %v3190_v56 = vpop.permute.xlu1 %3189 }
 0x508   : > { %3321 = vst.msk [vmem:[%s6064_s18 + $0xf8] sm:$0xff] %vm3289_vm8, %v3288_v55  ;;  %v3255_v15 = vadd.f32 %v3190_v56, %v3127_v58 }
 0x509   : > { %v3286_v61 = vmax.f32 %v3254_v46, 0.0 }
 0x50a   : > { %v3287_v32 = vmax.f32 %v3255_v15, 0.0 }
 0x50b   : > { %3319 = vst.msk [vmem:[%s6064_s18 + $0xe8] sm:$0xff] %vm3289_vm8, %v3286_v61 }
 0x50c   : > { %3320 = vst.msk [vmem:[%s6064_s18 + $0xf0] sm:$0xff] %vm3289_vm8, %v3287_v32 }
 0x50d   : > { %3769 = shalt.err (!%p3766_p5)
}
 0x50e   : > { %s3831_s17 = smov 128  }
 0x50f   : > { %3610 = dma.vmem_to_hbm [thread:$0]  (%p3912_p4), %s3339_s27, 4096, %s3341_s19, %s3323_s15, %s3831_s17, %s3831_s17, %s3824_s23  }
 0x510 PF: > { %p3616_p6 = scmp.ge.s32.totalorder %s3820_s29, 2  ;;  %s3355_s18 = sand.u32 1, %s3800_s24  }
 0x511   : > { %s3356_s8 = scalar_lea.sflag [#allocation4], %s3355_s18 }
 0x512   : > { %p3613_p7 = pnand %p3616_p6, %p3919_p8 }
 0x514   : > { %p3614_p9 = pneg %p3613_p7 }
 0x516   : > { %3795 = dma.done.wait (%p3614_p9), %s3356_s8, 4096  }
 0x517   : > { %3797 = vsyncadd (%p3614_p9), %s3356_s8, 4294963200  ;;  %s20_s29 = sadd.s32 1, %s3820_s29   ;;  %s7179_s24 = smov %s3804_s25 }
 0x518   : > { %p17_p10 = scmp.ge.s32.totalorder %s20_s29, 4   ;;  %s7180_s25 = smov %s3808_s26 }
 0x519   : > { %s7181_s26 = smov %s3925_s14  ;;  %s7182_s27 = smov %s3816_s28 }
 0x51a   : > { %s7183_s28 = smov %s7185_s9  ;;  %19 = sbr.rel (!%p17_p10) target bundleno = 4 (0x4), region = 94 }
 0x51f   :  { %3362 = vsyncpa [#allocation4], 1 }
 0x520   :  { %3364 = vsyncpa [#allocation4 + $0x1], 1 }

</bundles_post_ra>
